<compile_context>
chip_gen: v5e
topology: v5e:2x2
jax: 0.10.0
libtpu: 0.0.40
codegen_flags: <defaults>
</compile_context>

<pallas_src>
import functools

import numpy as np
import jax
import jax.numpy as jnp
from jax.experimental import pallas as pl
from jax.experimental.pallas import tpu as pltpu


_PARAMS = pltpu.CompilerParams(dimension_semantics=("parallel",))


# ----------------------------------------------------------------------------
# Host-side prep: banded weights, bias rows, selection matrices (pure glue)
# ----------------------------------------------------------------------------
def _band_conv_weight(w, w_in, w_out, *, shift=0, dtype=jnp.bfloat16):
    """w: (KH, KW, Cin, Cout) -> (KH, w_in*Cin, w_out*Cout) banded matrices.

    big[ky, (shift + j + kx)*Cin + ci, j*Cout + co] = w[ky, kx, ci, co]
    so that  y[h, j*Cout + co] = sum_ky  x2d[h + ky, :] @ big[ky]
    is the valid cross-correlation (nn.Conv2d) on the (H, W*C) layout.
    `shift` folds a center-crop column offset directly into the band.
    """
    kh, kw, cin, cout = w.shape
    sel = np.zeros((kw, w_in, w_out), np.float32)
    for kx in range(kw):
        for j in range(w_out):
            sel[kx, shift + j + kx, j] = 1.0
    big = jnp.einsum("kij,ykcd->yicjd", jnp.asarray(sel, w.dtype), w)
    return big.reshape(kh, w_in * cin, w_out * cout).astype(dtype)


def _band_upconv_weight(w, w_in, dtype=jnp.bfloat16):
    """w: (2, 2, Cin, Cout) -> (2, w_in*Cin, 2*w_in*Cout) banded matrices for
    ConvTranspose2d(kernel=2, stride=2):
        big[ky, i*Cin + ci, (2*i + kx)*Cout + co] = w[ky, kx, ci, co]
    """
    kh, kw, cin, cout = w.shape
    w_out = 2 * w_in
    sel = np.zeros((kw, w_in, w_out), np.float32)
    for kx in range(kw):
        for i in range(w_in):
            sel[kx, i, 2 * i + kx] = 1.0
    big = jnp.einsum("kij,ykcd->yicjd", jnp.asarray(sel, w.dtype), w)
    return big.reshape(kh, w_in * cin, w_out * cout).astype(dtype)


def _bias_row(b, w_out):
    # b: (1, C) -> (1, w_out*C) matching the (H, W*C) flattening.
    return jnp.tile(b, (1, w_out)).astype(jnp.float32)


def _pool_row_select(h2):
    hp = h2 // 2
    se = np.zeros((hp, h2), np.float32)
    so = np.zeros((hp, h2), np.float32)
    se[np.arange(hp), 2 * np.arange(hp)] = 1.0
    so[np.arange(hp), 2 * np.arange(hp) + 1] = 1.0
    return jnp.asarray(se), jnp.asarray(so)


def _pool_col_select(w2, c):
    wp = w2 // 2
    se = np.zeros((w2 * c, wp * c), np.float32)
    so = np.zeros((w2 * c, wp * c), np.float32)
    eye = np.eye(c, dtype=np.float32)
    for q in range(wp):
        se[(2 * q) * c:(2 * q + 1) * c, q * c:(q + 1) * c] = eye
        so[(2 * q + 1) * c:(2 * q + 2) * c, q * c:(q + 1) * c] = eye
    return jnp.asarray(se), jnp.asarray(so)


def _row_interleave(h):
    s0 = np.zeros((2 * h, h), np.float32)
    s1 = np.zeros((2 * h, h), np.float32)
    s0[2 * np.arange(h), np.arange(h)] = 1.0
    s1[2 * np.arange(h) + 1, np.arange(h)] = 1.0
    return jnp.asarray(s0), jnp.asarray(s1)


def _const_spec(shape):
    zero = (0,) * len(shape)
    return pl.BlockSpec(tuple(shape), lambda n, _z=zero: _z)


# ----------------------------------------------------------------------------
# In-kernel compute helpers
# ----------------------------------------------------------------------------
def _banded_conv(x, w_ref, b_ref, h_out, relu):
    # x: (H_in, W_in*Cin) f32 value; w_ref: (KH, W_in*Cin, W_out*Cout) bf16.
    kh = w_ref.shape[0]
    n = w_ref.shape[2]
    acc = jnp.zeros((h_out, n), jnp.float32)
    for ky in range(kh):  # static, fully unrolled (KH == 3)
        lhs = x[ky:ky + h_out, :].astype(jnp.bfloat16)
        acc = acc + jnp.dot(lhs, w_ref[ky], preferred_element_type=jnp.float32)
    acc = acc + b_ref[...]
    if relu:
        acc = jnp.maximum(acc, 0.0)
    return acc


def _make_fused_kernel(enc_meta, dec_meta):
    """Builds the whole-network kernel body.  Refs are consumed positionally
    in the same order the wrapper appended them to `inputs`."""

    def kernel(*refs):
        it = iter(refs)
        x_ref = next(it)
        x = x_ref[...].astype(jnp.float32)

        # ---------------- Encoder ----------------
        skips = []
        for meta in enc_meta:
            w1 = next(it); b1 = next(it); w2 = next(it); b2 = next(it)
            y1 = _banded_conv(x, w1, b1, meta["h1"], True)
            y2 = _banded_conv(y1, w2, b2, meta["h2"], True)
            if meta["pool"]:
                rse = next(it); rso = next(it); cse = next(it); cso = next(it)
                skips.append(y2)           # stays in VMEM, never hits HBM
                # Row-pair max then column-pair max via exact 0/1 selection
                # matmuls (f32 so the max-pool stays bit-exact selection).
                rmax = jnp.maximum(
                    jnp.dot(rse[...], y2, preferred_element_type=jnp.float32),
                    jnp.dot(rso[...], y2, preferred_element_type=jnp.float32))
                x = jnp.maximum(
                    jnp.dot(rmax, cse[...], preferred_element_type=jnp.float32),
                    jnp.dot(rmax, cso[...], preferred_element_type=jnp.float32))
            else:
                x = y2

        # ---------------- Decoder ----------------
        for meta in dec_meta:
            wu = next(it); bu = next(it); s0 = next(it); s1 = next(it)
            w1x = next(it); w1f = next(it); b1 = next(it)
            w2 = next(it); b2 = next(it)

            # ConvTranspose2d(k=2, s=2): one banded matmul per kernel row,
            # then interleave even/odd output rows with 0/1 selection matmuls.
            xb = x.astype(jnp.bfloat16)
            up0 = jnp.dot(xb, wu[0], preferred_element_type=jnp.float32)
            up1 = jnp.dot(xb, wu[1], preferred_element_type=jnp.float32)
            up = (jnp.dot(s0[...], up0, preferred_element_type=jnp.float32)
                  + jnp.dot(s1[...], up1, preferred_element_type=jnp.float32)
                  + bu[...])

            skip = skips.pop()
            kh = w1x.shape[0]
            h1 = meta["h1"]
            h0 = meta["h0"]
            n1 = w1x.shape[2]

            # conv1 over the (implicit) channel concat [upconv_out, skip]:
            # contraction splits into two accumulated banded matmuls; the
            # skip's center crop is folded into its band (cols) + h0 (rows).
            acc = jnp.zeros((h1, n1), jnp.float32)
            for ky in range(kh):
                acc = acc + jnp.dot(up[ky:ky + h1, :].astype(jnp.bfloat16),
                                    w1x[ky], preferred_element_type=jnp.float32)
                acc = acc + jnp.dot(
                    skip[h0 + ky:h0 + ky + h1, :].astype(jnp.bfloat16),
                    w1f[ky], preferred_element_type=jnp.float32)
            y1 = jnp.maximum(acc + b1[...], 0.0)
            x = _banded_conv(y1, w2, b2, meta["h2"], True)

        # ---------------- 1x1 head ----------------
        wh = next(it); bh = next(it)
        o_ref = next(it)
        y = jnp.dot(x.astype(jnp.bfloat16), wh[...],
                    preferred_element_type=jnp.float32) + bh[...]
        o_ref[...] = y.astype(o_ref.dtype)

    return kernel


# ----------------------------------------------------------------------------
# U-Net forward: one pallas_call for the whole network (grid over batch)
# ----------------------------------------------------------------------------
def unet_forward(x_nchw, params):
    b_sz, cin, h, w = x_nchw.shape
    x2d = jnp.transpose(x_nchw, (0, 2, 3, 1)).reshape(b_sz, h, w * cin)

    inputs = [x2d]
    in_specs = [pl.BlockSpec((None, h, w * cin), lambda n: (n, 0, 0))]

    enc_meta, dec_meta = [], []
    skip_shapes = []
    cur_h, cur_w, cur_c = h, w, cin

    # ---- Encoder stages ----
    n_enc = len(params["enc"])
    for i, blk in enumerate(params["enc"]):
        kh, kw, ci, co = blk["w1"].shape
        h1, w1 = cur_h - kh + 1, cur_w - kw + 1
        h2, w2 = h1 - kh + 1, w1 - kw + 1
        arrs = [_band_conv_weight(blk["w1"], cur_w, w1),
                _bias_row(blk["b1"], w1),
                _band_conv_weight(blk["w2"], w1, w2),
                _bias_row(blk["b2"], w2)]
        pool = (i != n_enc - 1)
        if pool:
            assert h2 % 2 == 0 and w2 % 2 == 0, "2x2 max-pool needs even dims"
            hp, wp = h2 // 2, w2 // 2
            rse, rso = _pool_row_select(h2)
            cse, cso = _pool_col_select(w2, co)
            arrs += [rse, rso, cse, cso]
            skip_shapes.append((h2, w2, co))
            cur_h, cur_w, cur_c = hp, wp, co
        else:
            cur_h, cur_w, cur_c = h2, w2, co
        inputs += arrs
        in_specs += [_const_spec(a.shape) for a in arrs]
        enc_meta.append({"h1": h1, "h2": h2, "pool": pool})

    # ---- Decoder stages ----
    for up, blk in zip(params["dec_up"], params["dec_blocks"]):
        _, _, ci_u, cup = up["w"].shape
        kh, kw, cin_blk, cmid = blk["w1"].shape
        co = blk["w2"].shape[3]
        hf, wf, _ = skip_shapes.pop()
        hu, wu = 2 * cur_h, 2 * cur_w
        h1, w1c = hu - kh + 1, wu - kw + 1
        h2, w2c = h1 - kh + 1, w1c - kw + 1
        h0 = int(round((hf - hu) / 2.0))   # center-crop offsets (match torch)
        w0 = int(round((wf - wu) / 2.0))

        s0, s1 = _row_interleave(cur_h)
        arrs = [_band_upconv_weight(up["w"], cur_w),
                _bias_row(up["b"], wu),
                s0, s1,
                _band_conv_weight(blk["w1"][:, :, :cup, :], wu, w1c),
                _band_conv_weight(blk["w1"][:, :, cup:, :], wf, w1c, shift=w0),
                _bias_row(blk["b1"], w1c),
                _band_conv_weight(blk["w2"], w1c, w2c),
                _bias_row(blk["b2"], w2c)]
        inputs += arrs
        in_specs += [_const_spec(a.shape) for a in arrs]
        dec_meta.append({"h1": h1, "h2": h2, "h0": h0})
        cur_h, cur_w, cur_c = h2, w2c, co

    # ---- 1x1 head ----
    ncls = params["head_w"].shape[3]
    head_arrs = [_band_conv_weight(params["head_w"], cur_w, cur_w)[0],
                 _bias_row(params["head_b"], cur_w)]
    inputs += head_arrs
    in_specs += [_const_spec(a.shape) for a in head_arrs]

    out_shape = jax.ShapeDtypeStruct((b_sz, cur_h, cur_w * ncls), x2d.dtype)
    out_spec = pl.BlockSpec((None, cur_h, cur_w * ncls), lambda n: (n, 0, 0))

    kernel = _make_fused_kernel(enc_meta, dec_meta)
    y2d = pl.pallas_call(
        kernel,
        out_shape=out_shape,
        grid=(b_sz,),
        in_specs=in_specs,
        out_specs=out_spec,
        compiler_params=_PARAMS,
    )(*inputs)

    return jnp.transpose(y2d.reshape(b_sz, cur_h, cur_w, ncls), (0, 3, 1, 2))


# ----------------------------------------------------------------------------
# Deterministic parameter init (mirrors shapes / custom init of the module)
# ----------------------------------------------------------------------------
def _init_std(channels, k):
    return 2.0 / np.sqrt(channels * k * k)   # == Block.init_std


def _block_params(key, cin, cout, k=3):
    k1, k2, k3, k4 = jax.random.split(key, 4)
    return {
        "w1": jax.random.normal(k1, (k, k, cin, cout), jnp.float32) * _init_std(cin, k),
        "b1": jax.random.uniform(k2, (1, cout), jnp.float32, -0.1, 0.1),
        "w2": jax.random.normal(k3, (k, k, cout, cout), jnp.float32) * _init_std(cout, k),
        "b2": jax.random.uniform(k4, (1, cout), jnp.float32, -0.1, 0.1),
    }


def init_params(key, channels, no_classes):
    params = {"enc": [], "dec_up": [], "dec_blocks": []}
    keys = jax.random.split(key, 64)
    ki = 0

    for cin, cout in zip(channels[:-1], channels[1:]):
        params["enc"].append(_block_params(keys[ki], cin, cout))
        ki += 1

    dec_channels = list(reversed(channels[1:]))
    for cin, cout in zip(dec_channels[:-1], dec_channels[1:]):
        kw, kb = jax.random.split(keys[ki]); ki += 1
        params["dec_up"].append({
            "w": jax.random.normal(kw, (2, 2, cin, cout), jnp.float32) * _init_std(cin, 2),
            "b": jax.random.uniform(kb, (1, cout), jnp.float32, -0.1, 0.1),
        })
        params["dec_blocks"].append(_block_params(keys[ki], cin, cout))
        ki += 1

    kw, kb = jax.random.split(keys[ki])
    params["head_w"] = (jax.random.normal(kw, (1, 1, channels[1], no_classes), jnp.float32)
                        * _init_std(channels[1], 1))
    params["head_b"] = jax.random.uniform(kb, (1, no_classes), jnp.float32, -0.1, 0.1)
    return params


# ----------------------------------------------------------------------------
if __name__ == "__main__":
    key = jax.random.PRNGKey(0)
    kx, kp = jax.random.split(key)

    channels = [3, 8, 16]   # U-Net channel schedule
    no_classes = 2
    x = jax.random.normal(kx, (2, 3, 32, 32), jnp.float32)   # NCHW like PyTorch

    params = init_params(kp, channels, no_classes)
    fwd = jax.jit(unet_forward)
    out = fwd(x, params)
    out = jax.block_until_ready(out)

    # 32 ->(block) 28 ->(pool) 14 ->(block) 10 ->(up) 20 ->(block) 16
    assert out.shape == (2, no_classes, 16, 16), out.shape
    assert bool(jnp.all(jnp.isfinite(out)))
    print("KERNEL_OK")
</pallas_src>

<mosaic_0001>
module attributes {stable_mosaic.version = 11 : i64} {
  func.func @kernel(%arg0: i32, %arg1: memref<1x32x96xf32, #tpu.memory_space<vmem>>, %arg2: memref<3x96x240xbf16, #tpu.memory_space<vmem>>, %arg3: memref<1x240xf32, #tpu.memory_space<vmem>>, %arg4: memref<3x240x224xbf16, #tpu.memory_space<vmem>>, %arg5: memref<1x224xf32, #tpu.memory_space<vmem>>, %arg6: memref<14x28xf32, #tpu.memory_space<vmem>>, %arg7: memref<14x28xf32, #tpu.memory_space<vmem>>, %arg8: memref<224x112xf32, #tpu.memory_space<vmem>>, %arg9: memref<224x112xf32, #tpu.memory_space<vmem>>, %arg10: memref<3x112x192xbf16, #tpu.memory_space<vmem>>, %arg11: memref<1x192xf32, #tpu.memory_space<vmem>>, %arg12: memref<3x192x160xbf16, #tpu.memory_space<vmem>>, %arg13: memref<1x160xf32, #tpu.memory_space<vmem>>, %arg14: memref<2x160x160xbf16, #tpu.memory_space<vmem>>, %arg15: memref<1x160xf32, #tpu.memory_space<vmem>>, %arg16: memref<20x10xf32, #tpu.memory_space<vmem>>, %arg17: memref<20x10xf32, #tpu.memory_space<vmem>>, %arg18: memref<3x160x144xbf16, #tpu.memory_space<vmem>>, %arg19: memref<3x224x144xbf16, #tpu.memory_space<vmem>>, %arg20: memref<1x144xf32, #tpu.memory_space<vmem>>, %arg21: memref<3x144x128xbf16, #tpu.memory_space<vmem>>, %arg22: memref<1x128xf32, #tpu.memory_space<vmem>>, %arg23: memref<128x32xbf16, #tpu.memory_space<vmem>>, %arg24: memref<1x32xf32, #tpu.memory_space<vmem>>, %arg25: memref<1x16x32xf32, #tpu.memory_space<vmem>>) attributes {dimension_semantics = [#tpu.dimension_semantics<parallel>], iteration_bounds = array<i64: 2>, scalar_prefetch = 0 : i64, scratch_operands = 0 : i64, tpu.core_type = #tpu.core_type<tc>, window_params = [{transform_indices = @transform_0, window_bounds = array<i64: 1, 32, 96>}, {pipeline_mode = #tpu.pipeline_mode<synchronous>, transform_indices = @transform_1, window_bounds = array<i64: 3, 96, 240>}, {pipeline_mode = #tpu.pipeline_mode<synchronous>, transform_indices = @transform_2, window_bounds = array<i64: 1, 240>}, {pipeline_mode = #tpu.pipeline_mode<synchronous>, transform_indices = @transform_3, window_bounds = array<i64: 3, 240, 224>}, {pipeline_mode = #tpu.pipeline_mode<synchronous>, transform_indices = @transform_4, window_bounds = array<i64: 1, 224>}, {pipeline_mode = #tpu.pipeline_mode<synchronous>, transform_indices = @transform_5, window_bounds = array<i64: 14, 28>}, {pipeline_mode = #tpu.pipeline_mode<synchronous>, transform_indices = @transform_6, window_bounds = array<i64: 14, 28>}, {pipeline_mode = #tpu.pipeline_mode<synchronous>, transform_indices = @transform_7, window_bounds = array<i64: 224, 112>}, {pipeline_mode = #tpu.pipeline_mode<synchronous>, transform_indices = @transform_8, window_bounds = array<i64: 224, 112>}, {pipeline_mode = #tpu.pipeline_mode<synchronous>, transform_indices = @transform_9, window_bounds = array<i64: 3, 112, 192>}, {pipeline_mode = #tpu.pipeline_mode<synchronous>, transform_indices = @transform_10, window_bounds = array<i64: 1, 192>}, {pipeline_mode = #tpu.pipeline_mode<synchronous>, transform_indices = @transform_11, window_bounds = array<i64: 3, 192, 160>}, {pipeline_mode = #tpu.pipeline_mode<synchronous>, transform_indices = @transform_12, window_bounds = array<i64: 1, 160>}, {pipeline_mode = #tpu.pipeline_mode<synchronous>, transform_indices = @transform_13, window_bounds = array<i64: 2, 160, 160>}, {pipeline_mode = #tpu.pipeline_mode<synchronous>, transform_indices = @transform_14, window_bounds = array<i64: 1, 160>}, {pipeline_mode = #tpu.pipeline_mode<synchronous>, transform_indices = @transform_15, window_bounds = array<i64: 20, 10>}, {pipeline_mode = #tpu.pipeline_mode<synchronous>, transform_indices = @transform_16, window_bounds = array<i64: 20, 10>}, {pipeline_mode = #tpu.pipeline_mode<synchronous>, transform_indices = @transform_17, window_bounds = array<i64: 3, 160, 144>}, {pipeline_mode = #tpu.pipeline_mode<synchronous>, transform_indices = @transform_18, window_bounds = array<i64: 3, 224, 144>}, {pipeline_mode = #tpu.pipeline_mode<synchronous>, transform_indices = @transform_19, window_bounds = array<i64: 1, 144>}, {pipeline_mode = #tpu.pipeline_mode<synchronous>, transform_indices = @transform_20, window_bounds = array<i64: 3, 144, 128>}, {pipeline_mode = #tpu.pipeline_mode<synchronous>, transform_indices = @transform_21, window_bounds = array<i64: 1, 128>}, {pipeline_mode = #tpu.pipeline_mode<synchronous>, transform_indices = @transform_22, window_bounds = array<i64: 128, 32>}, {pipeline_mode = #tpu.pipeline_mode<synchronous>, transform_indices = @transform_23, window_bounds = array<i64: 1, 32>}, {transform_indices = @transform_24, window_bounds = array<i64: 1, 16, 32>}]} {
    %c0 = arith.constant 0 : index
    %c0_0 = arith.constant 0 : index
    %c0_1 = arith.constant 0 : index
    %0 = vector.load %arg1[%c0, %c0_0, %c0_1] : memref<1x32x96xf32, #tpu.memory_space<vmem>>, vector<1x32x96xf32>
    %1 = vector.shape_cast %0 : vector<1x32x96xf32> to vector<32x96xf32>
    %cst = arith.constant 0.000000e+00 : f32
    %2 = vector.broadcast %cst : f32 to vector<30x240xf32>
    %3 = vector.extract_strided_slice %1 {offsets = [0, 0], sizes = [30, 96], strides = [1, 1]} : vector<32x96xf32> to vector<30x96xf32>
    %4 = arith.truncf %3 : vector<30x96xf32> to vector<30x96xbf16>
    %c0_2 = arith.constant 0 : index
    %c0_3 = arith.constant 0 : index
    %c0_4 = arith.constant 0 : index
    %5 = vector.load %arg2[%c0_2, %c0_3, %c0_4] : memref<3x96x240xbf16, #tpu.memory_space<vmem>>, vector<1x96x240xbf16>
    %6 = vector.shape_cast %5 : vector<1x96x240xbf16> to vector<96x240xbf16>
    %cst_5 = arith.constant dense<0.000000e+00> : vector<30x240xf32>
    %7 = tpu.matmul %4, %6, %cst_5 {dimension_numbers = #tpu.dot_dimension_numbers<[1], [0], [0], [1], [0, 0, 1, 1], [], []>} : vector<30x96xbf16>, vector<96x240xbf16>, vector<30x240xf32> -> vector<30x240xf32>
    %8 = arith.addf %2, %7 : vector<30x240xf32>
    %9 = vector.extract_strided_slice %1 {offsets = [1, 0], sizes = [30, 96], strides = [1, 1]} : vector<32x96xf32> to vector<30x96xf32>
    %10 = arith.truncf %9 : vector<30x96xf32> to vector<30x96xbf16>
    %c1 = arith.constant 1 : index
    %c0_6 = arith.constant 0 : index
    %c0_7 = arith.constant 0 : index
    %11 = vector.load %arg2[%c1, %c0_6, %c0_7] : memref<3x96x240xbf16, #tpu.memory_space<vmem>>, vector<1x96x240xbf16>
    %12 = vector.shape_cast %11 : vector<1x96x240xbf16> to vector<96x240xbf16>
    %cst_8 = arith.constant dense<0.000000e+00> : vector<30x240xf32>
    %13 = tpu.matmul %10, %12, %cst_8 {dimension_numbers = #tpu.dot_dimension_numbers<[1], [0], [0], [1], [0, 0, 1, 1], [], []>} : vector<30x96xbf16>, vector<96x240xbf16>, vector<30x240xf32> -> vector<30x240xf32>
    %14 = arith.addf %8, %13 : vector<30x240xf32>
    %15 = vector.extract_strided_slice %1 {offsets = [2, 0], sizes = [30, 96], strides = [1, 1]} : vector<32x96xf32> to vector<30x96xf32>
    %16 = arith.truncf %15 : vector<30x96xf32> to vector<30x96xbf16>
    %c2 = arith.constant 2 : index
    %c0_9 = arith.constant 0 : index
    %c0_10 = arith.constant 0 : index
    %17 = vector.load %arg2[%c2, %c0_9, %c0_10] : memref<3x96x240xbf16, #tpu.memory_space<vmem>>, vector<1x96x240xbf16>
    %18 = vector.shape_cast %17 : vector<1x96x240xbf16> to vector<96x240xbf16>
    %cst_11 = arith.constant dense<0.000000e+00> : vector<30x240xf32>
    %19 = tpu.matmul %16, %18, %cst_11 {dimension_numbers = #tpu.dot_dimension_numbers<[1], [0], [0], [1], [0, 0, 1, 1], [], []>} : vector<30x96xbf16>, vector<96x240xbf16>, vector<30x240xf32> -> vector<30x240xf32>
    %20 = arith.addf %14, %19 : vector<30x240xf32>
    %c0_12 = arith.constant 0 : index
    %c0_13 = arith.constant 0 : index
    %21 = vector.load %arg3[%c0_12, %c0_13] : memref<1x240xf32, #tpu.memory_space<vmem>>, vector<1x240xf32>
    %22 = vector.broadcast %21 : vector<1x240xf32> to vector<30x240xf32>
    %23 = arith.addf %20, %22 : vector<30x240xf32>
    %cst_14 = arith.constant 0.000000e+00 : f32
    %24 = vector.broadcast %cst_14 : f32 to vector<30x240xf32>
    %25 = arith.maximumf %23, %24 : vector<30x240xf32>
    %cst_15 = arith.constant 0.000000e+00 : f32
    %26 = vector.broadcast %cst_15 : f32 to vector<28x224xf32>
    %27 = vector.extract_strided_slice %25 {offsets = [0, 0], sizes = [28, 240], strides = [1, 1]} : vector<30x240xf32> to vector<28x240xf32>
    %28 = arith.truncf %27 : vector<28x240xf32> to vector<28x240xbf16>
    %c0_16 = arith.constant 0 : index
    %c0_17 = arith.constant 0 : index
    %c0_18 = arith.constant 0 : index
    %29 = vector.load %arg4[%c0_16, %c0_17, %c0_18] : memref<3x240x224xbf16, #tpu.memory_space<vmem>>, vector<1x240x224xbf16>
    %30 = vector.shape_cast %29 : vector<1x240x224xbf16> to vector<240x224xbf16>
    %cst_19 = arith.constant dense<0.000000e+00> : vector<28x224xf32>
    %31 = tpu.matmul %28, %30, %cst_19 {dimension_numbers = #tpu.dot_dimension_numbers<[1], [0], [0], [1], [0, 0, 1, 1], [], []>} : vector<28x240xbf16>, vector<240x224xbf16>, vector<28x224xf32> -> vector<28x224xf32>
    %32 = arith.addf %26, %31 : vector<28x224xf32>
    %33 = vector.extract_strided_slice %25 {offsets = [1, 0], sizes = [28, 240], strides = [1, 1]} : vector<30x240xf32> to vector<28x240xf32>
    %34 = arith.truncf %33 : vector<28x240xf32> to vector<28x240xbf16>
    %c1_20 = arith.constant 1 : index
    %c0_21 = arith.constant 0 : index
    %c0_22 = arith.constant 0 : index
    %35 = vector.load %arg4[%c1_20, %c0_21, %c0_22] : memref<3x240x224xbf16, #tpu.memory_space<vmem>>, vector<1x240x224xbf16>
    %36 = vector.shape_cast %35 : vector<1x240x224xbf16> to vector<240x224xbf16>
    %cst_23 = arith.constant dense<0.000000e+00> : vector<28x224xf32>
    %37 = tpu.matmul %34, %36, %cst_23 {dimension_numbers = #tpu.dot_dimension_numbers<[1], [0], [0], [1], [0, 0, 1, 1], [], []>} : vector<28x240xbf16>, vector<240x224xbf16>, vector<28x224xf32> -> vector<28x224xf32>
    %38 = arith.addf %32, %37 : vector<28x224xf32>
    %39 = vector.extract_strided_slice %25 {offsets = [2, 0], sizes = [28, 240], strides = [1, 1]} : vector<30x240xf32> to vector<28x240xf32>
    %40 = arith.truncf %39 : vector<28x240xf32> to vector<28x240xbf16>
    %c2_24 = arith.constant 2 : index
    %c0_25 = arith.constant 0 : index
    %c0_26 = arith.constant 0 : index
    %41 = vector.load %arg4[%c2_24, %c0_25, %c0_26] : memref<3x240x224xbf16, #tpu.memory_space<vmem>>, vector<1x240x224xbf16>
    %42 = vector.shape_cast %41 : vector<1x240x224xbf16> to vector<240x224xbf16>
    %cst_27 = arith.constant dense<0.000000e+00> : vector<28x224xf32>
    %43 = tpu.matmul %40, %42, %cst_27 {dimension_numbers = #tpu.dot_dimension_numbers<[1], [0], [0], [1], [0, 0, 1, 1], [], []>} : vector<28x240xbf16>, vector<240x224xbf16>, vector<28x224xf32> -> vector<28x224xf32>
    %44 = arith.addf %38, %43 : vector<28x224xf32>
    %c0_28 = arith.constant 0 : index
    %c0_29 = arith.constant 0 : index
    %45 = vector.load %arg5[%c0_28, %c0_29] : memref<1x224xf32, #tpu.memory_space<vmem>>, vector<1x224xf32>
    %46 = vector.broadcast %45 : vector<1x224xf32> to vector<28x224xf32>
    %47 = arith.addf %44, %46 : vector<28x224xf32>
    %cst_30 = arith.constant 0.000000e+00 : f32
    %48 = vector.broadcast %cst_30 : f32 to vector<28x224xf32>
    %49 = arith.maximumf %47, %48 : vector<28x224xf32>
    %c0_31 = arith.constant 0 : index
    %c0_32 = arith.constant 0 : index
    %50 = vector.load %arg6[%c0_31, %c0_32] : memref<14x28xf32, #tpu.memory_space<vmem>>, vector<14x28xf32>
    %cst_33 = arith.constant dense<0.000000e+00> : vector<14x224xf32>
    %51 = tpu.matmul %50, %49, %cst_33 {dimension_numbers = #tpu.dot_dimension_numbers<[1], [0], [0], [1], [0, 0, 1, 1], [], []>} : vector<14x28xf32>, vector<28x224xf32>, vector<14x224xf32> -> vector<14x224xf32>
    %c0_34 = arith.constant 0 : index
    %c0_35 = arith.constant 0 : index
    %52 = vector.load %arg7[%c0_34, %c0_35] : memref<14x28xf32, #tpu.memory_space<vmem>>, vector<14x28xf32>
    %cst_36 = arith.constant dense<0.000000e+00> : vector<14x224xf32>
    %53 = tpu.matmul %52, %49, %cst_36 {dimension_numbers = #tpu.dot_dimension_numbers<[1], [0], [0], [1], [0, 0, 1, 1], [], []>} : vector<14x28xf32>, vector<28x224xf32>, vector<14x224xf32> -> vector<14x224xf32>
    %54 = arith.maximumf %51, %53 : vector<14x224xf32>
    %c0_37 = arith.constant 0 : index
    %c0_38 = arith.constant 0 : index
    %55 = vector.load %arg8[%c0_37, %c0_38] : memref<224x112xf32, #tpu.memory_space<vmem>>, vector<224x112xf32>
    %cst_39 = arith.constant dense<0.000000e+00> : vector<14x112xf32>
    %56 = tpu.matmul %54, %55, %cst_39 {dimension_numbers = #tpu.dot_dimension_numbers<[1], [0], [0], [1], [0, 0, 1, 1], [], []>} : vector<14x224xf32>, vector<224x112xf32>, vector<14x112xf32> -> vector<14x112xf32>
    %c0_40 = arith.constant 0 : index
    %c0_41 = arith.constant 0 : index
    %57 = vector.load %arg9[%c0_40, %c0_41] : memref<224x112xf32, #tpu.memory_space<vmem>>, vector<224x112xf32>
    %cst_42 = arith.constant dense<0.000000e+00> : vector<14x112xf32>
    %58 = tpu.matmul %54, %57, %cst_42 {dimension_numbers = #tpu.dot_dimension_numbers<[1], [0], [0], [1], [0, 0, 1, 1], [], []>} : vector<14x224xf32>, vector<224x112xf32>, vector<14x112xf32> -> vector<14x112xf32>
    %59 = arith.maximumf %56, %58 : vector<14x112xf32>
    %cst_43 = arith.constant 0.000000e+00 : f32
    %60 = vector.broadcast %cst_43 : f32 to vector<12x192xf32>
    %61 = vector.extract_strided_slice %59 {offsets = [0, 0], sizes = [12, 112], strides = [1, 1]} : vector<14x112xf32> to vector<12x112xf32>
    %62 = arith.truncf %61 : vector<12x112xf32> to vector<12x112xbf16>
    %c0_44 = arith.constant 0 : index
    %c0_45 = arith.constant 0 : index
    %c0_46 = arith.constant 0 : index
    %63 = vector.load %arg10[%c0_44, %c0_45, %c0_46] : memref<3x112x192xbf16, #tpu.memory_space<vmem>>, vector<1x112x192xbf16>
    %64 = vector.shape_cast %63 : vector<1x112x192xbf16> to vector<112x192xbf16>
    %cst_47 = arith.constant dense<0.000000e+00> : vector<12x192xf32>
    %65 = tpu.matmul %62, %64, %cst_47 {dimension_numbers = #tpu.dot_dimension_numbers<[1], [0], [0], [1], [0, 0, 1, 1], [], []>} : vector<12x112xbf16>, vector<112x192xbf16>, vector<12x192xf32> -> vector<12x192xf32>
    %66 = arith.addf %60, %65 : vector<12x192xf32>
    %67 = vector.extract_strided_slice %59 {offsets = [1, 0], sizes = [12, 112], strides = [1, 1]} : vector<14x112xf32> to vector<12x112xf32>
    %68 = arith.truncf %67 : vector<12x112xf32> to vector<12x112xbf16>
    %c1_48 = arith.constant 1 : index
    %c0_49 = arith.constant 0 : index
    %c0_50 = arith.constant 0 : index
    %69 = vector.load %arg10[%c1_48, %c0_49, %c0_50] : memref<3x112x192xbf16, #tpu.memory_space<vmem>>, vector<1x112x192xbf16>
    %70 = vector.shape_cast %69 : vector<1x112x192xbf16> to vector<112x192xbf16>
    %cst_51 = arith.constant dense<0.000000e+00> : vector<12x192xf32>
    %71 = tpu.matmul %68, %70, %cst_51 {dimension_numbers = #tpu.dot_dimension_numbers<[1], [0], [0], [1], [0, 0, 1, 1], [], []>} : vector<12x112xbf16>, vector<112x192xbf16>, vector<12x192xf32> -> vector<12x192xf32>
    %72 = arith.addf %66, %71 : vector<12x192xf32>
    %73 = vector.extract_strided_slice %59 {offsets = [2, 0], sizes = [12, 112], strides = [1, 1]} : vector<14x112xf32> to vector<12x112xf32>
    %74 = arith.truncf %73 : vector<12x112xf32> to vector<12x112xbf16>
    %c2_52 = arith.constant 2 : index
    %c0_53 = arith.constant 0 : index
    %c0_54 = arith.constant 0 : index
    %75 = vector.load %arg10[%c2_52, %c0_53, %c0_54] : memref<3x112x192xbf16, #tpu.memory_space<vmem>>, vector<1x112x192xbf16>
    %76 = vector.shape_cast %75 : vector<1x112x192xbf16> to vector<112x192xbf16>
    %cst_55 = arith.constant dense<0.000000e+00> : vector<12x192xf32>
    %77 = tpu.matmul %74, %76, %cst_55 {dimension_numbers = #tpu.dot_dimension_numbers<[1], [0], [0], [1], [0, 0, 1, 1], [], []>} : vector<12x112xbf16>, vector<112x192xbf16>, vector<12x192xf32> -> vector<12x192xf32>
    %78 = arith.addf %72, %77 : vector<12x192xf32>
    %c0_56 = arith.constant 0 : index
    %c0_57 = arith.constant 0 : index
    %79 = vector.load %arg11[%c0_56, %c0_57] : memref<1x192xf32, #tpu.memory_space<vmem>>, vector<1x192xf32>
    %80 = vector.broadcast %79 : vector<1x192xf32> to vector<12x192xf32>
    %81 = arith.addf %78, %80 : vector<12x192xf32>
    %cst_58 = arith.constant 0.000000e+00 : f32
    %82 = vector.broadcast %cst_58 : f32 to vector<12x192xf32>
    %83 = arith.maximumf %81, %82 : vector<12x192xf32>
    %cst_59 = arith.constant 0.000000e+00 : f32
    %84 = vector.broadcast %cst_59 : f32 to vector<10x160xf32>
    %85 = vector.extract_strided_slice %83 {offsets = [0, 0], sizes = [10, 192], strides = [1, 1]} : vector<12x192xf32> to vector<10x192xf32>
    %86 = arith.truncf %85 : vector<10x192xf32> to vector<10x192xbf16>
    %c0_60 = arith.constant 0 : index
    %c0_61 = arith.constant 0 : index
    %c0_62 = arith.constant 0 : index
    %87 = vector.load %arg12[%c0_60, %c0_61, %c0_62] : memref<3x192x160xbf16, #tpu.memory_space<vmem>>, vector<1x192x160xbf16>
    %88 = vector.shape_cast %87 : vector<1x192x160xbf16> to vector<192x160xbf16>
    %cst_63 = arith.constant dense<0.000000e+00> : vector<10x160xf32>
    %89 = tpu.matmul %86, %88, %cst_63 {dimension_numbers = #tpu.dot_dimension_numbers<[1], [0], [0], [1], [0, 0, 1, 1], [], []>} : vector<10x192xbf16>, vector<192x160xbf16>, vector<10x160xf32> -> vector<10x160xf32>
    %90 = arith.addf %84, %89 : vector<10x160xf32>
    %91 = vector.extract_strided_slice %83 {offsets = [1, 0], sizes = [10, 192], strides = [1, 1]} : vector<12x192xf32> to vector<10x192xf32>
    %92 = arith.truncf %91 : vector<10x192xf32> to vector<10x192xbf16>
    %c1_64 = arith.constant 1 : index
    %c0_65 = arith.constant 0 : index
    %c0_66 = arith.constant 0 : index
    %93 = vector.load %arg12[%c1_64, %c0_65, %c0_66] : memref<3x192x160xbf16, #tpu.memory_space<vmem>>, vector<1x192x160xbf16>
    %94 = vector.shape_cast %93 : vector<1x192x160xbf16> to vector<192x160xbf16>
    %cst_67 = arith.constant dense<0.000000e+00> : vector<10x160xf32>
    %95 = tpu.matmul %92, %94, %cst_67 {dimension_numbers = #tpu.dot_dimension_numbers<[1], [0], [0], [1], [0, 0, 1, 1], [], []>} : vector<10x192xbf16>, vector<192x160xbf16>, vector<10x160xf32> -> vector<10x160xf32>
    %96 = arith.addf %90, %95 : vector<10x160xf32>
    %97 = vector.extract_strided_slice %83 {offsets = [2, 0], sizes = [10, 192], strides = [1, 1]} : vector<12x192xf32> to vector<10x192xf32>
    %98 = arith.truncf %97 : vector<10x192xf32> to vector<10x192xbf16>
    %c2_68 = arith.constant 2 : index
    %c0_69 = arith.constant 0 : index
    %c0_70 = arith.constant 0 : index
    %99 = vector.load %arg12[%c2_68, %c0_69, %c0_70] : memref<3x192x160xbf16, #tpu.memory_space<vmem>>, vector<1x192x160xbf16>
    %100 = vector.shape_cast %99 : vector<1x192x160xbf16> to vector<192x160xbf16>
    %cst_71 = arith.constant dense<0.000000e+00> : vector<10x160xf32>
    %101 = tpu.matmul %98, %100, %cst_71 {dimension_numbers = #tpu.dot_dimension_numbers<[1], [0], [0], [1], [0, 0, 1, 1], [], []>} : vector<10x192xbf16>, vector<192x160xbf16>, vector<10x160xf32> -> vector<10x160xf32>
    %102 = arith.addf %96, %101 : vector<10x160xf32>
    %c0_72 = arith.constant 0 : index
    %c0_73 = arith.constant 0 : index
    %103 = vector.load %arg13[%c0_72, %c0_73] : memref<1x160xf32, #tpu.memory_space<vmem>>, vector<1x160xf32>
    %104 = vector.broadcast %103 : vector<1x160xf32> to vector<10x160xf32>
    %105 = arith.addf %102, %104 : vector<10x160xf32>
    %cst_74 = arith.constant 0.000000e+00 : f32
    %106 = vector.broadcast %cst_74 : f32 to vector<10x160xf32>
    %107 = arith.maximumf %105, %106 : vector<10x160xf32>
    %108 = arith.truncf %107 : vector<10x160xf32> to vector<10x160xbf16>
    %c0_75 = arith.constant 0 : index
    %c0_76 = arith.constant 0 : index
    %c0_77 = arith.constant 0 : index
    %109 = vector.load %arg14[%c0_75, %c0_76, %c0_77] : memref<2x160x160xbf16, #tpu.memory_space<vmem>>, vector<1x160x160xbf16>
    %110 = vector.shape_cast %109 : vector<1x160x160xbf16> to vector<160x160xbf16>
    %cst_78 = arith.constant dense<0.000000e+00> : vector<10x160xf32>
    %111 = tpu.matmul %108, %110, %cst_78 {dimension_numbers = #tpu.dot_dimension_numbers<[1], [0], [0], [1], [0, 0, 1, 1], [], []>} : vector<10x160xbf16>, vector<160x160xbf16>, vector<10x160xf32> -> vector<10x160xf32>
    %c1_79 = arith.constant 1 : index
    %c0_80 = arith.constant 0 : index
    %c0_81 = arith.constant 0 : index
    %112 = vector.load %arg14[%c1_79, %c0_80, %c0_81] : memref<2x160x160xbf16, #tpu.memory_space<vmem>>, vector<1x160x160xbf16>
    %113 = vector.shape_cast %112 : vector<1x160x160xbf16> to vector<160x160xbf16>
    %cst_82 = arith.constant dense<0.000000e+00> : vector<10x160xf32>
    %114 = tpu.matmul %108, %113, %cst_82 {dimension_numbers = #tpu.dot_dimension_numbers<[1], [0], [0], [1], [0, 0, 1, 1], [], []>} : vector<10x160xbf16>, vector<160x160xbf16>, vector<10x160xf32> -> vector<10x160xf32>
    %c0_83 = arith.constant 0 : index
    %c0_84 = arith.constant 0 : index
    %115 = vector.load %arg16[%c0_83, %c0_84] : memref<20x10xf32, #tpu.memory_space<vmem>>, vector<20x10xf32>
    %cst_85 = arith.constant dense<0.000000e+00> : vector<20x160xf32>
    %116 = tpu.matmul %115, %111, %cst_85 {dimension_numbers = #tpu.dot_dimension_numbers<[1], [0], [0], [1], [0, 0, 1, 1], [], []>} : vector<20x10xf32>, vector<10x160xf32>, vector<20x160xf32> -> vector<20x160xf32>
    %c0_86 = arith.constant 0 : index
    %c0_87 = arith.constant 0 : index
    %117 = vector.load %arg17[%c0_86, %c0_87] : memref<20x10xf32, #tpu.memory_space<vmem>>, vector<20x10xf32>
    %cst_88 = arith.constant dense<0.000000e+00> : vector<20x160xf32>
    %118 = tpu.matmul %117, %114, %cst_88 {dimension_numbers = #tpu.dot_dimension_numbers<[1], [0], [0], [1], [0, 0, 1, 1], [], []>} : vector<20x10xf32>, vector<10x160xf32>, vector<20x160xf32> -> vector<20x160xf32>
    %119 = arith.addf %116, %118 : vector<20x160xf32>
    %c0_89 = arith.constant 0 : index
    %c0_90 = arith.constant 0 : index
    %120 = vector.load %arg15[%c0_89, %c0_90] : memref<1x160xf32, #tpu.memory_space<vmem>>, vector<1x160xf32>
    %121 = vector.broadcast %120 : vector<1x160xf32> to vector<20x160xf32>
    %122 = arith.addf %119, %121 : vector<20x160xf32>
    %cst_91 = arith.constant 0.000000e+00 : f32
    %123 = vector.broadcast %cst_91 : f32 to vector<18x144xf32>
    %124 = vector.extract_strided_slice %122 {offsets = [0, 0], sizes = [18, 160], strides = [1, 1]} : vector<20x160xf32> to vector<18x160xf32>
    %125 = arith.truncf %124 : vector<18x160xf32> to vector<18x160xbf16>
    %c0_92 = arith.constant 0 : index
    %c0_93 = arith.constant 0 : index
    %c0_94 = arith.constant 0 : index
    %126 = vector.load %arg18[%c0_92, %c0_93, %c0_94] : memref<3x160x144xbf16, #tpu.memory_space<vmem>>, vector<1x160x144xbf16>
    %127 = vector.shape_cast %126 : vector<1x160x144xbf16> to vector<160x144xbf16>
    %cst_95 = arith.constant dense<0.000000e+00> : vector<18x144xf32>
    %128 = tpu.matmul %125, %127, %cst_95 {dimension_numbers = #tpu.dot_dimension_numbers<[1], [0], [0], [1], [0, 0, 1, 1], [], []>} : vector<18x160xbf16>, vector<160x144xbf16>, vector<18x144xf32> -> vector<18x144xf32>
    %129 = arith.addf %123, %128 : vector<18x144xf32>
    %130 = vector.extract_strided_slice %49 {offsets = [4, 0], sizes = [18, 224], strides = [1, 1]} : vector<28x224xf32> to vector<18x224xf32>
    %131 = arith.truncf %130 : vector<18x224xf32> to vector<18x224xbf16>
    %c0_96 = arith.constant 0 : index
    %c0_97 = arith.constant 0 : index
    %c0_98 = arith.constant 0 : index
    %132 = vector.load %arg19[%c0_96, %c0_97, %c0_98] : memref<3x224x144xbf16, #tpu.memory_space<vmem>>, vector<1x224x144xbf16>
    %133 = vector.shape_cast %132 : vector<1x224x144xbf16> to vector<224x144xbf16>
    %cst_99 = arith.constant dense<0.000000e+00> : vector<18x144xf32>
    %134 = tpu.matmul %131, %133, %cst_99 {dimension_numbers = #tpu.dot_dimension_numbers<[1], [0], [0], [1], [0, 0, 1, 1], [], []>} : vector<18x224xbf16>, vector<224x144xbf16>, vector<18x144xf32> -> vector<18x144xf32>
    %135 = arith.addf %129, %134 : vector<18x144xf32>
    %136 = vector.extract_strided_slice %122 {offsets = [1, 0], sizes = [18, 160], strides = [1, 1]} : vector<20x160xf32> to vector<18x160xf32>
    %137 = arith.truncf %136 : vector<18x160xf32> to vector<18x160xbf16>
    %c1_100 = arith.constant 1 : index
    %c0_101 = arith.constant 0 : index
    %c0_102 = arith.constant 0 : index
    %138 = vector.load %arg18[%c1_100, %c0_101, %c0_102] : memref<3x160x144xbf16, #tpu.memory_space<vmem>>, vector<1x160x144xbf16>
    %139 = vector.shape_cast %138 : vector<1x160x144xbf16> to vector<160x144xbf16>
    %cst_103 = arith.constant dense<0.000000e+00> : vector<18x144xf32>
    %140 = tpu.matmul %137, %139, %cst_103 {dimension_numbers = #tpu.dot_dimension_numbers<[1], [0], [0], [1], [0, 0, 1, 1], [], []>} : vector<18x160xbf16>, vector<160x144xbf16>, vector<18x144xf32> -> vector<18x144xf32>
    %141 = arith.addf %135, %140 : vector<18x144xf32>
    %142 = vector.extract_strided_slice %49 {offsets = [5, 0], sizes = [18, 224], strides = [1, 1]} : vector<28x224xf32> to vector<18x224xf32>
    %143 = arith.truncf %142 : vector<18x224xf32> to vector<18x224xbf16>
    %c1_104 = arith.constant 1 : index
    %c0_105 = arith.constant 0 : index
    %c0_106 = arith.constant 0 : index
    %144 = vector.load %arg19[%c1_104, %c0_105, %c0_106] : memref<3x224x144xbf16, #tpu.memory_space<vmem>>, vector<1x224x144xbf16>
    %145 = vector.shape_cast %144 : vector<1x224x144xbf16> to vector<224x144xbf16>
    %cst_107 = arith.constant dense<0.000000e+00> : vector<18x144xf32>
    %146 = tpu.matmul %143, %145, %cst_107 {dimension_numbers = #tpu.dot_dimension_numbers<[1], [0], [0], [1], [0, 0, 1, 1], [], []>} : vector<18x224xbf16>, vector<224x144xbf16>, vector<18x144xf32> -> vector<18x144xf32>
    %147 = arith.addf %141, %146 : vector<18x144xf32>
    %148 = vector.extract_strided_slice %122 {offsets = [2, 0], sizes = [18, 160], strides = [1, 1]} : vector<20x160xf32> to vector<18x160xf32>
    %149 = arith.truncf %148 : vector<18x160xf32> to vector<18x160xbf16>
    %c2_108 = arith.constant 2 : index
    %c0_109 = arith.constant 0 : index
    %c0_110 = arith.constant 0 : index
    %150 = vector.load %arg18[%c2_108, %c0_109, %c0_110] : memref<3x160x144xbf16, #tpu.memory_space<vmem>>, vector<1x160x144xbf16>
    %151 = vector.shape_cast %150 : vector<1x160x144xbf16> to vector<160x144xbf16>
    %cst_111 = arith.constant dense<0.000000e+00> : vector<18x144xf32>
    %152 = tpu.matmul %149, %151, %cst_111 {dimension_numbers = #tpu.dot_dimension_numbers<[1], [0], [0], [1], [0, 0, 1, 1], [], []>} : vector<18x160xbf16>, vector<160x144xbf16>, vector<18x144xf32> -> vector<18x144xf32>
    %153 = arith.addf %147, %152 : vector<18x144xf32>
    %154 = vector.extract_strided_slice %49 {offsets = [6, 0], sizes = [18, 224], strides = [1, 1]} : vector<28x224xf32> to vector<18x224xf32>
    %155 = arith.truncf %154 : vector<18x224xf32> to vector<18x224xbf16>
    %c2_112 = arith.constant 2 : index
    %c0_113 = arith.constant 0 : index
    %c0_114 = arith.constant 0 : index
    %156 = vector.load %arg19[%c2_112, %c0_113, %c0_114] : memref<3x224x144xbf16, #tpu.memory_space<vmem>>, vector<1x224x144xbf16>
    %157 = vector.shape_cast %156 : vector<1x224x144xbf16> to vector<224x144xbf16>
    %cst_115 = arith.constant dense<0.000000e+00> : vector<18x144xf32>
    %158 = tpu.matmul %155, %157, %cst_115 {dimension_numbers = #tpu.dot_dimension_numbers<[1], [0], [0], [1], [0, 0, 1, 1], [], []>} : vector<18x224xbf16>, vector<224x144xbf16>, vector<18x144xf32> -> vector<18x144xf32>
    %159 = arith.addf %153, %158 : vector<18x144xf32>
    %c0_116 = arith.constant 0 : index
    %c0_117 = arith.constant 0 : index
    %160 = vector.load %arg20[%c0_116, %c0_117] : memref<1x144xf32, #tpu.memory_space<vmem>>, vector<1x144xf32>
    %161 = vector.broadcast %160 : vector<1x144xf32> to vector<18x144xf32>
    %162 = arith.addf %159, %161 : vector<18x144xf32>
    %cst_118 = arith.constant 0.000000e+00 : f32
    %163 = vector.broadcast %cst_118 : f32 to vector<18x144xf32>
    %164 = arith.maximumf %162, %163 : vector<18x144xf32>
    %cst_119 = arith.constant 0.000000e+00 : f32
    %165 = vector.broadcast %cst_119 : f32 to vector<16x128xf32>
    %166 = vector.extract_strided_slice %164 {offsets = [0, 0], sizes = [16, 144], strides = [1, 1]} : vector<18x144xf32> to vector<16x144xf32>
    %167 = arith.truncf %166 : vector<16x144xf32> to vector<16x144xbf16>
    %c0_120 = arith.constant 0 : index
    %c0_121 = arith.constant 0 : index
    %c0_122 = arith.constant 0 : index
    %168 = vector.load %arg21[%c0_120, %c0_121, %c0_122] : memref<3x144x128xbf16, #tpu.memory_space<vmem>>, vector<1x144x128xbf16>
    %169 = vector.shape_cast %168 : vector<1x144x128xbf16> to vector<144x128xbf16>
    %cst_123 = arith.constant dense<0.000000e+00> : vector<16x128xf32>
    %170 = tpu.matmul %167, %169, %cst_123 {dimension_numbers = #tpu.dot_dimension_numbers<[1], [0], [0], [1], [0, 0, 1, 1], [], []>} : vector<16x144xbf16>, vector<144x128xbf16>, vector<16x128xf32> -> vector<16x128xf32>
    %171 = arith.addf %165, %170 : vector<16x128xf32>
    %172 = vector.extract_strided_slice %164 {offsets = [1, 0], sizes = [16, 144], strides = [1, 1]} : vector<18x144xf32> to vector<16x144xf32>
    %173 = arith.truncf %172 : vector<16x144xf32> to vector<16x144xbf16>
    %c1_124 = arith.constant 1 : index
    %c0_125 = arith.constant 0 : index
    %c0_126 = arith.constant 0 : index
    %174 = vector.load %arg21[%c1_124, %c0_125, %c0_126] : memref<3x144x128xbf16, #tpu.memory_space<vmem>>, vector<1x144x128xbf16>
    %175 = vector.shape_cast %174 : vector<1x144x128xbf16> to vector<144x128xbf16>
    %cst_127 = arith.constant dense<0.000000e+00> : vector<16x128xf32>
    %176 = tpu.matmul %173, %175, %cst_127 {dimension_numbers = #tpu.dot_dimension_numbers<[1], [0], [0], [1], [0, 0, 1, 1], [], []>} : vector<16x144xbf16>, vector<144x128xbf16>, vector<16x128xf32> -> vector<16x128xf32>
    %177 = arith.addf %171, %176 : vector<16x128xf32>
    %178 = vector.extract_strided_slice %164 {offsets = [2, 0], sizes = [16, 144], strides = [1, 1]} : vector<18x144xf32> to vector<16x144xf32>
    %179 = arith.truncf %178 : vector<16x144xf32> to vector<16x144xbf16>
    %c2_128 = arith.constant 2 : index
    %c0_129 = arith.constant 0 : index
    %c0_130 = arith.constant 0 : index
    %180 = vector.load %arg21[%c2_128, %c0_129, %c0_130] : memref<3x144x128xbf16, #tpu.memory_space<vmem>>, vector<1x144x128xbf16>
    %181 = vector.shape_cast %180 : vector<1x144x128xbf16> to vector<144x128xbf16>
    %cst_131 = arith.constant dense<0.000000e+00> : vector<16x128xf32>
    %182 = tpu.matmul %179, %181, %cst_131 {dimension_numbers = #tpu.dot_dimension_numbers<[1], [0], [0], [1], [0, 0, 1, 1], [], []>} : vector<16x144xbf16>, vector<144x128xbf16>, vector<16x128xf32> -> vector<16x128xf32>
    %183 = arith.addf %177, %182 : vector<16x128xf32>
    %c0_132 = arith.constant 0 : index
    %c0_133 = arith.constant 0 : index
    %184 = vector.load %arg22[%c0_132, %c0_133] : memref<1x128xf32, #tpu.memory_space<vmem>>, vector<1x128xf32>
    %185 = vector.broadcast %184 : vector<1x128xf32> to vector<16x128xf32>
    %186 = arith.addf %183, %185 : vector<16x128xf32>
    %cst_134 = arith.constant 0.000000e+00 : f32
    %187 = vector.broadcast %cst_134 : f32 to vector<16x128xf32>
    %188 = arith.maximumf %186, %187 : vector<16x128xf32>
    %189 = arith.truncf %188 : vector<16x128xf32> to vector<16x128xbf16>
    %c0_135 = arith.constant 0 : index
    %c0_136 = arith.constant 0 : index
    %190 = vector.load %arg23[%c0_135, %c0_136] : memref<128x32xbf16, #tpu.memory_space<vmem>>, vector<128x32xbf16>
    %cst_137 = arith.constant dense<0.000000e+00> : vector<16x32xf32>
    %191 = tpu.matmul %189, %190, %cst_137 {dimension_numbers = #tpu.dot_dimension_numbers<[1], [0], [0], [1], [0, 0, 1, 1], [], []>} : vector<16x128xbf16>, vector<128x32xbf16>, vector<16x32xf32> -> vector<16x32xf32>
    %c0_138 = arith.constant 0 : index
    %c0_139 = arith.constant 0 : index
    %192 = vector.load %arg24[%c0_138, %c0_139] : memref<1x32xf32, #tpu.memory_space<vmem>>, vector<1x32xf32>
    %193 = vector.broadcast %192 : vector<1x32xf32> to vector<16x32xf32>
    %194 = arith.addf %191, %193 : vector<16x32xf32>
    %c0_140 = arith.constant 0 : index
    %c0_141 = arith.constant 0 : index
    %c0_142 = arith.constant 0 : index
    %195 = vector.load %arg25[%c0_140, %c0_141, %c0_142] : memref<1x16x32xf32, #tpu.memory_space<vmem>>, vector<1x16x32xf32>
    %196 = vector.shape_cast %195 : vector<1x16x32xf32> to vector<16x32xf32>
    %197 = vector.shape_cast %194 : vector<16x32xf32> to vector<1x16x32xf32>
    tpu.vector_store %arg25[%c0_140, %c0_141, %c0_142], %197 {strides = array<i32>} : memref<1x16x32xf32, #tpu.memory_space<vmem>>, vector<1x16x32xf32>,
    return
  }
  func.func @transform_0(%arg0: i32) -> (i32, i32, i32) {
    %c0_i32 = arith.constant 0 : i32
    %c0_i32_0 = arith.constant 0 : i32
    %c0_i32_1 = arith.constant 0 : i32
    return %arg0, %c0_i32, %c0_i32_0 : i32, i32, i32
  }
  func.func @transform_1(%arg0: i32) -> (i32, i32, i32) {
    %c0_i32 = arith.constant 0 : i32
    %c0_i32_0 = arith.constant 0 : i32
    %c0_i32_1 = arith.constant 0 : i32
    %c0_i32_2 = arith.constant 0 : i32
    return %c0_i32, %c0_i32_0, %c0_i32_1 : i32, i32, i32
  }
  func.func @transform_2(%arg0: i32) -> (i32, i32) {
    %c0_i32 = arith.constant 0 : i32
    %c0_i32_0 = arith.constant 0 : i32
    %c0_i32_1 = arith.constant 0 : i32
    return %c0_i32, %c0_i32_0 : i32, i32
  }
  func.func @transform_3(%arg0: i32) -> (i32, i32, i32) {
    %c0_i32 = arith.constant 0 : i32
    %c0_i32_0 = arith.constant 0 : i32
    %c0_i32_1 = arith.constant 0 : i32
    %c0_i32_2 = arith.constant 0 : i32
    return %c0_i32, %c0_i32_0, %c0_i32_1 : i32, i32, i32
  }
  func.func @transform_4(%arg0: i32) -> (i32, i32) {
    %c0_i32 = arith.constant 0 : i32
    %c0_i32_0 = arith.constant 0 : i32
    %c0_i32_1 = arith.constant 0 : i32
    return %c0_i32, %c0_i32_0 : i32, i32
  }
  func.func @transform_5(%arg0: i32) -> (i32, i32) {
    %c0_i32 = arith.constant 0 : i32
    %c0_i32_0 = arith.constant 0 : i32
    %c0_i32_1 = arith.constant 0 : i32
    return %c0_i32, %c0_i32_0 : i32, i32
  }
  func.func @transform_6(%arg0: i32) -> (i32, i32) {
    %c0_i32 = arith.constant 0 : i32
    %c0_i32_0 = arith.constant 0 : i32
    %c0_i32_1 = arith.constant 0 : i32
    return %c0_i32, %c0_i32_0 : i32, i32
  }
  func.func @transform_7(%arg0: i32) -> (i32, i32) {
    %c0_i32 = arith.constant 0 : i32
    %c0_i32_0 = arith.constant 0 : i32
    %c0_i32_1 = arith.constant 0 : i32
    return %c0_i32, %c0_i32_0 : i32, i32
  }
  func.func @transform_8(%arg0: i32) -> (i32, i32) {
    %c0_i32 = arith.constant 0 : i32
    %c0_i32_0 = arith.constant 0 : i32
    %c0_i32_1 = arith.constant 0 : i32
    return %c0_i32, %c0_i32_0 : i32, i32
  }
  func.func @transform_9(%arg0: i32) -> (i32, i32, i32) {
    %c0_i32 = arith.constant 0 : i32
    %c0_i32_0 = arith.constant 0 : i32
    %c0_i32_1 = arith.constant 0 : i32
    %c0_i32_2 = arith.constant 0 : i32
    return %c0_i32, %c0_i32_0, %c0_i32_1 : i32, i32, i32
  }
  func.func @transform_10(%arg0: i32) -> (i32, i32) {
    %c0_i32 = arith.constant 0 : i32
    %c0_i32_0 = arith.constant 0 : i32
    %c0_i32_1 = arith.constant 0 : i32
    return %c0_i32, %c0_i32_0 : i32, i32
  }
  func.func @transform_11(%arg0: i32) -> (i32, i32, i32) {
    %c0_i32 = arith.constant 0 : i32
    %c0_i32_0 = arith.constant 0 : i32
    %c0_i32_1 = arith.constant 0 : i32
    %c0_i32_2 = arith.constant 0 : i32
    return %c0_i32, %c0_i32_0, %c0_i32_1 : i32, i32, i32
  }
  func.func @transform_12(%arg0: i32) -> (i32, i32) {
    %c0_i32 = arith.constant 0 : i32
    %c0_i32_0 = arith.constant 0 : i32
    %c0_i32_1 = arith.constant 0 : i32
    return %c0_i32, %c0_i32_0 : i32, i32
  }
  func.func @transform_13(%arg0: i32) -> (i32, i32, i32) {
    %c0_i32 = arith.constant 0 : i32
    %c0_i32_0 = arith.constant 0 : i32
    %c0_i32_1 = arith.constant 0 : i32
    %c0_i32_2 = arith.constant 0 : i32
    return %c0_i32, %c0_i32_0, %c0_i32_1 : i32, i32, i32
  }
  func.func @transform_14(%arg0: i32) -> (i32, i32) {
    %c0_i32 = arith.constant 0 : i32
    %c0_i32_0 = arith.constant 0 : i32
    %c0_i32_1 = arith.constant 0 : i32
    return %c0_i32, %c0_i32_0 : i32, i32
  }
  func.func @transform_15(%arg0: i32) -> (i32, i32) {
    %c0_i32 = arith.constant 0 : i32
    %c0_i32_0 = arith.constant 0 : i32
    %c0_i32_1 = arith.constant 0 : i32
    return %c0_i32, %c0_i32_0 : i32, i32
  }
  func.func @transform_16(%arg0: i32) -> (i32, i32) {
    %c0_i32 = arith.constant 0 : i32
    %c0_i32_0 = arith.constant 0 : i32
    %c0_i32_1 = arith.constant 0 : i32
    return %c0_i32, %c0_i32_0 : i32, i32
  }
  func.func @transform_17(%arg0: i32) -> (i32, i32, i32) {
    %c0_i32 = arith.constant 0 : i32
    %c0_i32_0 = arith.constant 0 : i32
    %c0_i32_1 = arith.constant 0 : i32
    %c0_i32_2 = arith.constant 0 : i32
    return %c0_i32, %c0_i32_0, %c0_i32_1 : i32, i32, i32
  }
  func.func @transform_18(%arg0: i32) -> (i32, i32, i32) {
    %c0_i32 = arith.constant 0 : i32
    %c0_i32_0 = arith.constant 0 : i32
    %c0_i32_1 = arith.constant 0 : i32
    %c0_i32_2 = arith.constant 0 : i32
    return %c0_i32, %c0_i32_0, %c0_i32_1 : i32, i32, i32
  }
  func.func @transform_19(%arg0: i32) -> (i32, i32) {
    %c0_i32 = arith.constant 0 : i32
    %c0_i32_0 = arith.constant 0 : i32
    %c0_i32_1 = arith.constant 0 : i32
    return %c0_i32, %c0_i32_0 : i32, i32
  }
  func.func @transform_20(%arg0: i32) -> (i32, i32, i32) {
    %c0_i32 = arith.constant 0 : i32
    %c0_i32_0 = arith.constant 0 : i32
    %c0_i32_1 = arith.constant 0 : i32
    %c0_i32_2 = arith.constant 0 : i32
    return %c0_i32, %c0_i32_0, %c0_i32_1 : i32, i32, i32
  }
  func.func @transform_21(%arg0: i32) -> (i32, i32) {
    %c0_i32 = arith.constant 0 : i32
    %c0_i32_0 = arith.constant 0 : i32
    %c0_i32_1 = arith.constant 0 : i32
    return %c0_i32, %c0_i32_0 : i32, i32
  }
  func.func @transform_22(%arg0: i32) -> (i32, i32) {
    %c0_i32 = arith.constant 0 : i32
    %c0_i32_0 = arith.constant 0 : i32
    %c0_i32_1 = arith.constant 0 : i32
    return %c0_i32, %c0_i32_0 : i32, i32
  }
  func.func @transform_23(%arg0: i32) -> (i32, i32) {
    %c0_i32 = arith.constant 0 : i32
    %c0_i32_0 = arith.constant 0 : i32
    %c0_i32_1 = arith.constant 0 : i32
    return %c0_i32, %c0_i32_0 : i32, i32
  }
  func.func @transform_24(%arg0: i32) -> (i32, i32, i32) {
    %c0_i32 = arith.constant 0 : i32
    %c0_i32_0 = arith.constant 0 : i32
    %c0_i32_1 = arith.constant 0 : i32
    return %arg0, %c0_i32, %c0_i32_0 : i32, i32, i32
  }
}

</mosaic_0001>

<bundles_post_ra>
// kernel: unet_forward.1
= control target key start
LH: loop header
LB: loop body
LE: loop exit
PB: predicated region body
PF: predicated region fallthrough
CT: control target
= control target key end

     0   :  { %s12138_s0 = inlined_call_operand.vmem [shape: f32[2,32,96], index: 0, kind: input, shape index: {}]   ;;  %s12139_s1 = inlined_call_operand.vmem [shape: bf16[3,96,240], index: 1, kind: input, shape index: {}]   ;;  %s12140_s2 = inlined_call_operand.vmem [shape: f32[1,240], index: 2, kind: input, shape index: {}]   ;;  %s12141_s3 = inlined_call_operand.vmem [shape: bf16[3,240,224], index: 3, kind: input, shape index: {}]   ;;  %s12142_s4 = inlined_call_operand.vmem [shape: f32[1,224], index: 4, kind: input, shape index: {}]   ;;  %s12143_s5 = inlined_call_operand.vmem [shape: f32[14,28], index: 5, kind: input, shape index: {}]   ;;  %s12144_s6 = inlined_call_operand.vmem [shape: f32[14,28], index: 6, kind: input, shape index: {}]   ;;  %s12145_s7 = inlined_call_operand.vmem [shape: f32[224,112], index: 7, kind: input, shape index: {}]   ;;  %s12146_s8 = inlined_call_operand.vmem [shape: f32[224,112], index: 8, kind: input, shape index: {}]   ;;  %s12147_s9 = inlined_call_operand.vmem [shape: bf16[3,112,192], index: 9, kind: input, shape index: {}]   ;;  %s12148_s10 = inlined_call_operand.vmem [shape: f32[1,192], index: 10, kind: input, shape index: {}]   ;;  %s12149_s11 = inlined_call_operand.vmem [shape: bf16[3,192,160], index: 11, kind: input, shape index: {}]   ;;  %s12150_s12 = inlined_call_operand.vmem [shape: f32[1,160], index: 12, kind: input, shape index: {}]   ;;  %s12151_s13 = inlined_call_operand.vmem [shape: bf16[2,160,160], index: 13, kind: input, shape index: {}]   ;;  %s12152_s14 = inlined_call_operand.vmem [shape: f32[1,160], index: 14, kind: input, shape index: {}]   ;;  %s12153_s15 = inlined_call_operand.vmem [shape: f32[20,10], index: 15, kind: input, shape index: {}]   ;;  %s12154_s16 = inlined_call_operand.vmem [shape: f32[20,10], index: 16, kind: input, shape index: {}]   ;;  %s12155_s17 = inlined_call_operand.vmem [shape: bf16[3,160,144], index: 17, kind: input, shape index: {}]   ;;  %s12156_s18 = inlined_call_operand.vmem [shape: bf16[3,224,144], index: 18, kind: input, shape index: {}]   ;;  %s12157_s19 = inlined_call_operand.vmem [shape: f32[1,144], index: 19, kind: input, shape index: {}]   ;;  %s12158_s20 = inlined_call_operand.vmem [shape: bf16[3,144,128], index: 20, kind: input, shape index: {}]   ;;  %s12159_s21 = inlined_call_operand.vmem [shape: f32[1,128], index: 21, kind: input, shape index: {}]   ;;  %s12160_s22 = inlined_call_operand.vmem [shape: bf16[128,32], index: 22, kind: input, shape index: {}]   ;;  %s12161_s23 = inlined_call_operand.vmem [shape: f32[1,32], index: 23, kind: input, shape index: {}]   ;;  %s12162_s24 = inlined_call_operand.vmem [shape: f32[2,16,32], index: 24, kind: output, shape index: {}]  }
   0x1   :  { %12174 = sst [smem:[#allocation2_spill]] %s12138_s0 }
   0x2   :  { %12175 = sst [smem:[#allocation3_spill]] %s12139_s1 }
   0x3   :  { %12176 = sst [smem:[#allocation4_spill]] %s12140_s2 }
   0x4   :  { %12177 = sst [smem:[#allocation5_spill]] %s12141_s3 }
   0x5   :  { %12178 = sst [smem:[#allocation6_spill]] %s12142_s4 }
   0x6   :  { %12179 = sst [smem:[#allocation7_spill]] %s12143_s5  ;;  %s8675_s5 = smov 0  }
   0x7   :  { %12180 = sst [smem:[#allocation8_spill]] %s12144_s6 }
   0x8   :  { %12181 = sst [smem:[#allocation9_spill]] %s12145_s7 }
   0x9   :  { %12182 = sst [smem:[#allocation10_spill]] %s12146_s8 }
   0xa LB: > { %s5813_s26 = sadd.s32 4294967295, %s8548_s5   ;;  %p5817_p0 = scmp.ge.s32.totalorder %s8548_s5, 1  ;;  %s8548_s5 = sphi %s8675_s5, %s34_s5  }
   0xb   : > { %p662_p1 = scmp.lt.s32.totalorder %s8548_s5, 3 }
   0xd   : > { %p663_p2 = pnand %p5817_p0, %p662_p1 }
   0xe   : > { %s12183_s6 = sld [smem:[#allocation3_spill]] (!%p663_p2)  ;;  %p728_p3 = scmp.lt.s32.totalorder (!%p663_p2), %s5813_s26, 1 }
   0xf   : > { %666 = sbr.rel (%p663_p2) target bundleno = 2068 (0x814), region = 116  ;;  %s12184_s1 = sld [smem:[#allocation2_spill]] (!%p663_p2) }
  0x10   : > { %s12185_s3 = sld [smem:[#allocation5_spill]] (!%p663_p2) }
  0x11   : > { %s12188_s29 = sld [smem:[#allocation9_spill]] (!%p663_p2) }
  0x12   : > { %s12190_s8 = sld [smem:[#allocation10_spill]] (!%p663_p2) }
  0x14   : > { %v5876_v0 = vld [vmem:[%s12183_s6 + $0xb0] sm:$0xf]  ;;  %v8096_v1 = vld [vmem:[%s12183_s6 + $0xb4] sm:$0xf0]  ;;  %v8095_v2 = vld [vmem:[%s12183_s6 + $0xb4] sm:$0xf] }
  0x15   : > { %v5877_v3 = vor.u32 %v8096_v1, %v5876_v0  ;;  %v5878_v4 = vld [vmem:[%s12183_s6 + $0xb8] sm:$0xf0]  ;;  %v5928_v5 = vld [vmem:[%s12183_s6 + $0x50] sm:$0xf]  ;;  %v8084_v6 = vld [vmem:[%s12183_s6 + $0x54] sm:$0xf0] }
  0x16   : > { %v5881_v7 = vor.u32 %v8095_v2, %v5878_v4  ;;  %v5929_v8 = vor.u32 %v8084_v6, %v5928_v5  ;;  %v8083_v9 = vld [vmem:[%s12183_s6 + $0x54] sm:$0xf]  ;;  %v5930_v10 = vld [vmem:[%s12183_s6 + $0x58] sm:$0xf0]  ;;  %v5868_v11 = vld [vmem:[%s12183_s6 + $0xa0] sm:$0xf] }
  0x17   : > { %855 = vmatpush.bf16.msra.mxu0 %v5877_v3  ;;  %v5933_v12 = vor.u32 %v8083_v9, %v5930_v10  ;;  %v8094_v13 = vld [vmem:[%s12183_s6 + $0xa4] sm:$0xf0]  ;;  %v8093_v14 = vld [vmem:[%s12183_s6 + $0xa4] sm:$0xf]  ;;  %v5870_v15 = vld [vmem:[%s12183_s6 + $0xa8] sm:$0xf0] }
  0x18   : > { %874 = vmatpush.bf16.msra.mxu1 %v5881_v7  ;;  %957 = vmatpush.bf16.msra.mxu2 %v5929_v8  ;;  %v5869_v16 = vor.u32 %v8094_v13, %v5868_v11  ;;  %v5873_v17 = vor.u32 %v8093_v14, %v5870_v15  ;;  %v5920_v18 = vld [vmem:[%s12183_s6 + $0x40] sm:$0xf]  ;;  %v8082_v19 = vld [vmem:[%s12183_s6 + $0x44] sm:$0xf0]  ;;  %v8081_v20 = vld [vmem:[%s12183_s6 + $0x44] sm:$0xf] }
  0x19   : > { %976 = vmatpush.bf16.msra.mxu3 %v5933_v12  ;;  %v5921_v21 = vor.u32 %v8082_v19, %v5920_v18  ;;  %v5922_v22 = vld [vmem:[%s12183_s6 + $0x48] sm:$0xf0]  ;;  %v5860_v23 = vld [vmem:[%s12183_s6 + $0x90] sm:$0xf]  ;;  %v8092_v24 = vld [vmem:[%s12183_s6 + $0x94] sm:$0xf0] }
  0x1a   : > { %v5925_v25 = vor.u32 %v8081_v20, %v5922_v22  ;;  %v8091_v26 = vld [vmem:[%s12183_s6 + $0x94] sm:$0xf]  ;;  %v5862_v27 = vld [vmem:[%s12183_s6 + $0x98] sm:$0xf0]  ;;  %v5912_v28 = vld [vmem:[%s12183_s6 + $0x30] sm:$0xf]  ;;  %v5861_v29 = vor.u32 %v8092_v24, %v5860_v23 }
  0x1b   : > { %856 = vmatpush.bf16.msra.mxu0 %v5869_v16  ;;  %v8080_v30 = vld [vmem:[%s12183_s6 + $0x34] sm:$0xf0]  ;;  %v8079_v31 = vld [vmem:[%s12183_s6 + $0x34] sm:$0xf]  ;;  %v5914_v32 = vld [vmem:[%s12183_s6 + $0x38] sm:$0xf0]  ;;  %v5865_v33 = vor.u32 %v8091_v26, %v5862_v27 }
  0x1c   : > { %875 = vmatpush.bf16.msra.mxu1 %v5873_v17  ;;  %958 = vmatpush.bf16.msra.mxu2 %v5921_v21  ;;  %v5913_v34 = vor.u32 %v8080_v30, %v5912_v28  ;;  %v5852_v35 = vld [vmem:[%s12183_s6 + $0x80] sm:$0xf]  ;;  %v8090_v36 = vld [vmem:[%s12183_s6 + $0x84] sm:$0xf0]  ;;  %v8089_v37 = vld [vmem:[%s12183_s6 + $0x84] sm:$0xf]  ;;  %v5917_v38 = vor.u32 %v8079_v31, %v5914_v32 }
  0x1d   : > { %977 = vmatpush.bf16.msra.mxu3 %v5925_v25  ;;  %v5854_v39 = vld [vmem:[%s12183_s6 + $0x88] sm:$0xf0]  ;;  %v5904_v40 = vld [vmem:[%s12183_s6 + $0x20] sm:$0xf]  ;;  %v8078_v41 = vld [vmem:[%s12183_s6 + $0x24] sm:$0xf0]  ;;  %v5853_v44 = vor.u32 %v8090_v36, %v5852_v35 }
  0x1e   : > { %v8077_v42 = vld [vmem:[%s12183_s6 + $0x24] sm:$0xf]  ;;  %v5906_v43 = vld [vmem:[%s12183_s6 + $0x28] sm:$0xf0]  ;;  %v5857_v45 = vor.u32 %v8089_v37, %v5854_v39  ;;  %v5905_v46 = vor.u32 %v8078_v41, %v5904_v40  ;;  %v5844_v47 = vld [vmem:[%s12183_s6 + $0x70] sm:$0xf] }
  0x1f   : > { %857 = vmatpush.bf16.msra.mxu0 %v5861_v29  ;;  %v8088_v48 = vld [vmem:[%s12183_s6 + $0x74] sm:$0xf0]  ;;  %v8087_v49 = vld [vmem:[%s12183_s6 + $0x74] sm:$0xf]  ;;  %v5909_v50 = vor.u32 %v8077_v42, %v5906_v43  ;;  %v5846_v51 = vld [vmem:[%s12183_s6 + $0x78] sm:$0xf0] }
  0x20   : > { %876 = vmatpush.bf16.msra.mxu1 %v5865_v33  ;;  %959 = vmatpush.bf16.msra.mxu2 %v5913_v34  ;;  %v5896_v52 = vld [vmem:[%s12183_s6 + $0x10] sm:$0xf]  ;;  %v8076_v53 = vld [vmem:[%s12183_s6 + $0x14] sm:$0xf0]  ;;  %v8075_v54 = vld [vmem:[%s12183_s6 + $0x14] sm:$0xf]  ;;  %v5845_v56 = vor.u32 %v8088_v48, %v5844_v47  ;;  %v5849_v60 = vor.u32 %v8087_v49, %v5846_v51 }
  0x21   : > { %978 = vmatpush.bf16.msra.mxu3 %v5917_v38  ;;  %v5898_v55 = vld [vmem:[%s12183_s6 + $0x18] sm:$0xf0]  ;;  %v5836_v57 = vld [vmem:[%s12183_s6 + $0x60] sm:$0xf]  ;;  %v8086_v58 = vld [vmem:[%s12183_s6 + $0x64] sm:$0xf0]  ;;  %v5897_v61 = vor.u32 %v8076_v53, %v5896_v52 }
  0x22   : > { %v8085_v59 = vld [vmem:[%s12183_s6 + $0x64] sm:$0xf]  ;;  %v5838_v62 = vld [vmem:[%s12183_s6 + $0x68] sm:$0xf0]  ;;  %v5888_v63 = vld [vmem:[%s12183_s6] sm:$0xf]  ;;  %v5901_v0 = vor.u32 %v8075_v54, %v5898_v55  ;;  %v5837_v6 = vor.u32 %v8086_v58, %v5836_v57 }
  0x23   : > { %858 = vmatpush.bf16.msra.mxu0 %v5853_v44  ;;  %v8074_v1 = vld [vmem:[%s12183_s6 + $0x4] sm:$0xf0]  ;;  %v8073_v2 = vld [vmem:[%s12183_s6 + $0x4] sm:$0xf]  ;;  %v5890_v3 = vld [vmem:[%s12183_s6 + $0x8] sm:$0xf0]  ;;  %v5841_v9 = vor.u32 %v8085_v59, %v5838_v62 }
  0x24   : > { %877 = vmatpush.bf16.msra.mxu1 %v5857_v45  ;;  %960 = vmatpush.bf16.msra.mxu2 %v5905_v46  ;;  %s12193_s26 = smov (!%p728_p3, %s5813_s26), 1  ;;  %v5992_v4 = vld [vmem:[%s12183_s6 + $0x110] sm:$0xf]  ;;  %v8108_v5 = vld [vmem:[%s12183_s6 + $0x114] sm:$0xf0]  ;;  %v5889_v10 = vor.u32 %v8074_v1, %v5888_v63  ;;  %v5893_v11 = vor.u32 %v8073_v2, %v5890_v3  ;;  %vm846_vm0 = vcmask 785408  }
  0x25   : > { %979 = vmatpush.bf16.msra.mxu3 %v5909_v50  ;;  %v8107_v7 = vld [vmem:[%s12183_s6 + $0x114] sm:$0xf]  ;;  %v5994_v8 = vld [vmem:[%s12183_s6 + $0x118] sm:$0xf0]  ;;  %s8071_s25 = sshll.u32 %s12193_s26, 5  ;;  %v5993_v12 = vor.u32 %v8108_v5, %v5992_v4  ;;  %vm1008_vm2 = vcmask 1046528  }
  0x26   : > { %s732_s27 = scalar_lea.vmem %s12184_s1, %s8071_s25  ;;  %v5984_v13 = vld [vmem:[%s12183_s6 + $0x100] sm:$0xf]  ;;  %v8106_v14 = vld [vmem:[%s12183_s6 + $0x104] sm:$0xf0]  ;;  %v5997_v18 = vor.u32 %v8107_v7, %v5994_v8  ;;  %v8105_v21 = vld [vmem:[%s12183_s6 + $0x104] sm:$0xf] }
  0x27   : > { %859 = vmatpush.bf16.msra.mxu0 %v5845_v56  ;;  %v739_v15 = vld [vmem:[%s732_s27] sm:$0xff]  ;;  %v740_v16 = vld [vmem:[%s732_s27 + $0x8] sm:$0xff]  ;;  %v741_v17 = vld [vmem:[%s732_s27 + $0x10] sm:$0xff]  ;;  %vm770_vm1 = vsmask.f32 7424  ;;  %v5985_v26 = vor.u32 %v8106_v14, %v5984_v13  ;;  %s12186_s25 = sld [smem:[#allocation4_spill]] }
  0x28   : > { %878 = vmatpush.bf16.msra.mxu1 %v5849_v60  ;;  %961 = vmatpush.bf16.msra.mxu2 %v5897_v61  ;;  %v742_v19 = vld [vmem:[%s732_s27 + $0x18] sm:$0xff]  ;;  %v8855_v20 = vpack.c.bf16 %v740_v16, %v739_v15  ;;  %v5986_v22 = vld [vmem:[%s12183_s6 + $0x108] sm:$0xf0]  ;;  %v5976_v29 = vld [vmem:[%s12183_s6 + $0xf0] sm:$0xf]  ;;  %vm1393_vm3 = vcmask 916480  }
  0x29   : > { %980 = vmatpush.bf16.msra.mxu3 %v5901_v0  ;;  %v744_v23 = vpack.c.bf16 %v742_v19, %v741_v17  ;;  %v5989_v28 = vor.u32 %v8105_v21, %v5986_v22  ;;  %v8104_v30 = vld [vmem:[%s12183_s6 + $0xf4] sm:$0xf0]  ;;  %v8103_v32 = vld [vmem:[%s12183_s6 + $0xf4] sm:$0xf]  ;;  %v5978_v33 = vld [vmem:[%s12183_s6 + $0xf8] sm:$0xf0] }
  0x2a   : > { %v772_v24 = vshrl.u32 %v8855_v20, 16  ;;  %v774_v25 = vshll.u32 %v8855_v20, 16  ;;  %v5977_v36 = vor.u32 %v8104_v30, %v5976_v29  ;;  %v5981_v37 = vor.u32 %v8103_v32, %v5978_v33  ;;  %v5968_v38 = vld [vmem:[%s12183_s6 + $0xe0] sm:$0xf]  ;;  %v8102_v39 = vld [vmem:[%s12183_s6 + $0xe4] sm:$0xf0] }
  0x2b   : > { %860 = vmatpush.bf16.msra.mxu0 %v5837_v6  ;;  %v779_v27 = vshll.u32 %v744_v23, 16  ;;  %v8101_v41 = vld [vmem:[%s12183_s6 + $0xe4] sm:$0xf]  ;;  %v5970_v42 = vld [vmem:[%s12183_s6 + $0xe8] sm:$0xf0]  ;;  %v5969_v43 = vor.u32 %v8102_v39, %v5968_v38  ;;  %v783_v55 = vshrl.u32 %v744_v23, 16 }
  0x2c   : > { %879 = vmatpush.bf16.msra.mxu1 %v5841_v9  ;;  %962 = vmatpush.bf16.msra.mxu2 %v5889_v10  ;;  %v776_v31 = vrot.slane %v774_v25, 1  ;;  %v5973_v44 = vor.u32 %v8101_v41, %v5970_v42  ;;  %v5960_v45 = vld [vmem:[%s12183_s6 + $0xd0] sm:$0xf]  ;;  %v8100_v46 = vld [vmem:[%s12183_s6 + $0xd4] sm:$0xf0]  ;;  %v1009_v59 = vrot.slane %v8855_v20, 1 }
  0x2d   : > { %981 = vmatpush.bf16.msra.mxu3 %v5893_v11  ;;  %v781_v34 = vrot.slane %v779_v27, 1  ;;  %v8099_v47 = vld [vmem:[%s12183_s6 + $0xd4] sm:$0xf]  ;;  %v5962_v48 = vld [vmem:[%s12183_s6 + $0xd8] sm:$0xf0]  ;;  %v5961_v49 = vor.u32 %v8100_v46, %v5960_v45  ;;  %v1010_v60 = vrot.slane %v744_v23, 1 }
  0x2e   : > { %v777_v35 = vor.u32 %v776_v31, %v772_v24  ;;  %v5965_v50 = vor.u32 %v8099_v47, %v5962_v48  ;;  %v5952_v51 = vld [vmem:[%s12183_s6 + $0xc0] sm:$0xf]  ;;  %v8098_v52 = vld [vmem:[%s12183_s6 + $0xc4] sm:$0xf0]  ;;  %v8097_v53 = vld [vmem:[%s12183_s6 + $0xc4] sm:$0xf] }
  0x2f   : > { %1080 = vmatpush.bf16.msrb.mxu0 %v5993_v12  ;;  %5934 = vmatmul.msk.bf16.vlgmr.msra.gmra.mxu2 %vm846_vm0, %v8855_v20  ;;  %v5954_v54 = vld [vmem:[%s12183_s6 + $0xc8] sm:$0xf0]  ;;  %v5953_v56 = vor.u32 %v8098_v52, %v5952_v51  ;;  %v785_v58 = vor.u32 %v783_v55, %v781_v34  ;;  %v1011_v61 = vsel %vm1008_vm2, %v1009_v59, %v1010_v60  ;;  %v6090_v0 = vld [vmem:[%s12185_s3 + $0x160] sm:$0xf]  ;;  %v8154_v1 = vld [vmem:[%s12185_s3 + $0x164] sm:$0xf0] }
  0x30   : > { %1099 = vmatpush.bf16.msrb.mxu1 %v5997_v18  ;;  %5936 = vmatmul.msk.bf16.vlgmr.msra.gmra.mxu3 %vm846_vm0, %v8855_v20  ;;  %v782_v40 = vsel %vm770_vm1, %v777_v35, %v781_v34  ;;  %v5957_v57 = vor.u32 %v8097_v53, %v5954_v54  ;;  %v8153_v2 = vld [vmem:[%s12185_s3 + $0x164] sm:$0xf]  ;;  %v6091_v3 = vor.u32 %v8154_v1, %v6090_v0  ;;  %v6092_v4 = vld [vmem:[%s12185_s3 + $0x168] sm:$0xf0]  ;;  %v6082_v8 = vld [vmem:[%s12185_s3 + $0x150] sm:$0xf] }
  0x31   : > { %5882 = vmatmul.msk.bf16.vlgmr.msra.gmra.mxu0 %vm846_vm0, %v782_v40  ;;  %5884 = vmatmul.msk.bf16.vlgmr.msra.gmra.mxu1 %vm846_vm0, %v782_v40  ;;  %v6095_v5 = vor.u32 %v8153_v2, %v6092_v4  ;;  %v8152_v9 = vld [vmem:[%s12185_s3 + $0x154] sm:$0xf0]  ;;  %v6146_v10 = vld [vmem:[%s12185_s3 + $0x1d0] sm:$0xf]  ;;  %v8151_v13 = vld [vmem:[%s12185_s3 + $0x154] sm:$0xf] }
  0x32   : > { %1400 = vmatpush.bf16.msrb.mxu2 %v6091_v3  ;;  %v6083_v11 = vor.u32 %v8152_v9, %v6082_v8  ;;  %v8168_v12 = vld [vmem:[%s12185_s3 + $0x1d4] sm:$0xf0]  ;;  %v6084_v14 = vld [vmem:[%s12185_s3 + $0x158] sm:$0xf0]  ;;  %v8167_v17 = vld [vmem:[%s12185_s3 + $0x1d4] sm:$0xf] }
  0x33   : > { %1081 = vmatpush.bf16.msrb.mxu0 %v5985_v26  ;;  %v6147_v15 = vor.u32 %v8168_v12, %v6146_v10  ;;  %v6087_v16 = vor.u32 %v8151_v13, %v6084_v14  ;;  %v6148_v18 = vld [vmem:[%s12185_s3 + $0x1d8] sm:$0xf0]  ;;  %v6074_v20 = vld [vmem:[%s12185_s3 + $0x140] sm:$0xf]  ;;  %v8150_v21 = vld [vmem:[%s12185_s3 + $0x144] sm:$0xf0] }
  0x34   : > { %1100 = vmatpush.bf16.msrb.mxu1 %v5989_v28  ;;  %v6151_v19 = vor.u32 %v8167_v17, %v6148_v18  ;;  %v6138_v22 = vld [vmem:[%s12185_s3 + $0x1c0] sm:$0xf]  ;;  %v8166_v24 = vld [vmem:[%s12185_s3 + $0x1c4] sm:$0xf0]  ;;  %v8149_v25 = vld [vmem:[%s12185_s3 + $0x144] sm:$0xf] }
  0x35   : > { %1420 = vmatpush.bf16.msrb.mxu3 %v6147_v15  ;;  %v6076_v26 = vld [vmem:[%s12185_s3 + $0x148] sm:$0xf0]  ;;  %v6139_v27 = vor.u32 %v8166_v24, %v6138_v22  ;;  %v8165_v29 = vld [vmem:[%s12185_s3 + $0x1c4] sm:$0xf]  ;;  %v6066_v34 = vld [vmem:[%s12185_s3 + $0x130] sm:$0xf] }
  0x36   : > { %1401 = vmatpush.bf16.msrb.mxu2 %v6083_v11  ;;  %v6079_v28 = vor.u32 %v8149_v25, %v6076_v26  ;;  %v6140_v30 = vld [vmem:[%s12185_s3 + $0x1c8] sm:$0xf0]  ;;  %v8148_v35 = vld [vmem:[%s12185_s3 + $0x134] sm:$0xf0]  ;;  %v8147_v39 = vld [vmem:[%s12185_s3 + $0x134] sm:$0xf] }
  0x37   : > { %1082 = vmatpush.bf16.msrb.mxu0 %v5977_v36  ;;  %v6143_v31 = vor.u32 %v8165_v29, %v6140_v30  ;;  %v6130_v36 = vld [vmem:[%s12185_s3 + $0x1b0] sm:$0xf]  ;;  %v8164_v38 = vld [vmem:[%s12185_s3 + $0x1b4] sm:$0xf0]  ;;  %v6068_v40 = vld [vmem:[%s12185_s3 + $0x138] sm:$0xf0] }
  0x38   : > { %1101 = vmatpush.bf16.msrb.mxu1 %v5981_v37  ;;  %v6067_v37 = vor.u32 %v8148_v35, %v6066_v34  ;;  %v6131_v41 = vor.u32 %v8164_v38, %v6130_v36  ;;  %v6071_v42 = vor.u32 %v8147_v39, %v6068_v40  ;;  %v6058_v46 = vld [vmem:[%s12185_s3 + $0x120] sm:$0xf]  ;;  %v8146_v47 = vld [vmem:[%s12185_s3 + $0x124] sm:$0xf0]  ;;  %v8145_v53 = vld [vmem:[%s12185_s3 + $0x124] sm:$0xf] }
  0x39   : > { %1421 = vmatpush.bf16.msrb.mxu3 %v6139_v27  ;;  %v6122_v48 = vld [vmem:[%s12185_s3 + $0x1a0] sm:$0xf]  ;;  %v6059_v51 = vor.u32 %v8146_v47, %v6058_v46  ;;  %v8162_v52 = vld [vmem:[%s12185_s3 + $0x1a4] sm:$0xf0]  ;;  %v6060_v54 = vld [vmem:[%s12185_s3 + $0x128] sm:$0xf0] }
  0x3a   : > { %v6123_v55 = vor.u32 %v8162_v52, %v6122_v48  ;;  %v6050_v0 = vld [vmem:[%s12185_s3 + $0x110] sm:$0xf]  ;;  %v8144_v1 = vld [vmem:[%s12185_s3 + $0x114] sm:$0xf0]  ;;  %v6052_v8 = vld [vmem:[%s12185_s3 + $0x118] sm:$0xf0] }
  0x3b   : > { %1083 = vmatpush.bf16.msrb.mxu0 %v5969_v43  ;;  %v8163_v43 = vld [vmem:[%s12185_s3 + $0x1b4] sm:$0xf]  ;;  %v6114_v2 = vld [vmem:[%s12185_s3 + $0x190] sm:$0xf]  ;;  %v6051_v3 = vor.u32 %v8144_v1, %v6050_v0  ;;  %v8160_v4 = vld [vmem:[%s12185_s3 + $0x194] sm:$0xf0] }
  0x3c   : > { %1102 = vmatpush.bf16.msrb.mxu1 %v5973_v44  ;;  %v6132_v44 = vld [vmem:[%s12185_s3 + $0x1b8] sm:$0xf0]  ;;  %v6115_v9 = vor.u32 %v8160_v4, %v6114_v2  ;;  %v8159_v11 = vld [vmem:[%s12185_s3 + $0x194] sm:$0xf]  ;;  %v1124_v13 = vld [vmem:[%s12186_s25] sm:$0x3] }
  0x3d   : > { %v6135_v45 = vor.u32 %v8163_v43, %v6132_v44  ;;  %1422 = vmatpush.bf16.msrb.mxu3 %v6131_v41  ;;  %v6116_v12 = vld [vmem:[%s12185_s3 + $0x198] sm:$0xf0]  ;;  %v6042_v15 = vld [vmem:[%s12185_s3 + $0x100] sm:$0xf]  ;;  %v9099_v22 = vperm.slane %v1124_v13, 0  ;;  %s12187_s27 = sld [smem:[#allocation6_spill]] }
  0x3e   : > { %v6119_v14 = vor.u32 %v8159_v11, %v6116_v12  ;;  %v6106_v17 = vld [vmem:[%s12185_s3 + $0x180] sm:$0xf]  ;;  %v8157_v26 = vld [vmem:[%s12185_s3 + $0x184] sm:$0xf]  ;;  %v6108_v27 = vld [vmem:[%s12185_s3 + $0x188] sm:$0xf0] }
  0x3f   : > { %1084 = vmatpush.bf16.msrb.mxu0 %v5961_v49  ;;  %5935 = vmatmul.msk.bf16.gmra.mxu2 %vm846_vm0, %v744_v23  ;;  %v6111_v34 = vor.u32 %v8157_v26, %v6108_v27  ;;  %v6034_v35 = vld [vmem:[%s12185_s3 + $0xf0] sm:$0xf]  ;;  %v8140_v36 = vld [vmem:[%s12185_s3 + $0xf4] sm:$0xf0]  ;;  %v8139_v40 = vld [vmem:[%s12185_s3 + $0xf4] sm:$0xf] }
  0x40   : > { %1103 = vmatpush.bf16.msrb.mxu1 %v5965_v50  ;;  %5937 = vmatmul.msk.bf16.gmra.mxu3 %vm846_vm0, %v744_v23  ;;  %v6075_v23 = vor.u32 %v8150_v21, %v6074_v20  ;;  %v8141_v20 = vld [vmem:[%s12185_s3 + $0x104] sm:$0xf]  ;;  %v6044_v21 = vld [vmem:[%s12185_s3 + $0x108] sm:$0xf0]  ;;  %v8156_v39 = vld [vmem:[%s12185_s3 + $0x174] sm:$0xf0] }
  0x41   : > { %5883 = vmatmul.msk.bf16.gmra.mxu0 %vm846_vm0, %v785_v58  ;;  %5885 = vmatmul.msk.bf16.gmra.mxu1 %vm846_vm0, %v785_v58  ;;  %v6124_v58 = vld [vmem:[%s12185_s3 + $0x1a8] sm:$0xf0]  ;;  %v6047_v25 = vor.u32 %v8141_v20, %v6044_v21  ;;  %v6036_v41 = vld [vmem:[%s12185_s3 + $0xf8] sm:$0xf0]  ;;  %v8155_v46 = vld [vmem:[%s12185_s3 + $0x174] sm:$0xf] }
  0x42   : > { %1402 = vmatpush.bf16.msrb.mxu2 %v6075_v23  ;;  %1423 = vmatpush.bf16.msrb.mxu3 %v6123_v55  ;;  %v9101_v23 = vperm.slane %v1124_v13, 1  ;;  %v6100_v47 = vld [vmem:[%s12185_s3 + $0x178] sm:$0xf0]  ;;  %v8124_v52 = vld [vmem:[%s12185_s3 + $0x74] sm:$0xf0]  ;;  %vm3885_vm4 = vcmask 1045504  }
  0x43   : > { %1085 = vmatpush.bf16.msrb.mxu0 %v5953_v56  ;;  %v6063_v56 = vor.u32 %v8145_v53, %v6060_v54  ;;  %v6103_v48 = vor.u32 %v8155_v46, %v6100_v47  ;;  %v6206_v1 = vld [vmem:[%s12185_s3 + $0x60] sm:$0xf]  ;;  %v8122_v2 = vld [vmem:[%s12185_s3 + $0x64] sm:$0xf0]  ;;  %v8120_v20 = vld [vmem:[%s12185_s3 + $0x54] sm:$0xf0] }
  0x44   : > { %1104 = vmatpush.bf16.msrb.mxu1 %v5957_v57  ;;  %v8161_v57 = vld [vmem:[%s12185_s3 + $0x1a4] sm:$0xf]  ;;  %v6262_v21 = vld [vmem:[%s12185_s3 + $0xd0] sm:$0xf]  ;;  %vm5061_vm5 = vcmask 1044480   ;;  %vm2020_vm6 = vcmask 1043456  }
  0x45   : > { %v6127_v59 = vor.u32 %v8161_v57, %v6124_v58  ;;  %v6216_v57 = vld [vmem:[%s12185_s3 + $0x78] sm:$0xf0]  ;;  %vm4554_vm7 = vsmask.f32 5376  ;;  %s12189_s6 = sld [smem:[#allocation7_spill]]  ;;  %vm2013_vm8 = vcmask 228352  }
  0x46   : > { %1403 = vmatpush.bf16.msrb.mxu2 %v6067_v37  ;;  %1424 = vmatpush.bf16.msrb.mxu3 %v6115_v9  ;;  %v6098_v37 = vld [vmem:[%s12185_s3 + $0x170] sm:$0xf]  ;;  %v6208_v9 = vld [vmem:[%s12185_s3 + $0x68] sm:$0xf0]  ;;  %s12191_s1 = sld [smem:[#allocation8_spill]]  ;;  %vm2847_vm9 = vcmask 523264  }
  0x47   : > { %1438 = vmatpush.bf16.msra.mxu0 %v6095_v5  ;;  %v8143_v5 = vld [vmem:[%s12185_s3 + $0x114] sm:$0xf]  ;;  %v6099_v44 = vor.u32 %v8156_v39, %v6098_v37  ;;  %v6254_v39 = vld [vmem:[%s12185_s3 + $0xc0] sm:$0xf]  ;;  %vm3434_vm10 = vcmask 261120   ;;  %vm3687_vm11 = vcmask 1041408  }
  0x48   : > { %1458 = vmatpush.bf16.msra.mxu1 %v6151_v19  ;;  %v6055_v10 = vor.u32 %v8143_v5, %v6052_v8  ;;  %v8158_v19 = vld [vmem:[%s12185_s3 + $0x184] sm:$0xf0]  ;;  %v6207_v8 = vor.u32 %v8122_v2, %v6206_v1  ;;  %vm3677_vm12 = vcmask 80896   ;;  %vm5432_vm13 = vcmask 130048  }
  0x49   : > { %v6107_v24 = vor.u32 %v8158_v19, %v6106_v17 }
  0x4a   : > { %1404 = vmatpush.bf16.msrb.mxu2 %v6059_v51  ;;  %v6214_v51 = vld [vmem:[%s12185_s3 + $0x70] sm:$0xf] }
  0x4b   : > { %1439 = vmatpush.bf16.msra.mxu0 %v6087_v16  ;;  %v8142_v16 = vld [vmem:[%s12185_s3 + $0x104] sm:$0xf0]  ;;  %1425 = vmatpush.bf16.msrb.mxu3 %v6107_v24  ;;  %v6215_v55 = vor.u32 %v8124_v52, %v6214_v51  ;;  %v8136_v24 = vld [vmem:[%s12185_s3 + $0xd4] sm:$0xf0] }
  0x4c   : > { %1459 = vmatpush.bf16.msra.mxu1 %v6143_v31  ;;  %v6043_v18 = vor.u32 %v8142_v16, %v6042_v15  ;;  %v6272_v15 = vld [vmem:[%s12185_s3 + $0xe8] sm:$0xf0]  ;;  %v6198_v16 = vld [vmem:[%s12185_s3 + $0x50] sm:$0xf]  ;;  %v6263_v27 = vor.u32 %v8136_v24, %v6262_v21 }
  0x4e   : > { %1405 = vmatpush.bf16.msrb.mxu2 %v6051_v3  ;;  %v6270_v3 = vld [vmem:[%s12185_s3 + $0xe0] sm:$0xf] }
  0x4f   : > { %1440 = vmatpush.bf16.msra.mxu0 %v6079_v28  ;;  %1426 = vmatpush.bf16.msrb.mxu3 %v6099_v44 }
  0x50   : > { %1460 = vmatpush.bf16.msra.mxu1 %v6135_v45  ;;  %v6039_v45 = vor.u32 %v8139_v40, %v6036_v41  ;;  %v8134_v40 = vld [vmem:[%s12185_s3 + $0xc4] sm:$0xf0]  ;;  %v8117_v41 = vld [vmem:[%s12185_s3 + $0x44] sm:$0xf] }
  0x51   : > { %5998 = vmatmul.msk.bf16.vlgmr.msrb.gmra.mxu0 %vm846_vm0, %v1011_v61  ;;  %6000 = vmatmul.msk.bf16.vlgmr.msrb.gmra.mxu1 %vm846_vm0, %v1011_v61  ;;  %v6255_v47 = vor.u32 %v8134_v40, %v6254_v39  ;;  %v8127_v40 = vld [vmem:[%s12185_s3 + $0x94] sm:$0xf] }
  0x52   : > { %1406 = vmatpush.bf16.msrb.mxu2 %v6043_v18 }
  0x53   : > { %1441 = vmatpush.bf16.msra.mxu0 %v6071_v42 }
  0x54   : > { %1461 = vmatpush.bf16.msra.mxu1 %v6127_v59 }
  0x57   : > { %1442 = vmatpush.bf16.msra.mxu0 %v6063_v56  ;;  %v8123_v56 = vld [vmem:[%s12185_s3 + $0x74] sm:$0xf] }
  0x58   : > { %1462 = vmatpush.bf16.msra.mxu1 %v6119_v14  ;;  %v6219_v0 = vor.u32 %v8123_v56, %v6216_v57  ;;  %v8137_v14 = vld [vmem:[%s12185_s3 + $0xe4] sm:$0xf] }
  0x59   : > { %v6275_v19 = vor.u32 %v8137_v14, %v6272_v15  ;;  %v6248_v14 = vld [vmem:[%s12185_s3 + $0xb8] sm:$0xf0] }
  0x5b   : > { %1443 = vmatpush.bf16.msra.mxu0 %v6055_v10 }
  0x5c   : > { %1463 = vmatpush.bf16.msra.mxu1 %v6111_v34  ;;  %v6264_v34 = vld [vmem:[%s12185_s3 + $0xd8] sm:$0xf0] }
  0x5f   : > { %1444 = vmatpush.bf16.msra.mxu0 %v6047_v25 }
  0x60   : > { %1464 = vmatpush.bf16.msra.mxu1 %v6103_v48  ;;  %v6256_v48 = vld [vmem:[%s12185_s3 + $0xc8] sm:$0xf0] }
  0x61   : > { %5999 = vmatmul.msk.bf16.gmra.mxu0 %vm846_vm0, %v1010_v60  ;;  %6001 = vmatmul.msk.bf16.gmra.mxu1 %vm846_vm0, %v1010_v60 }
  0x63   : > { %1445 = vmatpush.bf16.msra.mxu0 %v6039_v45 }
  0x64   : > { %1688 = vmatpush.bf16.msrb.mxu1 %v6275_v19  ;;  %v6238_v19 = vld [vmem:[%s12185_s3 + $0xa0] sm:$0xf] }
  0x67   : > { %1668 = vmatpush.bf16.msrb.mxu0 %v6219_v0 }
  0xae   : > { %v8930_v62 = vpop.f32.mrf.mxu0  ;;  %v8932_v63 = vpop.f32.mrf.mxu1 }
  0xb2   : > { %v964_v49 = vpop.f32.mrf.mxu2 }
  0xb3   : > { %v983_v50 = vpop.f32.mrf.mxu3  ;;  %v965_v28 = vadd.f32 %v964_v49, %v8930_v62 }
  0xb4   : > { %v984_v29 = vadd.f32 %v983_v50, %v8932_v63  ;;  %v6035_v63 = vor.u32 %v8140_v36, %v6034_v35  ;;  %v6190_v35 = vld [vmem:[%s12185_s3 + $0x40] sm:$0xf]  ;;  %v8118_v36 = vld [vmem:[%s12185_s3 + $0x44] sm:$0xf0] }
  0xb5   : > { %v6191_v46 = vor.u32 %v8118_v36, %v6190_v35 }
  0xb6   : > { %v8946_v6 = vpop.f32.mrf.mxu0  ;;  %v8948_v7 = vpop.f32.mrf.mxu1  ;;  %1407 = vmatpush.bf16.msrb.mxu2 %v6035_v63 }
  0xba   : > { %v966_v30 = vpop.f32.mrf.mxu2  ;;  %1630 = vmatpush.bf16.msra.mxu2 %v6215_v55 }
  0xbb   : > { %v985_v31 = vpop.f32.mrf.mxu3  ;;  %v967_v58 = vadd.f32 %v966_v30, %v8946_v6  ;;  %v8138_v6 = vld [vmem:[%s12185_s3 + $0xe4] sm:$0xf0]  ;;  %v8135_v30 = vld [vmem:[%s12185_s3 + $0xd4] sm:$0xf] }
  0xbc   : > { %v986_v59 = vadd.f32 %v985_v31, %v8948_v7  ;;  %v8121_v7 = vld [vmem:[%s12185_s3 + $0x64] sm:$0xf]  ;;  %v6271_v12 = vor.u32 %v8138_v6, %v6270_v3  ;;  %v6199_v31 = vor.u32 %v8120_v20, %v6198_v16  ;;  %v6267_v63 = vor.u32 %v8135_v30, %v6264_v34  ;;  %v6182_v3 = vld [vmem:[%s12185_s3 + $0x30] sm:$0xf]  ;;  %v8132_v6 = vld [vmem:[%s12185_s3 + $0xb4] sm:$0xf0] }
  0xbd   : > { %v6211_v13 = vor.u32 %v8121_v7, %v6208_v9  ;;  %v8115_v7 = vld [vmem:[%s12185_s3 + $0x34] sm:$0xf]  ;;  %v8129_v30 = vld [vmem:[%s12185_s3 + $0xa4] sm:$0xf]  ;;  %v6166_v34 = vld [vmem:[%s12185_s3 + $0x10] sm:$0xf] }
  0xbe   : > { %v8998_v32 = vpop.f32.mrf.mxu0  ;;  %v9000_v33 = vpop.f32.mrf.mxu1  ;;  %1650 = vmatpush.bf16.msra.mxu3 %v6271_v12  ;;  %1631 = vmatpush.bf16.msra.mxu2 %v6207_v8  ;;  %v6246_v8 = vld [vmem:[%s12185_s3 + $0xb0] sm:$0xf]  ;;  %v6184_v12 = vld [vmem:[%s12185_s3 + $0x38] sm:$0xf0] }
  0xbf   : > { %1669 = vmatpush.bf16.msrb.mxu0 %v6211_v13  ;;  %1689 = vmatpush.bf16.msrb.mxu1 %v6267_v63  ;;  %v8131_v13 = vld [vmem:[%s12185_s3 + $0xb4] sm:$0xf]  ;;  %v8128_v63 = vld [vmem:[%s12185_s3 + $0x94] sm:$0xf0] }
  0xc2   : > { %v969_v17 = vpop.f32.mrf.mxu2  ;;  %1651 = vmatpush.bf16.msra.mxu3 %v6263_v27  ;;  %1632 = vmatpush.bf16.msra.mxu2 %v6199_v31  ;;  %v6176_v27 = vld [vmem:[%s12185_s3 + $0x28] sm:$0xf0] }
  0xc3   : > { %v988_v18 = vpop.f32.mrf.mxu3  ;;  %v970_v44 = vadd.f32 %v969_v17, %v8998_v32  ;;  %v6187_v17 = vor.u32 %v8115_v7, %v6184_v12  ;;  %v6240_v31 = vld [vmem:[%s12185_s3 + $0xa8] sm:$0xf0] }
  0xc4   : > { %v989_v45 = vadd.f32 %v988_v18, %v9000_v33  ;;  %v8114_v18 = vld [vmem:[%s12185_s3 + $0x24] sm:$0xf0] }
  0xc6   : > { %v9050_v60 = vpop.f32.mrf.mxu0  ;;  %v9052_v61 = vpop.f32.mrf.mxu1  ;;  %1652 = vmatpush.bf16.msra.mxu3 %v6255_v47  ;;  %1633 = vmatpush.bf16.msra.mxu2 %v6191_v46 }
  0xce   : > { %v1087_v38 = vpop.f32.mrf.mxu0  ;;  %v1106_v62 = vpop.f32.mrf.mxu1 }
  0xcf   : > { %v1116_v42 = vadd.f32 %v1087_v38, %v965_v28  ;;  %v1117_v43 = vadd.f32 %v1106_v62, %v984_v29  ;;  %v8119_v28 = vld [vmem:[%s12185_s3 + $0x54] sm:$0xf]  ;;  %v6200_v29 = vld [vmem:[%s12185_s3 + $0x58] sm:$0xf0] }
  0xd0   : > { %v6203_v62 = vor.u32 %v8119_v28, %v6200_v29 }
  0xd1   : > { %v9136_v49 = vadd.f32 %v9099_v22, %v1116_v42  ;;  %v9139_v50 = vadd.f32 %v9101_v23, %v1117_v43  ;;  %v6192_v42 = vld [vmem:[%s12185_s3 + $0x48] sm:$0xf0]  ;;  %v8133_v43 = vld [vmem:[%s12185_s3 + $0xc4] sm:$0xf] }
  0xd2   : > { %v6259_v55 = vor.u32 %v8133_v43, %v6256_v48  ;;  %1670 = vmatpush.bf16.msrb.mxu0 %v6203_v62  ;;  %v6195_v33 = vor.u32 %v8117_v41, %v6192_v42  ;;  %v6230_v62 = vld [vmem:[%s12185_s3 + $0x90] sm:$0xf]  ;;  %v8110_v48 = vld [vmem:[%s12185_s3 + $0x4] sm:$0xf0] }
  0xd3   : > { %v1138_v53 = vmax.f32 %v9136_v49, 0.0  ;;  %v1139_v54 = vmax.f32 %v9139_v50, 0.0  ;;  %v6231_v43 = vor.u32 %v8128_v63, %v6230_v62  ;;  %v8180_v63 = vld [vmem:[%s12185_s3 + $0x234] sm:$0xf0] }
  0xd4   : > { %1690 = vmatpush.bf16.msrb.mxu1 %v6259_v55 }
  0xd6   : > { %v1089_v4 = vpop.f32.mrf.mxu0  ;;  %v1108_v5 = vpop.f32.mrf.mxu1  ;;  %1671 = vmatpush.bf16.msrb.mxu0 %v6195_v33 }
  0xd7   : > { %v1118_v10 = vadd.f32 %v1089_v4, %v967_v58  ;;  %v1119_v11 = vadd.f32 %v1108_v5, %v986_v59  ;;  %v990_v59 = vpop.f32.mrf.mxu3  ;;  %v8116_v4 = vld [vmem:[%s12185_s3 + $0x34] sm:$0xf0] }
  0xd8   : > { %v6183_v5 = vor.u32 %v8116_v4, %v6182_v3  ;;  %v8125_v3 = vld [vmem:[%s12185_s3 + $0x84] sm:$0xf]  ;;  %v6224_v4 = vld [vmem:[%s12185_s3 + $0x88] sm:$0xf0] }
  0xd9   : > { %v1132_v25 = vadd.f32 %v9099_v22, %v1118_v10  ;;  %v1133_v26 = vadd.f32 %v9101_v23, %v1119_v11  ;;  %v991_v10 = vadd.f32 %v990_v59, %v9052_v61  ;;  %v6247_v11 = vor.u32 %v8132_v6, %v6246_v8  ;;  %v6174_v61 = vld [vmem:[%s12185_s3 + $0x20] sm:$0xf]  ;;  %v8109_v59 = vld [vmem:[%s12185_s3 + $0x4] sm:$0xf] }
  0xda   : > { %1634 = vmatpush.bf16.msra.mxu2 %v6183_v5  ;;  %v6175_v24 = vor.u32 %v8114_v18, %v6174_v61  ;;  %1672 = vmatpush.bf16.msrb.mxu0 %v6187_v17  ;;  %v6368_v61 = vld [vmem:[%s12185_s3 + $0x250] sm:$0xf]  ;;  %v8184_v18 = vld [vmem:[%s12185_s3 + $0x254] sm:$0xf0] }
  0xdb   : > { %v1140_v37 = vmax.f32 %v1132_v25, 0.0  ;;  %v1141_v38 = vmax.f32 %v1133_v26, 0.0  ;;  %1653 = vmatpush.bf16.msra.mxu3 %v6247_v11  ;;  %v8130_v25 = vld [vmem:[%s12185_s3 + $0xa4] sm:$0xf0]  ;;  %v8113_v26 = vld [vmem:[%s12185_s3 + $0x24] sm:$0xf] }
  0xdc   : > { %v6239_v28 = vor.u32 %v8130_v25, %v6238_v19  ;;  %v6179_v29 = vor.u32 %v8113_v26, %v6176_v27  ;;  %v8183_v19 = vld [vmem:[%s12185_s3 + $0x254] sm:$0xf]  ;;  %v6360_v25 = vld [vmem:[%s12185_s3 + $0x240] sm:$0xf]  ;;  %v8182_v26 = vld [vmem:[%s12185_s3 + $0x244] sm:$0xf0] }
  0xdd   : > { %v9233_v49 = vpack.c.bf16 %v1140_v37, %v1138_v53  ;;  %v9235_v50 = vpack.c.bf16 %v1141_v38, %v1139_v54  ;;  %v971_v53 = vpop.f32.mrf.mxu2  ;;  %v6243_v37 = vor.u32 %v8129_v30, %v6240_v31  ;;  %v8112_v38 = vld [vmem:[%s12185_s3 + $0x14] sm:$0xf0]  ;;  %v6424_v27 = vld [vmem:[%s12185_s3 + $0x2c0] sm:$0xf]  ;;  %v6362_v30 = vld [vmem:[%s12185_s3 + $0x248] sm:$0xf0]  ;;  %v6361_v31 = vor.u32 %v8182_v26, %v6360_v25 }
  0xde   : > { %v1092_v51 = vpop.f32.mrf.mxu0  ;;  %v1111_v52 = vpop.f32.mrf.mxu1  ;;  %v972_v9 = vadd.f32 %v971_v53, %v9050_v60  ;;  %v6251_v60 = vor.u32 %v8131_v13, %v6248_v14  ;;  %1635 = vmatpush.bf16.msra.mxu2 %v6175_v24  ;;  %v6167_v39 = vor.u32 %v8112_v38, %v6166_v34  ;;  %1673 = vmatpush.bf16.msrb.mxu0 %v6179_v29  ;;  %v8181_v29 = vld [vmem:[%s12185_s3 + $0x244] sm:$0xf]  ;;  %v6352_v38 = vld [vmem:[%s12185_s3 + $0x230] sm:$0xf] }
  0xdf   : > { %v1120_v56 = vadd.f32 %v1092_v51, %v970_v44  ;;  %v1121_v32 = vadd.f32 %v1111_v52, %v989_v45  ;;  %v1214_v54 = vshll.u32 %v9233_v49, 16  ;;  %v1226_v0 = vshll.u32 %v9235_v50, 16  ;;  %1654 = vmatpush.bf16.msra.mxu3 %v6239_v28  ;;  %v6232_v44 = vld [vmem:[%s12185_s3 + $0x98] sm:$0xf0]  ;;  %v6158_v45 = vld [vmem:[%s12185_s3] sm:$0xf] }
  0xe0   : > { %1691 = vmatpush.bf16.msrb.mxu1 %v6251_v60  ;;  %v6235_v47 = vor.u32 %v8127_v40, %v6232_v44  ;;  %v6222_v51 = vld [vmem:[%s12185_s3 + $0x80] sm:$0xf]  ;;  %v8126_v52 = vld [vmem:[%s12185_s3 + $0x84] sm:$0xf0]  ;;  %v6159_v53 = vor.u32 %v8110_v48, %v6158_v45  ;;  %v1741_v5 = vrot.slane %v9233_v49, 1  ;;  %v1744_v6 = vrot.slane %v9235_v50, 1 }
  0xe1   : > { %v9238_v57 = vadd.f32 %v9099_v22, %v1120_v56  ;;  %v9241_v58 = vadd.f32 %v9101_v23, %v1121_v32  ;;  %v1216_v32 = vrot.slane %v1214_v54, 1  ;;  %v1228_v33 = vrot.slane %v1226_v0, 1  ;;  %v8198_v28 = vld [vmem:[%s12185_s3 + $0x2c4] sm:$0xf0]  ;;  %v8179_v40 = vld [vmem:[%s12185_s3 + $0x234] sm:$0xf] }
  0xe2   : > { %1636 = vmatpush.bf16.msra.mxu2 %v6167_v39  ;;  %v6223_v0 = vor.u32 %v8126_v52, %v6222_v51  ;;  %v6227_v14 = vor.u32 %v8125_v3, %v6224_v4  ;;  %v6425_v34 = vor.u32 %v8198_v28, %v6424_v27  ;;  %v6416_v39 = vld [vmem:[%s12185_s3 + $0x2b0] sm:$0xf]  ;;  %v6344_v44 = vld [vmem:[%s12185_s3 + $0x220] sm:$0xf]  ;;  %v8178_v45 = vld [vmem:[%s12185_s3 + $0x224] sm:$0xf0] }
  0xe3   : > { %v1142_v1 = vmax.f32 %v9238_v57, 0.0  ;;  %v1143_v2 = vmax.f32 %v9241_v58, 0.0  ;;  %v1212_v57 = vshrl.u32 %v9233_v49, 16  ;;  %v1224_v58 = vshrl.u32 %v9235_v50, 16  ;;  %1655 = vmatpush.bf16.msra.mxu3 %v6231_v43  ;;  %v6418_v43 = vld [vmem:[%s12185_s3 + $0x2b8] sm:$0xf0] }
  0xe4   : > { %1692 = vmatpush.bf16.msrb.mxu1 %v6243_v37  ;;  %v6426_v37 = vld [vmem:[%s12185_s3 + $0x2c8] sm:$0xf0]  ;;  %v6408_v51 = vld [vmem:[%s12185_s3 + $0x2a0] sm:$0xf]  ;;  %v8194_v52 = vld [vmem:[%s12185_s3 + $0x2a4] sm:$0xf0] }
  0xe5   : > { %v1229_v11 = vor.u32 %v1228_v33, %v1224_v58  ;;  %v6346_v33 = vld [vmem:[%s12185_s3 + $0x228] sm:$0xf0]  ;;  %v8173_v27 = vld [vmem:[%s12185_s3 + $0x204] sm:$0xf] }
  0xe6   : > { %v1094_v15 = vpop.f32.mrf.mxu0  ;;  %v1113_v16 = vpop.f32.mrf.mxu1  ;;  %1637 = vmatpush.bf16.msra.mxu2 %v6159_v53  ;;  %v6410_v58 = vld [vmem:[%s12185_s3 + $0x2a8] sm:$0xf0]  ;;  %v6409_v53 = vor.u32 %v8194_v52, %v6408_v51 }
  0xe7   : > { %v1122_v20 = vadd.f32 %v1094_v15, %v972_v9  ;;  %v1123_v21 = vadd.f32 %v1113_v16, %v991_v10  ;;  %v1217_v9 = vor.u32 %v1216_v32, %v1212_v57  ;;  %1656 = vmatpush.bf16.msra.mxu3 %v6223_v0  ;;  %v8177_v32 = vld [vmem:[%s12185_s3 + $0x224] sm:$0xf]  ;;  %v6330_v28 = vld [vmem:[%s12185_s3 + $0x208] sm:$0xf0] }
  0xe8   : > { %1693 = vmatpush.bf16.msrb.mxu1 %v6235_v47  ;;  %v8193_v57 = vld [vmem:[%s12185_s3 + $0x2a4] sm:$0xf]  ;;  %v6314_v52 = vld [vmem:[%s12185_s3 + $0x1e8] sm:$0xf0] }
  0xe9   : > { %v1136_v35 = vadd.f32 %v9099_v22, %v1122_v20  ;;  %v1137_v36 = vadd.f32 %v9101_v23, %v1123_v21  ;;  %v8111_v22 = vld [vmem:[%s12185_s3 + $0x14] sm:$0xf]  ;;  %v6168_v23 = vld [vmem:[%s12185_s3 + $0x18] sm:$0xf0]  ;;  %v6369_v20 = vor.u32 %v8184_v18, %v6368_v61  ;;  %v6328_v18 = vld [vmem:[%s12185_s3 + $0x200] sm:$0xf] }
  0xea   : > { %v6171_v46 = vor.u32 %v8111_v22, %v6168_v23  ;;  %v6370_v21 = vld [vmem:[%s12185_s3 + $0x258] sm:$0xf0]  ;;  %v8196_v22 = vld [vmem:[%s12185_s3 + $0x2b4] sm:$0xf0] }
  0xeb   : > { %v1144_v41 = vmax.f32 %v1136_v35, 0.0  ;;  %v1145_v42 = vmax.f32 %v1137_v36, 0.0  ;;  %v6373_v24 = vor.u32 %v8183_v19, %v6370_v21  ;;  %v6365_v35 = vor.u32 %v8181_v29, %v6362_v30  ;;  %v8197_v36 = vld [vmem:[%s12185_s3 + $0x2c4] sm:$0xf]  ;;  %v6402_v61 = vld [vmem:[%s12185_s3 + $0x298] sm:$0xf0] }
  0xec   : > { %1674 = vmatpush.bf16.msrb.mxu0 %v6171_v46  ;;  %1694 = vmatpush.bf16.msrb.mxu1 %v6227_v14  ;;  %v6429_v62 = vor.u32 %v8197_v36, %v6426_v37  ;;  %v6417_v23 = vor.u32 %v8196_v22, %v6416_v39  ;;  %v6353_v46 = vor.u32 %v8180_v63, %v6352_v38  ;;  %v6392_v21 = vld [vmem:[%s12185_s3 + $0x280] sm:$0xf]  ;;  %v8189_v29 = vld [vmem:[%s12185_s3 + $0x284] sm:$0xf]  ;;  %v6384_v37 = vld [vmem:[%s12185_s3 + $0x270] sm:$0xf] }
  0xed   : > { %v9335_v55 = vpack.c.bf16 %v1144_v41, %v1142_v1  ;;  %v9337_v56 = vpack.c.bf16 %v1145_v42, %v1143_v2  ;;  %v6160_v1 = vld [vmem:[%s12185_s3 + $0x8] sm:$0xf0]  ;;  %v6354_v41 = vld [vmem:[%s12185_s3 + $0x238] sm:$0xf0]  ;;  %v8195_v42 = vld [vmem:[%s12185_s3 + $0x2b4] sm:$0xf]  ;;  %v6333_v30 = vor.u32 %v8173_v27, %v6330_v28 }
  0xee   : > { %v6163_v13 = vor.u32 %v8109_v59, %v6160_v1  ;;  %v6357_v47 = vor.u32 %v8179_v40, %v6354_v41  ;;  %v6421_v48 = vor.u32 %v8195_v42, %v6418_v43  ;;  %v6413_v59 = vor.u32 %v8193_v57, %v6410_v58  ;;  %v8188_v38 = vld [vmem:[%s12185_s3 + $0x274] sm:$0xf0]  ;;  %v6322_v63 = vld [vmem:[%s12185_s3 + $0x1f8] sm:$0xf0]  ;;  %v8187_v39 = vld [vmem:[%s12185_s3 + $0x274] sm:$0xf] }
  0xef   : > { %v1219_v2 = vshll.u32 %v9335_v55, 16  ;;  %v1231_v54 = vshll.u32 %v9337_v56, 16  ;;  %v9361_v8 = vrot.slane %v9335_v55, 1  ;;  %v9365_v7 = vrot.slane %v9337_v56, 1  ;;  %v6386_v22 = vld [vmem:[%s12185_s3 + $0x278] sm:$0xf0] }
  0xf0   : > { %1675 = vmatpush.bf16.msrb.mxu0 %v6163_v13  ;;  %v6345_v1 = vor.u32 %v8178_v45, %v6344_v44  ;;  %v1238_v0 = vshrl.u32 %v9337_v56, 16  ;;  %v6338_v13 = vld [vmem:[%s12185_s3 + $0x218] sm:$0xf0]  ;;  %v6385_v40 = vor.u32 %v8188_v38, %v6384_v37  ;;  %v6312_v41 = vld [vmem:[%s12185_s3 + $0x1e0] sm:$0xf]  ;;  %v6389_v43 = vor.u32 %v8187_v39, %v6386_v22 }
  0xf1   : > { %v9367_v10 = vrot.slane %v1219_v2, 1  ;;  %v9369_v12 = vrot.slane %v1231_v54, 1  ;;  %v9373_v15 = vsel %vm1008_vm2, %v1741_v5, %v9361_v8  ;;  %v9377_v16 = vsel %vm1008_vm2, %v1744_v6, %v9365_v7  ;;  %v6336_v5 = vld [vmem:[%s12185_s3 + $0x210] sm:$0xf]  ;;  %v8176_v6 = vld [vmem:[%s12185_s3 + $0x214] sm:$0xf0] }
  0xf2   : > { %v6349_v2 = vor.u32 %v8177_v32, %v6346_v33  ;;  %v1235_v54 = vshrl.u32 %v9335_v55, 16  ;;  %v8170_v44 = vld [vmem:[%s12185_s3 + $0x1e4] sm:$0xf0]  ;;  %v6376_v45 = vld [vmem:[%s12185_s3 + $0x260] sm:$0xf] }
  0xf3   : > { %v1222_v17 = vsel %vm770_vm1, %v1217_v9, %v9367_v10  ;;  %v1234_v60 = vsel %vm770_vm1, %v1229_v11, %v9369_v12  ;;  %v1240_v4 = vor.u32 %v1238_v0, %v9369_v12  ;;  %v6400_v9 = vld [vmem:[%s12185_s3 + $0x290] sm:$0xf]  ;;  %v8192_v11 = vld [vmem:[%s12185_s3 + $0x294] sm:$0xf0]  ;;  %v8175_v12 = vld [vmem:[%s12185_s3 + $0x214] sm:$0xf] }
  0xf4   : > { %1408 = vmatmul.bf16.vlgmr.msrb.gmra.mxu2 %v1222_v17  ;;  %6152 = vmatmul.msk.bf16.vlgmr.msrb.gmra.mxu3 %vm1393_vm3, %v1234_v60  ;;  %v1237_v3 = vor.u32 %v1235_v54, %v9367_v10  ;;  %v6337_v10 = vor.u32 %v8176_v6, %v6336_v5  ;;  %v6401_v14 = vor.u32 %v8192_v11, %v6400_v9  ;;  %v8185_v32 = vld [vmem:[%s12185_s3 + $0x264] sm:$0xf]  ;;  %v6378_v33 = vld [vmem:[%s12185_s3 + $0x268] sm:$0xf0] }
  0xf5   : > { %1446 = vmatmul.bf16.vlgmr.msra.gmra.mxu0 %v1222_v17  ;;  %6154 = vmatmul.msk.bf16.vlgmr.msra.gmra.mxu1 %vm1393_vm3, %v1234_v60  ;;  %v6341_v17 = vor.u32 %v8175_v12, %v6338_v13  ;;  %v8191_v60 = vld [vmem:[%s12185_s3 + $0x294] sm:$0xf]  ;;  %v6381_v58 = vor.u32 %v8185_v32, %v6378_v33 }
  0xf6   : > { %1905 = vmatpush.bf16.msrb.mxu2 %v6369_v20  ;;  %1943 = vmatpush.bf16.msra.mxu0 %v6373_v24  ;;  %v6405_v19 = vor.u32 %v8191_v60, %v6402_v61  ;;  %v8174_v20 = vld [vmem:[%s12185_s3 + $0x204] sm:$0xf0] }
  0xf7   : > { %1925 = vmatpush.bf16.msrb.mxu3 %v6425_v34  ;;  %1963 = vmatpush.bf16.msra.mxu1 %v6429_v62  ;;  %v8190_v24 = vld [vmem:[%s12185_s3 + $0x284] sm:$0xf0]  ;;  %v6329_v25 = vor.u32 %v8174_v20, %v6328_v18  ;;  %v6320_v34 = vld [vmem:[%s12185_s3 + $0x1f0] sm:$0xf]  ;;  %v8171_v62 = vld [vmem:[%s12185_s3 + $0x1f4] sm:$0xf] }
  0xf8   : > { %v6393_v26 = vor.u32 %v8190_v24, %v6392_v21  ;;  %v6325_v42 = vor.u32 %v8171_v62, %v6322_v63 }
  0xfa   : > { %1906 = vmatpush.bf16.msrb.mxu2 %v6361_v31  ;;  %1944 = vmatpush.bf16.msra.mxu0 %v6365_v35  ;;  %v6394_v31 = vld [vmem:[%s12185_s3 + $0x288] sm:$0xf0]  ;;  %v8172_v35 = vld [vmem:[%s12185_s3 + $0x1f4] sm:$0xf0] }
  0xfb   : > { %1926 = vmatpush.bf16.msrb.mxu3 %v6417_v23  ;;  %1964 = vmatpush.bf16.msra.mxu1 %v6421_v48  ;;  %v6397_v36 = vor.u32 %v8189_v29, %v6394_v31  ;;  %v6321_v23 = vor.u32 %v8172_v35, %v6320_v34  ;;  %v6313_v48 = vor.u32 %v8170_v44, %v6312_v41  ;;  %v1989_v35 = vld [vmem:[%s12187_s27] sm:$0x3]  ;;  %s8072_s27 = sshll.u32 %s12193_s26, 4 }
  0xfc   : > { %v9598_v22 = vperm.slane %v1989_v35, 1  ;;  %v9601_v32 = vperm.slane %v1989_v35, 0 }
  0xfe   : > { %1907 = vmatpush.bf16.msrb.mxu2 %v6353_v46  ;;  %1945 = vmatpush.bf16.msra.mxu0 %v6357_v47  ;;  %v8186_v46 = vld [vmem:[%s12185_s3 + $0x264] sm:$0xf0]  ;;  %v8169_v47 = vld [vmem:[%s12185_s3 + $0x1e4] sm:$0xf] }
  0xff   : > { %1927 = vmatpush.bf16.msrb.mxu3 %v6409_v53  ;;  %1965 = vmatpush.bf16.msra.mxu1 %v6413_v59  ;;  %v6377_v51 = vor.u32 %v8186_v46, %v6376_v45  ;;  %v6317_v57 = vor.u32 %v8169_v47, %v6314_v52 }
 0x102   : > { %1908 = vmatpush.bf16.msrb.mxu2 %v6345_v1  ;;  %1946 = vmatpush.bf16.msra.mxu0 %v6349_v2 }
 0x103   : > { %1928 = vmatpush.bf16.msrb.mxu3 %v6401_v14  ;;  %1966 = vmatpush.bf16.msra.mxu1 %v6405_v19 }
 0x104   : > { %1413 = vmatmul.bf16.gmra.mxu2 %v1237_v3  ;;  %6153 = vmatmul.msk.bf16.gmra.mxu3 %vm1393_vm3, %v1240_v4 }
 0x105   : > { %1451 = vmatmul.bf16.gmra.mxu0 %v1237_v3  ;;  %6155 = vmatmul.msk.bf16.gmra.mxu1 %vm1393_vm3, %v1240_v4 }
 0x106   : > { %1909 = vmatpush.bf16.msrb.mxu2 %v6337_v10  ;;  %1947 = vmatpush.bf16.msra.mxu0 %v6341_v17 }
 0x107   : > { %1929 = vmatpush.bf16.msrb.mxu3 %v6393_v26  ;;  %1967 = vmatpush.bf16.msra.mxu1 %v6397_v36 }
 0x10a   : > { %1910 = vmatpush.bf16.msrb.mxu2 %v6329_v25  ;;  %1948 = vmatpush.bf16.msra.mxu0 %v6333_v30 }
 0x10b   : > { %1930 = vmatpush.bf16.msrb.mxu3 %v6385_v40  ;;  %1968 = vmatpush.bf16.msra.mxu1 %v6389_v43 }
 0x10e   : > { %1911 = vmatpush.bf16.msrb.mxu2 %v6321_v23  ;;  %1949 = vmatpush.bf16.msra.mxu0 %v6325_v42 }
 0x10f   : > { %1931 = vmatpush.bf16.msrb.mxu3 %v6377_v51  ;;  %1969 = vmatpush.bf16.msra.mxu1 %v6381_v58 }
 0x112   : > { %1912 = vmatpush.bf16.msrb.mxu2 %v6313_v48  ;;  %1950 = vmatpush.bf16.msra.mxu0 %v6317_v57 }
 0x114   : > { %1638 = vmatmul.bf16.vlgmr.msra.gmra.mxu2 %v9233_v49  ;;  %6276 = vmatmul.msk.bf16.vlgmr.msra.gmra.mxu3 %vm1393_vm3, %v9235_v50 }
 0x115   : > { %1676 = vmatmul.bf16.vlgmr.msrb.gmra.mxu0 %v9233_v49  ;;  %6278 = vmatmul.msk.bf16.vlgmr.msrb.gmra.mxu1 %vm1393_vm3, %v9235_v50 }
 0x124   : > { %1643 = vmatmul.bf16.gmra.mxu2 %v9335_v55  ;;  %6277 = vmatmul.msk.bf16.gmra.mxu3 %vm1393_vm3, %v9337_v56 }
 0x125   : > { %1681 = vmatmul.bf16.gmra.mxu0 %v9335_v55  ;;  %6279 = vmatmul.msk.bf16.gmra.mxu1 %vm1393_vm3, %v9337_v56 }
 0x134   : > { %1913 = vmatmul.bf16.vlgmr.msrb.gmra.mxu2 %v9373_v15  ;;  %6430 = vmatmul.msk.bf16.vlgmr.msrb.gmra.mxu3 %vm1393_vm3, %v9377_v16 }
 0x135   : > { %1951 = vmatmul.bf16.vlgmr.msra.gmra.mxu0 %v9373_v15  ;;  %6432 = vmatmul.msk.bf16.vlgmr.msra.gmra.mxu1 %vm1393_vm3, %v9377_v16 }
 0x144   : > { %1918 = vmatmul.bf16.gmra.mxu2 %v9361_v8  ;;  %6431 = vmatmul.msk.bf16.gmra.mxu3 %vm1393_vm3, %v9365_v7 }
 0x145   : > { %1956 = vmatmul.bf16.gmra.mxu0 %v9361_v8  ;;  %6433 = vmatmul.msk.bf16.gmra.mxu1 %vm1393_vm3, %v9365_v7 }
 0x172   : > { %v1447_v49 = vpop.f32.mrf.mxu0  ;;  %v1466_v50 = vpop.f32.mrf.mxu1 }
 0x173   : > { %v1467_v55 = vadd.f32 %v1466_v50, %v1447_v49 }
 0x177   : > { %v1409_v56 = vpop.f32.mrf.mxu2  ;;  %v1428_v53 = vpop.f32.mrf.mxu3 }
 0x178   : > { %v1429_v59 = vadd.f32 %v1428_v53, %v1409_v56 }
 0x17a   : > { %v1449_v15 = vpop.f32.mrf.mxu0  ;;  %v1468_v1 = vpop.f32.mrf.mxu1 }
 0x17b   : > { %v1469_v31 = vadd.f32 %v1468_v1, %v1449_v15 }
 0x17f   : > { %v1411_v2 = vpop.f32.mrf.mxu2  ;;  %v1430_v16 = vpop.f32.mrf.mxu3 }
 0x180   : > { %v1431_v23 = vadd.f32 %v1430_v16, %v1411_v2 }
 0x182   : > { %v1452_v54 = vpop.f32.mrf.mxu0  ;;  %v1471_v0 = vpop.f32.mrf.mxu1 }
 0x183   : > { %v1472_v47 = vadd.f32 %v1471_v0, %v1452_v54 }
 0x187   : > { %v1414_v3 = vpop.f32.mrf.mxu2  ;;  %v1433_v4 = vpop.f32.mrf.mxu3 }
 0x188   : > { %v1434_v5 = vadd.f32 %v1433_v4, %v1414_v3 }
 0x18a   : > { %v1454_v6 = vpop.f32.mrf.mxu0  ;;  %v1473_v8 = vpop.f32.mrf.mxu1 }
 0x18f   : > { %v1416_v9 = vpop.f32.mrf.mxu2  ;;  %v1435_v10 = vpop.f32.mrf.mxu3 }
 0x192   : > { %v1677_v7 = vpop.f32.mrf.mxu0  ;;  %v1696_v11 = vpop.f32.mrf.mxu1 }
 0x193   : > { %v1678_v30 = vadd.f32 %v1677_v7, %v1467_v55  ;;  %v1436_v7 = vadd.f32 %v1435_v10, %v1416_v9 }
 0x195   : > { %v1697_v36 = vadd.f32 %v1696_v11, %v1678_v30 }
 0x197   : > { %v1639_v12 = vpop.f32.mrf.mxu2  ;;  %v1658_v13 = vpop.f32.mrf.mxu3 }
 0x198   : > { %v1640_v63 = vadd.f32 %v1639_v12, %v1429_v59  ;;  %v1474_v59 = vadd.f32 %v1473_v8, %v1454_v6 }
 0x19a   : > { %v1679_v14 = vpop.f32.mrf.mxu0  ;;  %v1698_v17 = vpop.f32.mrf.mxu1  ;;  %v1659_v45 = vadd.f32 %v1658_v13, %v1640_v63 }
 0x19b   : > { %v1680_v37 = vadd.f32 %v1679_v14, %v1469_v31 }
 0x19d   : > { %v1699_v43 = vadd.f32 %v1698_v17, %v1680_v37 }
 0x19f   : > { %v1641_v60 = vpop.f32.mrf.mxu2  ;;  %v1660_v61 = vpop.f32.mrf.mxu3 }
 0x1a0   : > { %v1642_v46 = vadd.f32 %v1641_v60, %v1431_v23 }
 0x1a2   : > { %v1682_v18 = vpop.f32.mrf.mxu0  ;;  %v1701_v19 = vpop.f32.mrf.mxu1  ;;  %v1661_v50 = vadd.f32 %v1660_v61, %v1642_v46 }
 0x1a3   : > { %v1683_v33 = vadd.f32 %v1682_v18, %v1472_v47 }
 0x1a5   : > { %v1702_v54 = vadd.f32 %v1701_v19, %v1683_v33 }
 0x1a7   : > { %v1644_v20 = vpop.f32.mrf.mxu2  ;;  %v1663_v21 = vpop.f32.mrf.mxu3 }
 0x1a8   : > { %v1645_v0 = vadd.f32 %v1644_v20, %v1434_v5 }
 0x1aa   : > { %v1684_v24 = vpop.f32.mrf.mxu0  ;;  %v1703_v25 = vpop.f32.mrf.mxu1  ;;  %v1664_v8 = vadd.f32 %v1663_v21, %v1645_v0 }
 0x1ab   : > { %v1685_v12 = vadd.f32 %v1684_v24, %v1474_v59 }
 0x1ad   : > { %v1704_v20 = vadd.f32 %v1703_v25, %v1685_v12  ;;  %v2146_v12 = vld [vmem:[%s12188_s29 + $0x78] sm:$0xff] }
 0x1ae   : > { %2165 = vmatpush.msrb.mxu0 %v2146_v12  ;;  %v2133_v12 = vld [vmem:[%s12188_s29 + $0x10] sm:$0xff] }
 0x1af   : > { %v1646_v26 = vpop.f32.mrf.mxu2  ;;  %v1665_v27 = vpop.f32.mrf.mxu3 }
 0x1b0   : > { %v1647_v14 = vadd.f32 %v1646_v26, %v1436_v7 }
 0x1b2   : > { %v1952_v28 = vpop.f32.mrf.mxu0  ;;  %v1971_v29 = vpop.f32.mrf.mxu1  ;;  %v1666_v26 = vadd.f32 %v1665_v27, %v1647_v14  ;;  %v2158_v14 = vld [vmem:[%s12188_s29 + $0xd8] sm:$0xff] }
 0x1b3   : > { %v1972_v34 = vadd.f32 %v1971_v29, %v1952_v28  ;;  %2192 = vmatpush.msrb.mxu1 %v2158_v14  ;;  %v2227_v14 = vld [vmem:[%s12190_s8 + $0x80] sm:$0xff] }
 0x1b5   : > { %v1982_v39 = vadd.f32 %v1972_v34, %v1697_v36 }
 0x1b7   : > { %v1914_v38 = vpop.f32.mrf.mxu2  ;;  %v1933_v62 = vpop.f32.mrf.mxu3  ;;  %v1996_v51 = vadd.f32 %v9598_v22, %v1982_v39 }
 0x1b8   : > { %v1934_v40 = vadd.f32 %v1933_v62, %v1914_v38 }
 0x1b9   : > { %v9606_v53 = vmax.f32 %v1996_v51, 0.0 }
 0x1ba   : > { %v1954_v41 = vpop.f32.mrf.mxu0  ;;  %v1973_v42 = vpop.f32.mrf.mxu1  ;;  %v1981_v52 = vadd.f32 %v1934_v40, %v1659_v45 }
 0x1bb   : > { %v1974_v44 = vadd.f32 %v1973_v42, %v1954_v41 }
 0x1bc   : > { %v1995_v16 = vadd.f32 %v9601_v32, %v1981_v52 }
 0x1bd   : > { %v1984_v48 = vadd.f32 %v1974_v44, %v1699_v43 }
 0x1be   : > { %v9614_v6 = vmax.f32 %v1995_v16, 0.0 }
 0x1bf   : > { %v1916_v57 = vpop.f32.mrf.mxu2  ;;  %v1935_v58 = vpop.f32.mrf.mxu3  ;;  %v1998_v49 = vadd.f32 %v9598_v22, %v1984_v48 }
 0x1c0   : > { %v1936_v55 = vadd.f32 %v1935_v58, %v1916_v57 }
 0x1c1   : > { %v9604_v56 = vmax.f32 %v1998_v49, 0.0 }
 0x1c2   : > { %v1983_v15 = vadd.f32 %v1936_v55, %v1661_v50  ;;  %v1957_v1 = vpop.f32.mrf.mxu0  ;;  %v1976_v2 = vpop.f32.mrf.mxu1 }
 0x1c3   : > { %v1977_v3 = vadd.f32 %v1976_v2, %v1957_v1  ;;  %v3850_v4 = vpack.c.bf16 %v9604_v56, %v9606_v53 }
 0x1c4   : > { %v1997_v11 = vadd.f32 %v9601_v32, %v1983_v15 }
 0x1c5   : > { %v1986_v13 = vadd.f32 %v1977_v3, %v1702_v54  ;;  %v4573_v9 = vshrl.u32 %v3850_v4, 16  ;;  %v4576_v10 = vshll.u32 %v3850_v4, 16  ;;  %v3889_v34 = vrot.slane %v3850_v4, 2 }
 0x1c6   : > { %v9612_v17 = vmax.f32 %v1997_v11, 0.0  ;;  %v5065_v40 = vrot.slane %v3850_v4, 3 }
 0x1c7   : > { %v1919_v60 = vpop.f32.mrf.mxu2  ;;  %v1938_v61 = vpop.f32.mrf.mxu3  ;;  %v2000_v18 = vadd.f32 %v9598_v22, %v1986_v13  ;;  %v4575_v37 = vrot.slane %v4573_v9, 2  ;;  %v4578_v25 = vrot.slane %v4576_v10, 3  ;;  %v2145_v13 = vld [vmem:[%s12188_s29 + $0x70] sm:$0xff]  ;;  %v2012_v9 = vld [vmem:[%s12189_s6 + $0x8] sm:$0x3f] }
 0x1c8   : > { %v1939_v5 = vadd.f32 %v1938_v61, %v1919_v60  ;;  %v9619_v19 = vpack.c.bf16 %v9612_v17, %v9614_v6  ;;  %v2144_v60 = vld [vmem:[%s12188_s29 + $0x68] sm:$0xff]  ;;  %v2157_v61 = vld [vmem:[%s12188_s29 + $0xd0] sm:$0xff]  ;;  %2166 = vmatpush.msrb.mxu0 %v2145_v13 }
 0x1c9   : > { %v9621_v24 = vmax.f32 %v2000_v18, 0.0  ;;  %v4579_v57 = vor.u32 %v4578_v25, %v4575_v37  ;;  %v2143_v18 = vld [vmem:[%s12188_s29 + $0x60] sm:$0xff]  ;;  %2193 = vmatpush.msrb.mxu1 %v2157_v61  ;;  %v2225_v10 = vld [vmem:[%s12190_s8 + $0x70] sm:$0xff]  ;;  %v2234_v37 = vld [vmem:[%s12190_s8 + $0xb8] sm:$0xff] }
 0x1ca   : > { %v1985_v28 = vadd.f32 %v1939_v5, %v1664_v8  ;;  %v1959_v29 = vpop.f32.mrf.mxu0  ;;  %v1978_v30 = vpop.f32.mrf.mxu1  ;;  %v4556_v36 = vshrl.u32 %v9619_v19, 16  ;;  %v4559_v23 = vshll.u32 %v9619_v19, 16  ;;  %v5062_v1 = vrot.slane %v9619_v19, 3  ;;  %2167 = vmatpush.msrb.mxu0 %v2144_v60  ;;  %v2238_v5 = vld [vmem:[%s12190_s8 + $0xd8] sm:$0xff]  ;;  %v2140_v25 = vld [vmem:[%s12188_s29 + $0x48] sm:$0xff]  ;;  %v2213_v13 = vld [vmem:[%s12190_s8 + $0x10] sm:$0xff] }
 0x1cb   : > { %v1979_v21 = vadd.f32 %v1978_v30, %v1959_v29  ;;  %v3852_v31 = vpack.c.bf16 %v9621_v24, %v9621_v24  ;;  %v2142_v29 = vld [vmem:[%s12188_s29 + $0x58] sm:$0xff]  ;;  %v2132_v60 = vld [vmem:[%s12188_s29 + $0x8] sm:$0xff] }
 0x1cc   : > { %v1999_v35 = vadd.f32 %v9601_v32, %v1985_v28  ;;  %v4561_v50 = vrot.slane %v4559_v23, 3  ;;  %2168 = vmatpush.msrb.mxu0 %v2143_v18  ;;  %v2236_v28 = vld [vmem:[%s12190_s8 + $0xc8] sm:$0xff]  ;;  %v2222_v30 = vld [vmem:[%s12190_s8 + $0x58] sm:$0xff]  ;;  %v2233_v23 = vld [vmem:[%s12190_s8 + $0xb0] sm:$0xff] }
 0x1cd   : > { %v1988_v38 = vadd.f32 %v1979_v21, %v1704_v20  ;;  %v9627_v62 = vrot.slane %v3852_v31, 2  ;;  %v4581_v27 = vshrl.u32 %v3852_v31, 16  ;;  %v4584_v63 = vshll.u32 %v3852_v31, 16  ;;  %v2073_v20 = vld [vmem:[%s12191_s1] sm:$0xff]  ;;  %v2141_v21 = vld [vmem:[%s12188_s29 + $0x50] sm:$0xff]  ;;  %v2212_v61 = vld [vmem:[%s12190_s8 + $0x8] sm:$0xff] }
 0x1ce   : > { %v9629_v39 = vmax.f32 %v1999_v35, 0.0  ;;  %v9632_v41 = vrot.slane %v3852_v31, 3  ;;  %2169 = vmatpush.msrb.mxu0 %v2142_v29  ;;  %v2155_v31 = vld [vmem:[%s12188_s29 + $0xc0] sm:$0xff] }
 0x1cf   : > { %v2002_v42 = vadd.f32 %v9598_v22, %v1988_v38  ;;  %v1921_v43 = vpop.f32.mrf.mxu2  ;;  %v1940_v44 = vpop.f32.mrf.mxu3  ;;  %v9637_v45 = vsel %vm3885_vm4, %v3889_v34, %v9627_v62  ;;  %v4583_v46 = vrot.slane %v4581_v27, 2  ;;  %v4586_v47 = vrot.slane %v4584_v63, 3  ;;  %v2221_v34 = vld [vmem:[%s12190_s8 + $0x50] sm:$0xff]  ;;  %v2235_v35 = vld [vmem:[%s12190_s8 + $0xc0] sm:$0xff]  ;;  %v2220_v38 = vld [vmem:[%s12190_s8 + $0x48] sm:$0xff] }
 0x1d0   : > { %v1941_v48 = vadd.f32 %v1940_v44, %v1921_v43  ;;  %v9641_v51 = vpack.c.bf16 %v9629_v39, %v9629_v39  ;;  %v9645_v52 = vsel %vm5061_vm5, %v5065_v40, %v9632_v41  ;;  %v4558_v22 = vrot.slane %v4556_v36, 2  ;;  %2170 = vmatpush.msrb.mxu0 %v2141_v21  ;;  %v2154_v36 = vld [vmem:[%s12188_s29 + $0xb8] sm:$0xff]  ;;  %v2139_v27 = vld [vmem:[%s12188_s29 + $0x40] sm:$0xff]  ;;  %v2153_v63 = vld [vmem:[%s12188_s29 + $0xb0] sm:$0xff] }
 0x1d1   : > { %v2010_v33 = vmax.f32 %v2002_v42, 0.0  ;;  %v9647_v58 = vor.u32 %v4586_v47, %v4583_v46  ;;  %v2152_v40 = vld [vmem:[%s12188_s29 + $0xa8] sm:$0xff]  ;;  %v2138_v43 = vld [vmem:[%s12188_s29 + $0x38] sm:$0xff]  ;;  %v2137_v46 = vld [vmem:[%s12188_s29 + $0x30] sm:$0xff] }
 0x1d2   : > { %v1987_v49 = vadd.f32 %v1941_v48, %v1666_v26  ;;  %v4564_v55 = vshrl.u32 %v9641_v51, 16  ;;  %v4567_v59 = vshll.u32 %v9641_v51, 16  ;;  %v9658_v2 = vrot.slane %v9641_v51, 3  ;;  %v2156_v26 = vld [vmem:[%s12188_s29 + $0xc8] sm:$0xff]  ;;  %2171 = vmatpush.msrb.mxu0 %v2140_v25  ;;  %v2218_v44 = vld [vmem:[%s12190_s8 + $0x38] sm:$0xff]  ;;  %v2151_v47 = vld [vmem:[%s12188_s29 + $0xa0] sm:$0xff] }
 0x1d3   : > { %6437 = vmatpush.msk.msra.mxu3 %vm2020_vm6, %v2010_v33  ;;  %v9654_v15 = vsel %vm4554_vm7, %v4579_v57, %v9647_v58  ;;  %v4562_v7 = vor.u32 %v4561_v50, %v4558_v22  ;;  %2194 = vmatpush.msrb.mxu1 %v2156_v26  ;;  %v2232_v42 = vld [vmem:[%s12190_s8 + $0xa8] sm:$0xff]  ;;  %v2217_v48 = vld [vmem:[%s12190_s8 + $0x30] sm:$0xff]  ;;  %v2150_v22 = vld [vmem:[%s12188_s29 + $0x98] sm:$0xff] }
 0x1d4   : > { %v2001_v16 = vadd.f32 %v9601_v32, %v1987_v49  ;;  %v4566_v54 = vrot.slane %v4564_v55, 2  ;;  %v4569_v0 = vrot.slane %v4567_v59, 3  ;;  %v9664_v3 = vsel %vm5061_vm5, %v5062_v1, %v9658_v2  ;;  %v2011_v32 = vld [vmem:[%s12189_s6] sm:$0xff]  ;;  %2172 = vmatpush.msrb.mxu0 %v2139_v27  ;;  %v2230_v57 = vld [vmem:[%s12190_s8 + $0x98] sm:$0xff]  ;;  %v2136_v49 = vld [vmem:[%s12188_s29 + $0x28] sm:$0xff] }
 0x1d5   : > { %2063 = vmatpush.msra.mxu3 %v9621_v24  ;;  %2195 = vmatpush.msrb.mxu1 %v2155_v31  ;;  %v2216_v50 = vld [vmem:[%s12190_s8 + $0x28] sm:$0xff]  ;;  %v2135_v55 = vld [vmem:[%s12188_s29 + $0x20] sm:$0xff]  ;;  %v2149_v59 = vld [vmem:[%s12188_s29 + $0x90] sm:$0xff] }
 0x1d6   : > { %v2009_v4 = vmax.f32 %v2001_v16, 0.0  ;;  %v9666_v11 = vor.u32 %v4569_v0, %v4566_v54  ;;  %2173 = vmatpush.msrb.mxu0 %v2138_v43  ;;  %v2215_v1 = vld [vmem:[%s12190_s8 + $0x20] sm:$0xff]  ;;  %v2229_v16 = vld [vmem:[%s12190_s8 + $0x90] sm:$0xff]  ;;  %v2148_v54 = vld [vmem:[%s12188_s29 + $0x88] sm:$0xff] }
 0x1d7   : > { %2064 = vmatpush.msra.mxu3 %v9604_v56  ;;  %2196 = vmatpush.msrb.mxu1 %v2154_v36  ;;  %v2228_v0 = vld [vmem:[%s12190_s8 + $0x88] sm:$0xff]  ;;  %v2131_v18 = vld [vmem:[%s12188_s29] sm:$0xff] }
 0x1d8   : > { %6434 = vmatpush.msk.msra.mxu2 %vm2020_vm6, %v2009_v4  ;;  %v9684_v8 = vsel %vm4554_vm7, %v4562_v7, %v9666_v11  ;;  %2174 = vmatpush.msrb.mxu0 %v2137_v46  ;;  %v2214_v7 = vld [vmem:[%s12190_s8 + $0x18] sm:$0xff]  ;;  %v8211_v29 = vld [vmem:[%s12147_s9 + $0x64] sm:$0xf]  ;;  %v6506_v21 = vld [vmem:[%s12147_s9 + $0xc0] sm:$0xf] }
 0x1d9   : > { %2065 = vmatpush.msra.mxu3 %v9606_v53  ;;  %2197 = vmatpush.msrb.mxu1 %v2153_v63  ;;  %v6508_v36 = vld [vmem:[%s12147_s9 + $0xc8] sm:$0xf0] }
 0x1da   : > { %2040 = vmatpush.msra.mxu2 %v9629_v39  ;;  %6438 = vmatmul.msk.f32.vlgmr.msra.gmra.mxu3 %vm2013_vm8, %v2011_v32 }
 0x1db   : > { %6443 = vmatpush.msk.msrb.mxu3 %vm2020_vm6, %v2010_v33  ;;  %2198 = vmatpush.msrb.mxu1 %v2152_v40  ;;  %v2231_v33 = vld [vmem:[%s12190_s8 + $0xa0] sm:$0xff] }
 0x1dc   : > { %2041 = vmatpush.msra.mxu2 %v9612_v17  ;;  %2175 = vmatpush.msrb.mxu0 %v2136_v49  ;;  %v6566_v49 = vld [vmem:[%s12147_s9 + $0x58] sm:$0xf0] }
 0x1dd   : > { %2117 = vmatpush.msrb.mxu3 %v9621_v24  ;;  %v2074_v24 = vld [vmem:[%s12191_s1 + $0x8] sm:$0x3f]  ;;  %2199 = vmatpush.msrb.mxu1 %v2151_v47 }
 0x1de   : > { %2042 = vmatpush.msra.mxu2 %v9614_v6  ;;  %2176 = vmatpush.msrb.mxu0 %v2135_v55  ;;  %v8222_v55 = vld [vmem:[%s12147_s9 + $0xb4] sm:$0xf0] }
 0x1df   : > { %2118 = vmatpush.msrb.mxu3 %v9604_v56  ;;  %6435 = vmatmul.msk.f32.vlgmr.msra.gmra.mxu2 %vm2013_vm8, %v2011_v32  ;;  %v2237_v56 = vld [vmem:[%s12190_s8 + $0xd0] sm:$0xff]  ;;  %v2147_v32 = vld [vmem:[%s12188_s29 + $0x80] sm:$0xff] }
 0x1e0   : > { %6440 = vmatpush.msk.msrb.mxu2 %vm2020_vm6, %v2009_v4  ;;  %2200 = vmatpush.msrb.mxu1 %v2150_v22  ;;  %v2134_v4 = vld [vmem:[%s12188_s29 + $0x18] sm:$0xff]  ;;  %v8209_v22 = vld [vmem:[%s12147_s9 + $0x54] sm:$0xf] }
 0x1e1   : > { %2119 = vmatpush.msrb.mxu3 %v9606_v53  ;;  %v2226_v53 = vld [vmem:[%s12190_s8 + $0x78] sm:$0xff]  ;;  %2177 = vmatpush.msrb.mxu0 %v2134_v4  ;;  %v6556_v4 = vld [vmem:[%s12147_s9 + $0x40] sm:$0xf] }
 0x1e2   : > { %2094 = vmatpush.msrb.mxu2 %v9629_v39  ;;  %6439 = vmatmul.msk.f32.gmra.mxu3 %vm2013_vm8, %v2012_v9  ;;  %v2219_v39 = vld [vmem:[%s12190_s8 + $0x40] sm:$0xff] }
 0x1e3   : > { %2266 = vmatpush.msra.mxu3 %v2238_v5  ;;  %2201 = vmatpush.msrb.mxu1 %v2149_v59  ;;  %v2211_v5 = vld [vmem:[%s12190_s8] sm:$0xff]  ;;  %v6569_v59 = vor.u32 %v8209_v22, %v6566_v49  ;;  %v8214_v22 = vld [vmem:[%s12147_s9 + $0x74] sm:$0xf0] }
 0x1e4   : > { %2095 = vmatpush.msrb.mxu2 %v9612_v17  ;;  %v2224_v17 = vld [vmem:[%s12190_s8 + $0x68] sm:$0xff]  ;;  %2178 = vmatpush.msrb.mxu0 %v2133_v12  ;;  %v8207_v12 = vld [vmem:[%s12147_s9 + $0x44] sm:$0xf] }
 0x1e5   : > { %2267 = vmatpush.msra.mxu3 %v2237_v56  ;;  %2202 = vmatpush.msrb.mxu1 %v2148_v54  ;;  %v8226_v56 = vld [vmem:[%s12147_s9 + $0xd4] sm:$0xf0]  ;;  %v6500_v54 = vld [vmem:[%s12147_s9 + $0xb8] sm:$0xf0] }
 0x1e6   : > { %2096 = vmatpush.msrb.mxu2 %v9614_v6  ;;  %v2223_v6 = vld [vmem:[%s12190_s8 + $0x60] sm:$0xff]  ;;  %2179 = vmatpush.msrb.mxu0 %v2132_v60  ;;  %v8220_v60 = vld [vmem:[%s12147_s9 + $0xa4] sm:$0xf0]  ;;  %s737_s8 = scalar_lea.vmem %s12162_s24, %s8072_s27 }
 0x1e7   : > { %6436 = vmatmul.msk.f32.gmra.mxu2 %vm2013_vm8, %v2012_v9  ;;  %2268 = vmatpush.msra.mxu3 %v2236_v28  ;;  %v6514_v9 = vld [vmem:[%s12147_s9 + $0xd0] sm:$0xf] }
 0x1e8   : > { %2239 = vmatpush.msra.mxu2 %v2226_v53  ;;  %2203 = vmatpush.msrb.mxu1 %v2147_v32  ;;  %v8225_v53 = vld [vmem:[%s12147_s9 + $0xd4] sm:$0xf] }
 0x1e9   : > { %2269 = vmatpush.msra.mxu3 %v2235_v35  ;;  %2180 = vmatpush.msrb.mxu0 %v2131_v18  ;;  %v8223_v35 = vld [vmem:[%s12147_s9 + $0xc4] sm:$0xf] }
 0x1ea   : > { %2240 = vmatpush.msra.mxu2 %v2225_v10  ;;  %6444 = vmatmul.msk.f32.vlgmr.msrb.gmra.mxu3 %vm2013_vm8, %v2073_v20  ;;  %v6511_v25 = vor.u32 %v8223_v35, %v6508_v36  ;;  %v8204_v35 = vld [vmem:[%s12147_s9 + $0x24] sm:$0xf0]  ;;  %v8203_v36 = vld [vmem:[%s12147_s9 + $0x24] sm:$0xf] }
 0x1eb   : > { %2270 = vmatpush.msra.mxu3 %v2234_v37 }
 0x1ec   : > { %2241 = vmatpush.msra.mxu2 %v2224_v17  ;;  %v6516_v17 = vld [vmem:[%s12147_s9 + $0xd8] sm:$0xf0] }
 0x1ed   : > { %2271 = vmatpush.msra.mxu3 %v2233_v23  ;;  %v6519_v26 = vor.u32 %v8225_v53, %v6516_v17  ;;  %v6548_v53 = vld [vmem:[%s12147_s9 + $0x30] sm:$0xf] }
 0x1ee   : > { %2242 = vmatpush.msra.mxu2 %v2223_v6  ;;  %v6572_v6 = vld [vmem:[%s12147_s9 + $0x60] sm:$0xf] }
 0x1ef   : > { %6441 = vmatmul.msk.f32.vlgmr.msrb.gmra.mxu2 %vm2013_vm8, %v2073_v20  ;;  %2272 = vmatpush.msra.mxu3 %v2232_v42  ;;  %v6515_v20 = vor.u32 %v8226_v56, %v6514_v9  ;;  %v6492_v9 = vld [vmem:[%s12147_s9 + $0xa8] sm:$0xf0] }
 0x1f0   : > { %2243 = vmatpush.msra.mxu2 %v2222_v30  ;;  %v6574_v30 = vld [vmem:[%s12147_s9 + $0x68] sm:$0xf0]  ;;  %2412 = vmatpush.bf16.msra.mxu1 %v6519_v26  ;;  %v8218_v26 = vld [vmem:[%s12147_s9 + $0x94] sm:$0xf0] }
 0x1f1   : > { %2273 = vmatpush.msra.mxu3 %v2231_v33  ;;  %2398 = vmatpush.bf16.msra.mxu0 %v6515_v20  ;;  %v6577_v31 = vor.u32 %v8211_v29, %v6574_v30  ;;  %v8210_v33 = vld [vmem:[%s12147_s9 + $0x54] sm:$0xf0]  ;;  %v8205_v20 = vld [vmem:[%s12147_s9 + $0x34] sm:$0xf] }
 0x1f2   : > { %6445 = vmatmul.msk.f32.gmra.mxu3 %vm2013_vm8, %v2074_v24  ;;  %2244 = vmatpush.msra.mxu2 %v2221_v34  ;;  %v8224_v34 = vld [vmem:[%s12147_s9 + $0xc4] sm:$0xf0]  ;;  %v8217_v30 = vld [vmem:[%s12147_s9 + $0x94] sm:$0xf] }
 0x1f3   : > { %2274 = vmatpush.msra.mxu3 %v2230_v57  ;;  %v6507_v37 = vor.u32 %v8224_v34, %v6506_v21  ;;  %v6484_v21 = vld [vmem:[%s12147_s9 + $0x98] sm:$0xf0]  ;;  %v6540_v34 = vld [vmem:[%s12147_s9 + $0x20] sm:$0xf] }
 0x1f4   : > { %2245 = vmatpush.msra.mxu2 %v2220_v38  ;;  %2413 = vmatpush.bf16.msra.mxu1 %v6511_v25  ;;  %v6542_v25 = vld [vmem:[%s12147_s9 + $0x28] sm:$0xf0] }
 0x1f5   : > { %2275 = vmatpush.msra.mxu3 %v2229_v16  ;;  %2399 = vmatpush.bf16.msra.mxu0 %v6507_v37  ;;  %v8221_v16 = vld [vmem:[%s12147_s9 + $0xb4] sm:$0xf]  ;;  %v6541_v37 = vor.u32 %v8204_v35, %v6540_v34  ;;  %v6622_v34 = vld [vmem:[%s12147_s9 + $0x118] sm:$0xf0]  ;;  %v6612_v35 = vld [vmem:[%s12147_s9 + $0x100] sm:$0xf] }
 0x1f6   : > { %2246 = vmatpush.msra.mxu2 %v2219_v39 }
 0x1f7   : > { %6442 = vmatmul.msk.f32.gmra.mxu2 %vm2013_vm8, %v2074_v24  ;;  %2276 = vmatpush.msra.mxu3 %v2228_v0  ;;  %v8212_v24 = vld [vmem:[%s12147_s9 + $0x64] sm:$0xf0]  ;;  %v6503_v0 = vor.u32 %v8221_v16, %v6500_v54  ;;  %v8239_v54 = vld [vmem:[%s12147_s9 + $0x144] sm:$0xf] }
 0x1f8   : > { %2247 = vmatpush.msra.mxu2 %v2218_v44  ;;  %v6573_v28 = vor.u32 %v8212_v24, %v6572_v6  ;;  %v6550_v6 = vld [vmem:[%s12147_s9 + $0x38] sm:$0xf0]  ;;  %v6482_v24 = vld [vmem:[%s12147_s9 + $0x90] sm:$0xf]  ;;  %v8240_v16 = vld [vmem:[%s12147_s9 + $0x144] sm:$0xf0] }
 0x1f9   : > { %2277 = vmatpush.msra.mxu3 %v2227_v14  ;;  %2414 = vmatpush.bf16.msra.mxu1 %v6503_v0  ;;  %v6490_v14 = vld [vmem:[%s12147_s9 + $0xa0] sm:$0xf]  ;;  %v6483_v29 = vor.u32 %v8218_v26, %v6482_v24  ;;  %v6646_v0 = vld [vmem:[%s12147_s9 + $0x148] sm:$0xf0] }
 0x1fa   : > { %2248 = vmatpush.msra.mxu2 %v2217_v48  ;;  %v6564_v48 = vld [vmem:[%s12147_s9 + $0x50] sm:$0xf]  ;;  %v6491_v18 = vor.u32 %v8220_v60, %v6490_v14  ;;  %v6526_v60 = vld [vmem:[%s12147_s9 + $0x8] sm:$0xf0] }
 0x1fb   : > { %2498 = vmatpush.bf16.msrb.mxu3 %v6573_v28  ;;  %v6565_v57 = vor.u32 %v8210_v33, %v6564_v48  ;;  %v6553_v28 = vor.u32 %v8205_v20, %v6550_v6  ;;  %v6534_v48 = vld [vmem:[%s12147_s9 + $0x18] sm:$0xf0]  ;;  %v6466_v33 = vld [vmem:[%s12147_s9 + $0x70] sm:$0xf]  ;;  %v6628_v20 = vld [vmem:[%s12147_s9 + $0x120] sm:$0xf] }
 0x1fc   : > { %2249 = vmatpush.msra.mxu2 %v2216_v50  ;;  %v6498_v50 = vld [vmem:[%s12147_s9 + $0xb0] sm:$0xf]  ;;  %v6467_v49 = vor.u32 %v8214_v22, %v6466_v33  ;;  %v8235_v6 = vld [vmem:[%s12147_s9 + $0x124] sm:$0xf]  ;;  %v6630_v24 = vld [vmem:[%s12147_s9 + $0x128] sm:$0xf0] }
 0x1fd   : > { %v8228_v22 = vld [vmem:[%s12147_s9 + $0xe4] sm:$0xf0] }
 0x1fe   : > { %2250 = vmatpush.msra.mxu2 %v2215_v1  ;;  %v6499_v1 = vor.u32 %v8222_v55, %v6498_v50  ;;  %v8213_v50 = vld [vmem:[%s12147_s9 + $0x74] sm:$0xf]  ;;  %v6468_v55 = vld [vmem:[%s12147_s9 + $0x78] sm:$0xf0] }
 0x1ff   : > { %2499 = vmatpush.bf16.msrb.mxu3 %v6565_v57 }
 0x200   : > { %2251 = vmatpush.msra.mxu2 %v2214_v7  ;;  %2400 = vmatpush.bf16.msra.mxu0 %v6499_v1  ;;  %v8208_v7 = vld [vmem:[%s12147_s9 + $0x44] sm:$0xf0]  ;;  %v6471_v1 = vor.u32 %v8213_v50, %v6468_v55 }
 0x201   : > { %v6557_v32 = vor.u32 %v8208_v7, %v6556_v4  ;;  %v6649_v7 = vor.u32 %v8239_v54, %v6646_v0 }
 0x202   : > { %2252 = vmatpush.msra.mxu2 %v2213_v13  ;;  %v6558_v13 = vld [vmem:[%s12147_s9 + $0x48] sm:$0xf0] }
 0x203   : > { %2500 = vmatpush.bf16.msrb.mxu3 %v6557_v32  ;;  %v8200_v32 = vld [vmem:[%s12147_s9 + $0x4] sm:$0xf0] }
 0x204   : > { %2253 = vmatpush.msra.mxu2 %v2212_v61  ;;  %v6561_v61 = vor.u32 %v8207_v12, %v6558_v13  ;;  %2401 = vmatpush.bf16.msra.mxu0 %v6491_v18  ;;  %v6524_v12 = vld [vmem:[%s12147_s9] sm:$0xf]  ;;  %v8199_v13 = vld [vmem:[%s12147_s9 + $0x4] sm:$0xf]  ;;  %v6636_v18 = vld [vmem:[%s12147_s9 + $0x130] sm:$0xf] }
 0x205   : > { %v6525_v14 = vor.u32 %v8200_v32, %v6524_v12 }
 0x206   : > { %2254 = vmatpush.msra.mxu2 %v2211_v5  ;;  %v8219_v5 = vld [vmem:[%s12147_s9 + $0xa4] sm:$0xf] }
 0x207   : > { %v6495_v56 = vor.u32 %v8219_v5, %v6492_v9  ;;  %v8238_v5 = vld [vmem:[%s12147_s9 + $0x134] sm:$0xf0]  ;;  %v8237_v9 = vld [vmem:[%s12147_s9 + $0x134] sm:$0xf] }
 0x208   : > { %2512 = vmatpush.bf16.msrb.mxu2 %v6577_v31  ;;  %v6487_v31 = vor.u32 %v8217_v30, %v6484_v21  ;;  %2402 = vmatpush.bf16.msra.mxu0 %v6483_v29  ;;  %v6620_v29 = vld [vmem:[%s12147_s9 + $0x110] sm:$0xf]  ;;  %v8234_v30 = vld [vmem:[%s12147_s9 + $0x114] sm:$0xf0]  ;;  %v8233_v21 = vld [vmem:[%s12147_s9 + $0x114] sm:$0xf] }
 0x209   : > { %2415 = vmatpush.bf16.msra.mxu1 %v6495_v56  ;;  %v6637_v56 = vor.u32 %v8238_v5, %v6636_v18  ;;  %v8279_v18 = vld [vmem:[%s12149_s11 + $0x134] sm:$0xf]  ;;  %v6736_v5 = vld [vmem:[%s12149_s11 + $0x138] sm:$0xf0] }
 0x20c   : > { %2513 = vmatpush.bf16.msrb.mxu2 %v6569_v59  ;;  %v6644_v59 = vld [vmem:[%s12147_s9 + $0x140] sm:$0xf] }
 0x20d   : > { %2416 = vmatpush.bf16.msra.mxu1 %v6487_v31  ;;  %v6645_v4 = vor.u32 %v8240_v16, %v6644_v59  ;;  %v6621_v31 = vor.u32 %v8234_v30, %v6620_v29  ;;  %v8255_v30 = vld [vmem:[%s12149_s11 + $0x74] sm:$0xf] }
 0x210   : > { %2514 = vmatpush.bf16.msrb.mxu2 %v6561_v61  ;;  %v6529_v61 = vor.u32 %v8199_v13, %v6526_v60 }
 0x214   : > { %2515 = vmatpush.bf16.msrb.mxu2 %v6553_v28  ;;  %v6633_v28 = vor.u32 %v8235_v6, %v6630_v24 }
 0x25d   : > { %v2067_v10 = vpop.f32.mrf.mxu3 }
 0x262   : > { %v2044_v38 = vpop.f32.mrf.mxu2 }
 0x265   : > { %v2070_v27 = vpop.f32.mrf.mxu3 }
 0x26a   : > { %v2047_v63 = vpop.f32.mrf.mxu2 }
 0x26d   : > { %v2121_v39 = vpop.f32.mrf.mxu3 }
 0x26e   : > { %v2128_v23 = vmax.f32 %v2067_v10, %v2121_v39  ;;  %v8206_v10 = vld [vmem:[%s12147_s9 + $0x34] sm:$0xf0] }
 0x26f   : > { %v6549_v17 = vor.u32 %v8206_v10, %v6548_v53  ;;  %v6638_v53 = vld [vmem:[%s12147_s9 + $0x138] sm:$0xf0] }
 0x270   : > { %6446 = vmatmul.msk.f32.vlgmr.msrb.gmra.mxu1 %vm846_vm0, %v2128_v23  ;;  %6448 = vmatmul.msk.f32.vlgmr.msra.gmra.mxu3 %vm846_vm0, %v2128_v23  ;;  %v8215_v23 = vld [vmem:[%s12147_s9 + $0x84] sm:$0xf]  ;;  %v6641_v10 = vor.u32 %v8237_v9, %v6638_v53  ;;  %v6739_v53 = vor.u32 %v8279_v18, %v6736_v5  ;;  %v6758_v18 = vld [vmem:[%s12149_s11 + $0x160] sm:$0xf]  ;;  %v8286_v5 = vld [vmem:[%s12149_s11 + $0x164] sm:$0xf0] }
 0x271   : > { %2501 = vmatpush.bf16.msrb.mxu3 %v6549_v17  ;;  %v8236_v17 = vld [vmem:[%s12147_s9 + $0x124] sm:$0xf0] }
 0x272   : > { %v2098_v40 = vpop.f32.mrf.mxu2  ;;  %v6629_v26 = vor.u32 %v8236_v17, %v6628_v20  ;;  %v8277_v20 = vld [vmem:[%s12149_s11 + $0x124] sm:$0xf]  ;;  %v6728_v17 = vld [vmem:[%s12149_s11 + $0x128] sm:$0xf0] }
 0x273   : > { %v2127_v42 = vmax.f32 %v2044_v38, %v2098_v40  ;;  %v6474_v38 = vld [vmem:[%s12147_s9 + $0x80] sm:$0xf]  ;;  %v6476_v40 = vld [vmem:[%s12147_s9 + $0x88] sm:$0xf0]  ;;  %v6731_v6 = vor.u32 %v8277_v20, %v6728_v17  ;;  %v8267_v20 = vld [vmem:[%s12149_s11 + $0xd4] sm:$0xf] }
 0x274   : > { %v6688_v17 = vld [vmem:[%s12149_s11 + $0xd8] sm:$0xf0] }
 0x275   : > { %2181 = vmatmul.f32.vlgmr.msrb.gmra.mxu0 %v2127_v42  ;;  %2255 = vmatmul.f32.vlgmr.msra.gmra.mxu2 %v2127_v42  ;;  %v2124_v43 = vpop.f32.mrf.mxu3  ;;  %v6479_v42 = vor.u32 %v8215_v23, %v6476_v40  ;;  %v8230_v23 = vld [vmem:[%s12147_s9 + $0xf4] sm:$0xf0]  ;;  %v8229_v40 = vld [vmem:[%s12147_s9 + $0xf4] sm:$0xf] }
 0x276   : > { %v2130_v44 = vmax.f32 %v2070_v27, %v2124_v43  ;;  %v8216_v27 = vld [vmem:[%s12147_s9 + $0x84] sm:$0xf0]  ;;  %2502 = vmatpush.bf16.msrb.mxu3 %v6541_v37  ;;  %v6532_v43 = vld [vmem:[%s12147_s9 + $0x10] sm:$0xf]  ;;  %v6625_v37 = vor.u32 %v8233_v21, %v6622_v34  ;;  %v6834_v21 = vld [vmem:[%s12149_s11 + $0x78] sm:$0xf0] }
 0x277   : > { %v6475_v39 = vor.u32 %v8216_v27, %v6474_v38  ;;  %2417 = vmatpush.bf16.msra.mxu1 %v6479_v42  ;;  %v6614_v38 = vld [vmem:[%s12147_s9 + $0x108] sm:$0xf0]  ;;  %v6606_v42 = vld [vmem:[%s12147_s9 + $0xf8] sm:$0xf0]  ;;  %v8275_v34 = vld [vmem:[%s12149_s11 + $0x114] sm:$0xf] }
 0x278   : > { %6447 = vmatmul.msk.f32.gmra.mxu1 %vm846_vm0, %v2130_v44  ;;  %6449 = vmatmul.msk.f32.gmra.mxu3 %vm846_vm0, %v2130_v44  ;;  %v8202_v44 = vld [vmem:[%s12147_s9 + $0x14] sm:$0xf0] }
 0x279   : > { %2403 = vmatpush.bf16.msra.mxu0 %v6475_v39  ;;  %v6604_v39 = vld [vmem:[%s12147_s9 + $0xf0] sm:$0xf] }
 0x27a   : > { %v2101_v46 = vpop.f32.mrf.mxu2 }
 0x27b   : > { %v2129_v47 = vmax.f32 %v2047_v63, %v2101_v46  ;;  %v6545_v63 = vor.u32 %v8203_v36, %v6542_v25  ;;  %v8201_v46 = vld [vmem:[%s12147_s9 + $0x14] sm:$0xf]  ;;  %2418 = vmatpush.bf16.msra.mxu1 %v6471_v1  ;;  %v8232_v36 = vld [vmem:[%s12147_s9 + $0x104] sm:$0xf0]  ;;  %v8231_v25 = vld [vmem:[%s12147_s9 + $0x104] sm:$0xf] }
 0x27c   : > { %v6537_v57 = vor.u32 %v8201_v46, %v6534_v48  ;;  %v6613_v27 = vor.u32 %v8232_v36, %v6612_v35  ;;  %v6605_v46 = vor.u32 %v8230_v23, %v6604_v39  ;;  %v6596_v48 = vld [vmem:[%s12147_s9 + $0xe0] sm:$0xf]  ;;  %v6720_v35 = vld [vmem:[%s12149_s11 + $0x118] sm:$0xf0]  ;;  %v8273_v23 = vld [vmem:[%s12149_s11 + $0x104] sm:$0xf] }
 0x27d   : > { %2184 = vmatmul.f32.gmra.mxu0 %v2129_v47  ;;  %2258 = vmatmul.f32.gmra.mxu2 %v2129_v47  ;;  %v6533_v47 = vor.u32 %v8202_v44, %v6532_v43  ;;  %v6597_v55 = vor.u32 %v8228_v22, %v6596_v48  ;;  %v6726_v36 = vld [vmem:[%s12149_s11 + $0x120] sm:$0xf]  ;;  %v6818_v48 = vld [vmem:[%s12149_s11 + $0x58] sm:$0xf0]  ;;  %v8271_v22 = vld [vmem:[%s12149_s11 + $0xf4] sm:$0xf] }
 0x27e   : > { %2516 = vmatpush.bf16.msrb.mxu2 %v6545_v63  ;;  %2404 = vmatpush.bf16.msra.mxu0 %v6467_v49  ;;  %v6617_v63 = vor.u32 %v8231_v25, %v6614_v38  ;;  %v6598_v49 = vld [vmem:[%s12147_s9 + $0xe8] sm:$0xf0]  ;;  %v8278_v25 = vld [vmem:[%s12149_s11 + $0x124] sm:$0xf0]  ;;  %v8253_v38 = vld [vmem:[%s12149_s11 + $0x64] sm:$0xf] }
 0x27f   : > { %2503 = vmatpush.bf16.msrb.mxu3 %v6533_v47  ;;  %2630 = vmatpush.bf16.msrb.mxu1 %v6649_v7  ;;  %v6609_v47 = vor.u32 %v8229_v40, %v6606_v42  ;;  %v6712_v40 = vld [vmem:[%s12149_s11 + $0x108] sm:$0xf0] }
 0x280   : > { %v6715_v42 = vor.u32 %v8273_v23, %v6712_v40  ;;  %v8268_v23 = vld [vmem:[%s12149_s11 + $0xd4] sm:$0xf0] }
 0x282   : > { %2517 = vmatpush.bf16.msrb.mxu2 %v6537_v57  ;;  %2616 = vmatpush.bf16.msrb.mxu0 %v6645_v4  ;;  %v8227_v57 = vld [vmem:[%s12147_s9 + $0xe4] sm:$0xf] }
 0x283   : > { %2504 = vmatpush.bf16.msrb.mxu3 %v6525_v14  ;;  %2631 = vmatpush.bf16.msrb.mxu1 %v6641_v10  ;;  %v6601_v59 = vor.u32 %v8227_v57, %v6598_v49  ;;  %v6704_v57 = vld [vmem:[%s12149_s11 + $0xf8] sm:$0xf0]  ;;  %v6710_v49 = vld [vmem:[%s12149_s11 + $0x100] sm:$0xf] }
 0x286   : > { %2518 = vmatpush.bf16.msrb.mxu2 %v6529_v61  ;;  %2617 = vmatpush.bf16.msrb.mxu0 %v6637_v56 }
 0x287   : > { %2632 = vmatpush.bf16.msrb.mxu1 %v6633_v28  ;;  %v8280_v28 = vld [vmem:[%s12149_s11 + $0x134] sm:$0xf0] }
 0x28a   : > { %2618 = vmatpush.bf16.msrb.mxu0 %v6629_v26  ;;  %v6734_v26 = vld [vmem:[%s12149_s11 + $0x130] sm:$0xf] }
 0x28b   : > { %2633 = vmatpush.bf16.msrb.mxu1 %v6625_v37  ;;  %v6735_v29 = vor.u32 %v8280_v28, %v6734_v26  ;;  %v6723_v37 = vor.u32 %v8275_v34, %v6720_v35  ;;  %v8270_v26 = vld [vmem:[%s12149_s11 + $0xe4] sm:$0xf0]  ;;  %v6794_v34 = vld [vmem:[%s12149_s11 + $0x28] sm:$0xf0]  ;;  %v8265_v35 = vld [vmem:[%s12149_s11 + $0xc4] sm:$0xf] }
 0x28d   : > { %2851 = vmatpush.bf16.msra.mxu3 %v6735_v29  ;;  %v6750_v29 = vld [vmem:[%s12149_s11 + $0x150] sm:$0xf] }
 0x28e   : > { %2619 = vmatpush.bf16.msrb.mxu0 %v6621_v31  ;;  %v6837_v31 = vor.u32 %v8255_v30, %v6834_v21  ;;  %v8284_v30 = vld [vmem:[%s12149_s11 + $0x154] sm:$0xf0]  ;;  %v8245_v21 = vld [vmem:[%s12149_s11 + $0x24] sm:$0xf] }
 0x28f   : > { %2634 = vmatpush.bf16.msrb.mxu1 %v6617_v63  ;;  %v6727_v63 = vor.u32 %v8278_v25, %v6726_v36  ;;  %v6680_v36 = vld [vmem:[%s12149_s11 + $0xc8] sm:$0xf0] }
 0x290   : > { %v6683_v25 = vor.u32 %v8265_v35, %v6680_v36  ;;  %v8260_v35 = vld [vmem:[%s12149_s11 + $0x94] sm:$0xf0]  ;;  %v8309_v36 = vld [vmem:[%s12149_s11 + $0x224] sm:$0xf] }
 0x291   : > { %2852 = vmatpush.bf16.msra.mxu3 %v6727_v63 }
 0x292   : > { %2620 = vmatpush.bf16.msrb.mxu0 %v6613_v27  ;;  %v6826_v27 = vld [vmem:[%s12149_s11 + $0x68] sm:$0xf0] }
 0x293   : > { %2635 = vmatpush.bf16.msrb.mxu1 %v6609_v47  ;;  %v6829_v39 = vor.u32 %v8253_v38, %v6826_v27  ;;  %v8251_v47 = vld [vmem:[%s12149_s11 + $0x54] sm:$0xf]  ;;  %v6954_v38 = vld [vmem:[%s12149_s11 + $0x1f0] sm:$0xf]  ;;  %v8304_v27 = vld [vmem:[%s12149_s11 + $0x1f4] sm:$0xf0] }
 0x294   : > { %v6955_v63 = vor.u32 %v8304_v27, %v6954_v38  ;;  %v8281_v27 = vld [vmem:[%s12149_s11 + $0x144] sm:$0xf] }
 0x296   : > { %2621 = vmatpush.bf16.msrb.mxu0 %v6605_v46 }
 0x297   : > { %2636 = vmatpush.bf16.msrb.mxu1 %v6601_v59  ;;  %v6766_v59 = vld [vmem:[%s12149_s11 + $0x170] sm:$0xf] }
 0x29a   : > { %2622 = vmatpush.bf16.msrb.mxu0 %v6597_v55  ;;  %v8274_v55 = vld [vmem:[%s12149_s11 + $0x104] sm:$0xf0] }
 0x2ed   : > { %v2205_v44 = vpop.f32.mrf.mxu1 }
 0x2f2   : > { %v2182_v43 = vpop.f32.mrf.mxu0 }
 0x2f3   : > { %v2279_v33 = vpop.f32.mrf.mxu3  ;;  %v2206_v7 = vadd.f32 %v2205_v44, %v2182_v43  ;;  %v6718_v43 = vld [vmem:[%s12149_s11 + $0x110] sm:$0xf]  ;;  %v8276_v44 = vld [vmem:[%s12149_s11 + $0x114] sm:$0xf0] }
 0x2f4   : > { %v6719_v46 = vor.u32 %v8276_v44, %v6718_v43  ;;  %v8282_v43 = vld [vmem:[%s12149_s11 + $0x144] sm:$0xf0]  ;;  %v8243_v44 = vld [vmem:[%s12149_s11 + $0x14] sm:$0xf] }
 0x2f5   : > { %v2208_v16 = vpop.f32.mrf.mxu1 }
 0x2f6   : > { %2853 = vmatpush.bf16.msra.mxu3 %v6719_v46 }
 0x2f8   : > { %v2256_v50 = vpop.f32.mrf.mxu2 }
 0x2f9   : > { %v2280_v54 = vadd.f32 %v2279_v33, %v2256_v50  ;;  %v6821_v33 = vor.u32 %v8251_v47, %v6818_v48  ;;  %v6707_v50 = vor.u32 %v8271_v22, %v6704_v57  ;;  %v6786_v47 = vld [vmem:[%s12149_s11 + $0x18] sm:$0xf0]  ;;  %v8287_v48 = vld [vmem:[%s12149_s11 + $0x174] sm:$0xf] }
 0x2fa   : > { %v2185_v1 = vpop.f32.mrf.mxu0  ;;  %v6789_v22 = vor.u32 %v8243_v44, %v6786_v47  ;;  %v6840_v44 = vld [vmem:[%s12149_s11 + $0x80] sm:$0xf]  ;;  %v8258_v47 = vld [vmem:[%s12149_s11 + $0x84] sm:$0xf0] }
 0x2fb   : > { %v2282_v0 = vpop.f32.mrf.mxu3  ;;  %v2209_v12 = vadd.f32 %v2208_v16, %v2185_v1  ;;  %v2285_v13 = vmax.f32 %v2206_v7, %v2280_v54  ;;  %v8288_v1 = vld [vmem:[%s12149_s11 + $0x174] sm:$0xf0]  ;;  %v6711_v16 = vor.u32 %v8274_v55, %v6710_v49  ;;  %v8269_v7 = vld [vmem:[%s12149_s11 + $0xe4] sm:$0xf]  ;;  %v6946_v49 = vld [vmem:[%s12149_s11 + $0x1e0] sm:$0xf] }
 0x2fc   : > { %v6767_v54 = vor.u32 %v8288_v1, %v6766_v59  ;;  %v6678_v59 = vld [vmem:[%s12149_s11 + $0xc0] sm:$0xf]  ;;  %v8266_v1 = vld [vmem:[%s12149_s11 + $0xc4] sm:$0xf0] }
 0x2fd   : > { %2854 = vmatpush.bf16.msra.mxu3 %v6711_v16  ;;  %v6679_v16 = vor.u32 %v8266_v1, %v6678_v59  ;;  %v8294_v59 = vld [vmem:[%s12149_s11 + $0x1a4] sm:$0xf0] }
 0x2fe   : > { %2869 = vmatpush.bf16.msra.mxu2 %v6767_v54  ;;  %v6864_v54 = vld [vmem:[%s12149_s11 + $0xb0] sm:$0xf] }
 0x300   : > { %v2259_v4 = vpop.f32.mrf.mxu2 }
 0x301   : > { %v2283_v32 = vadd.f32 %v2282_v0, %v2259_v4  ;;  %v8249_v0 = vld [vmem:[%s12149_s11 + $0x44] sm:$0xf]  ;;  %v6810_v4 = vld [vmem:[%s12149_s11 + $0x48] sm:$0xf0] }
 0x303   : > { %v2286_v14 = vmax.f32 %v2209_v12, %v2283_v32  ;;  %v6813_v12 = vor.u32 %v8249_v0, %v6810_v4  ;;  %v6696_v32 = vld [vmem:[%s12149_s11 + $0xe8] sm:$0xf0]  ;;  %v8264_v0 = vld [vmem:[%s12149_s11 + $0xb4] sm:$0xf0]  ;;  %v8241_v4 = vld [vmem:[%s12149_s11 + $0x4] sm:$0xf] }
 0x305   : > { %v2287_v60 = vpack.c.bf16 %v2286_v14, %v2285_v13  ;;  %v6699_v13 = vor.u32 %v8269_v7, %v6696_v32  ;;  %v6702_v14 = vld [vmem:[%s12149_s11 + $0xf0] sm:$0xf]  ;;  %v6865_v7 = vor.u32 %v8264_v0, %v6864_v54  ;;  %v8285_v32 = vld [vmem:[%s12149_s11 + $0x164] sm:$0xf]  ;;  %v6964_v54 = vld [vmem:[%s12149_s11 + $0x208] sm:$0xf0] }
 0x307   : > { %6578 = vmatmul.msk.bf16.vlgmr.msrb.gmra.mxu3 %vm1393_vm3, %v2287_v60  ;;  %6579 = vmatmul.msk.bf16.vlgmr.msrb.gmra.mxu2 %vm1393_vm3, %v2287_v60  ;;  %v2320_v61 = vshll.u32 %v2287_v60, 16  ;;  %v2318_v9 = vshrl.u32 %v2287_v60, 16  ;;  %v2541_v24 = vrot.slane %v2287_v60, 1  ;;  %v8272_v60 = vld [vmem:[%s12149_s11 + $0xf4] sm:$0xf0] }
 0x309   : > { %v2322_v56 = vrot.slane %v2320_v61, 1  ;;  %v6703_v61 = vor.u32 %v8272_v60, %v6702_v14 }
 0x30b   : > { %v2323_v10 = vor.u32 %v2322_v56, %v2318_v9  ;;  %v6759_v9 = vor.u32 %v8286_v5, %v6758_v18  ;;  %v8247_v56 = vld [vmem:[%s12149_s11 + $0x34] sm:$0xf]  ;;  %2855 = vmatpush.bf16.msra.mxu3 %v6703_v61  ;;  %v6938_v61 = vld [vmem:[%s12149_s11 + $0x1d0] sm:$0xf]  ;;  %v8300_v18 = vld [vmem:[%s12149_s11 + $0x1d4] sm:$0xf0] }
 0x30d   : > { %6520 = vmatmul.msk.bf16.vlgmr.msra.gmra.mxu0 %vm1393_vm3, %v2323_v10  ;;  %6521 = vmatmul.msk.bf16.vlgmr.msra.gmra.mxu1 %vm1393_vm3, %v2323_v10 }
 0x30e   : > { %2879 = vmatpush.bf16.msra.mxu0 %v6739_v53  ;;  %3057 = vmatpush.bf16.msra.mxu1 %v6837_v31  ;;  %v6802_v53 = vld [vmem:[%s12149_s11 + $0x38] sm:$0xf0]  ;;  %v6751_v31 = vor.u32 %v8284_v30, %v6750_v29  ;;  %v6930_v30 = vld [vmem:[%s12149_s11 + $0x1c0] sm:$0xf] }
 0x30f   : > { %v6805_v10 = vor.u32 %v8247_v56, %v6802_v53  ;;  %2870 = vmatpush.bf16.msra.mxu2 %v6759_v9  ;;  %v6939_v56 = vor.u32 %v8300_v18, %v6938_v61  ;;  %v6856_v53 = vld [vmem:[%s12149_s11 + $0xa0] sm:$0xf] }
 0x310   : > { %v6898_v18 = vld [vmem:[%s12149_s11 + $0x180] sm:$0xf] }
 0x312   : > { %2880 = vmatpush.bf16.msra.mxu0 %v6731_v6  ;;  %3058 = vmatpush.bf16.msra.mxu1 %v6829_v39  ;;  %v6691_v6 = vor.u32 %v8267_v20, %v6688_v17  ;;  %v6686_v39 = vld [vmem:[%s12149_s11 + $0xd0] sm:$0xf]  ;;  %v8311_v20 = vld [vmem:[%s12149_s11 + $0x234] sm:$0xf] }
 0x313   : > { %2871 = vmatpush.bf16.msra.mxu2 %v6751_v31  ;;  %v6687_v40 = vor.u32 %v8268_v23, %v6686_v39  ;;  %v6848_v31 = vld [vmem:[%s12149_s11 + $0x90] sm:$0xf] }
 0x316   : > { %2881 = vmatpush.bf16.msra.mxu0 %v6723_v37  ;;  %3059 = vmatpush.bf16.msra.mxu1 %v6821_v33  ;;  %v6797_v37 = vor.u32 %v8245_v21, %v6794_v34  ;;  %v6768_v33 = vld [vmem:[%s12149_s11 + $0x178] sm:$0xf0]  ;;  %v8298_v21 = vld [vmem:[%s12149_s11 + $0x1c4] sm:$0xf0] }
 0x317   : > { %v6771_v57 = vor.u32 %v8287_v48, %v6768_v33  ;;  %v6931_v34 = vor.u32 %v8298_v21, %v6930_v30  ;;  %v8307_v48 = vld [vmem:[%s12149_s11 + $0x214] sm:$0xf]  ;;  %v6972_v33 = vld [vmem:[%s12149_s11 + $0x218] sm:$0xf0] }
 0x31a   : > { %2882 = vmatpush.bf16.msra.mxu0 %v6715_v42  ;;  %3060 = vmatpush.bf16.msra.mxu1 %v6813_v12  ;;  %v6742_v42 = vld [vmem:[%s12149_s11 + $0x140] sm:$0xf]  ;;  %v6778_v12 = vld [vmem:[%s12149_s11 + $0x8] sm:$0xf0] }
 0x31b   : > { %v6743_v46 = vor.u32 %v8282_v43, %v6742_v42  ;;  %v6781_v14 = vor.u32 %v8241_v4, %v6778_v12  ;;  %v6922_v42 = vld [vmem:[%s12149_s11 + $0x1b0] sm:$0xf]  ;;  %v8296_v43 = vld [vmem:[%s12149_s11 + $0x1b4] sm:$0xf0] }
 0x31c   : > { %v6906_v4 = vld [vmem:[%s12149_s11 + $0x190] sm:$0xf] }
 0x31d   : > { %6650 = vmatmul.msk.bf16.vlgmr.msrb.gmra.mxu0 %vm1393_vm3, %v2541_v24  ;;  %6651 = vmatmul.msk.bf16.vlgmr.msrb.gmra.mxu1 %vm1393_vm3, %v2541_v24  ;;  %v6694_v24 = vld [vmem:[%s12149_s11 + $0xe0] sm:$0xf] }
 0x31e   : > { %2883 = vmatpush.bf16.msra.mxu0 %v6707_v50  ;;  %3061 = vmatpush.bf16.msra.mxu1 %v6805_v10  ;;  %v6695_v28 = vor.u32 %v8270_v26, %v6694_v24  ;;  %v8302_v50 = vld [vmem:[%s12149_s11 + $0x1e4] sm:$0xf0]  ;;  %v8283_v24 = vld [vmem:[%s12149_s11 + $0x154] sm:$0xf]  ;;  %v6752_v26 = vld [vmem:[%s12149_s11 + $0x158] sm:$0xf0] }
 0x31f   : > { %2872 = vmatpush.bf16.msra.mxu2 %v6743_v46  ;;  %v6947_v55 = vor.u32 %v8302_v50, %v6946_v49  ;;  %v8262_v10 = vld [vmem:[%s12149_s11 + $0xa4] sm:$0xf0]  ;;  %v6755_v29 = vor.u32 %v8283_v24, %v6752_v26  ;;  %v6923_v46 = vor.u32 %v8296_v43, %v6922_v42  ;;  %v6841_v49 = vor.u32 %v8258_v47, %v6840_v44  ;;  %v6832_v42 = vld [vmem:[%s12149_s11 + $0x70] sm:$0xf]  ;;  %v8256_v43 = vld [vmem:[%s12149_s11 + $0x74] sm:$0xf0] }
 0x320   : > { %2856 = vmatpush.bf16.msra.mxu3 %v6695_v28  ;;  %v6857_v17 = vor.u32 %v8262_v10, %v6856_v53  ;;  %v6975_v50 = vor.u32 %v8307_v48, %v6972_v33  ;;  %v8263_v44 = vld [vmem:[%s12149_s11 + $0xb4] sm:$0xf] }
 0x322   : > { %2884 = vmatpush.bf16.msra.mxu0 %v6699_v13  ;;  %3062 = vmatpush.bf16.msra.mxu1 %v6797_v37  ;;  %v6760_v13 = vld [vmem:[%s12149_s11 + $0x168] sm:$0xf0] }
 0x323   : > { %2897 = vmatpush.bf16.msrb.mxu2 %v6771_v57  ;;  %v6763_v60 = vor.u32 %v8285_v32, %v6760_v13  ;;  %v6980_v37 = vld [vmem:[%s12149_s11 + $0x228] sm:$0xf0] }
 0x324   : > { %2857 = vmatpush.bf16.msra.mxu3 %v6687_v40  ;;  %v6983_v38 = vor.u32 %v8309_v36, %v6980_v37 }
 0x326   : > { %2885 = vmatpush.bf16.msra.mxu0 %v6691_v6  ;;  %3063 = vmatpush.bf16.msra.mxu1 %v6789_v22  ;;  %v6988_v6 = vld [vmem:[%s12149_s11 + $0x238] sm:$0xf0] }
 0x327   : > { %2898 = vmatpush.bf16.msrb.mxu2 %v6763_v60  ;;  %v6991_v28 = vor.u32 %v8311_v20, %v6988_v6 }
 0x328   : > { %2858 = vmatpush.bf16.msra.mxu3 %v6679_v16  ;;  %v8305_v16 = vld [vmem:[%s12149_s11 + $0x204] sm:$0xf] }
 0x329   : > { %v6967_v0 = vor.u32 %v8305_v16, %v6964_v54  ;;  %v8261_v16 = vld [vmem:[%s12149_s11 + $0xa4] sm:$0xf]  ;;  %v6858_v54 = vld [vmem:[%s12149_s11 + $0xa8] sm:$0xf0] }
 0x32a   : > { %2886 = vmatpush.bf16.msra.mxu0 %v6683_v25  ;;  %3064 = vmatpush.bf16.msra.mxu1 %v6781_v14  ;;  %v6849_v25 = vor.u32 %v8260_v35, %v6848_v31  ;;  %v2647_v14 = vld [vmem:[%s12148_s10] sm:$0x3] }
 0x32b   : > { %2899 = vmatpush.bf16.msrb.mxu2 %v6755_v29  ;;  %v2649_v6 = vperm.slane %v2647_v14, 0  ;;  %v2650_v26 = vperm.slane %v2647_v14, 1 }
 0x32c   : > { %3047 = vmatpush.bf16.msrb.mxu3 %v6865_v7  ;;  %v8292_v7 = vld [vmem:[%s12149_s11 + $0x194] sm:$0xf0] }
 0x32d   : > { %v6907_v13 = vor.u32 %v8292_v7, %v6906_v4  ;;  %v6861_v4 = vor.u32 %v8261_v16, %v6858_v54  ;;  %v6816_v7 = vld [vmem:[%s12149_s11 + $0x50] sm:$0xf]  ;;  %v8293_v54 = vld [vmem:[%s12149_s11 + $0x1a4] sm:$0xf] }
 0x32e   : > { %3238 = vmatpush.bf16.msrb.mxu0 %v6955_v63  ;;  %3284 = vmatpush.bf16.msrb.mxu1 %v6991_v28  ;;  %v6744_v63 = vld [vmem:[%s12149_s11 + $0x148] sm:$0xf0] }
 0x32f   : > { %v6747_v39 = vor.u32 %v8281_v27, %v6744_v63 }
 0x330   : > { %3048 = vmatpush.bf16.msrb.mxu3 %v6857_v17 }
 0x331   : > { %2900 = vmatpush.bf16.msrb.mxu2 %v6747_v39 }
 0x332   : > { %3239 = vmatpush.bf16.msrb.mxu0 %v6947_v55  ;;  %3285 = vmatpush.bf16.msrb.mxu1 %v6983_v38  ;;  %v6914_v55 = vld [vmem:[%s12149_s11 + $0x1a0] sm:$0xf] }
 0x333   : > { %v6915_v1 = vor.u32 %v8294_v59, %v6914_v55  ;;  %v6824_v59 = vld [vmem:[%s12149_s11 + $0x60] sm:$0xf] }
 0x334   : > { %3049 = vmatpush.bf16.msrb.mxu3 %v6849_v25 }
 0x336   : > { %3240 = vmatpush.bf16.msrb.mxu0 %v6939_v56  ;;  %3286 = vmatpush.bf16.msrb.mxu1 %v6975_v50  ;;  %v8290_v56 = vld [vmem:[%s12149_s11 + $0x184] sm:$0xf0] }
 0x337   : > { %v6899_v20 = vor.u32 %v8290_v56, %v6898_v18  ;;  %v8250_v18 = vld [vmem:[%s12149_s11 + $0x44] sm:$0xf0]  ;;  %v8257_v56 = vld [vmem:[%s12149_s11 + $0x84] sm:$0xf] }
 0x338   : > { %3050 = vmatpush.bf16.msrb.mxu3 %v6841_v49 }
 0x33a   : > { %3241 = vmatpush.bf16.msrb.mxu0 %v6931_v34  ;;  %3287 = vmatpush.bf16.msrb.mxu1 %v6967_v0 }
 0x33e   : > { %3242 = vmatpush.bf16.msrb.mxu0 %v6923_v46  ;;  %v6866_v46 = vld [vmem:[%s12149_s11 + $0xb8] sm:$0xf0] }
 0x33f   : > { %v6869_v55 = vor.u32 %v8263_v44, %v6866_v46  ;;  %v8297_v44 = vld [vmem:[%s12149_s11 + $0x1c4] sm:$0xf]  ;;  %v6932_v46 = vld [vmem:[%s12149_s11 + $0x1c8] sm:$0xf0] }
 0x342   : > { %3243 = vmatpush.bf16.msrb.mxu0 %v6915_v1  ;;  %v8254_v1 = vld [vmem:[%s12149_s11 + $0x64] sm:$0xf0] }
 0x343   : > { %v6825_v0 = vor.u32 %v8254_v1, %v6824_v59  ;;  %v8310_v59 = vld [vmem:[%s12149_s11 + $0x224] sm:$0xf0] }
 0x346   : > { %3244 = vmatpush.bf16.msrb.mxu0 %v6907_v13  ;;  %v6850_v13 = vld [vmem:[%s12149_s11 + $0x98] sm:$0xf0] }
 0x34a   : > { %3245 = vmatpush.bf16.msrb.mxu0 %v6899_v20 }
 0x38a   : > { %v10340_v5 = vpop.f32.mrf.mxu0  ;;  %v10342_v9 = vpop.f32.mrf.mxu1 }
 0x38b   : > { %v2506_v22 = vpop.f32.mrf.mxu3  ;;  %v2520_v57 = vpop.f32.mrf.mxu2 }
 0x38c   : > { %v2507_v60 = vadd.f32 %v2506_v22, %v10340_v5  ;;  %v2521_v61 = vadd.f32 %v2520_v57, %v10342_v9  ;;  %v6833_v57 = vor.u32 %v8256_v43, %v6832_v42  ;;  %v6776_v42 = vld [vmem:[%s12149_s11] sm:$0xf]  ;;  %v8242_v43 = vld [vmem:[%s12149_s11 + $0x4] sm:$0xf0] }
 0x392   : > { %v2408_v23 = vpop.f32.mrf.mxu0  ;;  %v2422_v40 = vpop.f32.mrf.mxu1 }
 0x393   : > { %v2508_v53 = vpop.f32.mrf.mxu3  ;;  %v2522_v10 = vpop.f32.mrf.mxu2 }
 0x394   : > { %v2509_v28 = vadd.f32 %v2508_v53, %v2408_v23  ;;  %v2523_v5 = vadd.f32 %v2522_v10, %v2422_v40  ;;  %v6842_v53 = vld [vmem:[%s12149_s11 + $0x88] sm:$0xf0] }
 0x39a   : > { %v2624_v12 = vpop.f32.mrf.mxu0  ;;  %v2638_v32 = vpop.f32.mrf.mxu1 }
 0x39b   : > { %v2643_v17 = vadd.f32 %v2624_v12, %v2507_v60  ;;  %v2644_v24 = vadd.f32 %v2638_v32, %v2521_v61  ;;  %v8252_v12 = vld [vmem:[%s12149_s11 + $0x54] sm:$0xf0]  ;;  %v8259_v32 = vld [vmem:[%s12149_s11 + $0x94] sm:$0xf]  ;;  %v6808_v61 = vld [vmem:[%s12149_s11 + $0x40] sm:$0xf] }
 0x39c   : > { %v6817_v14 = vor.u32 %v8252_v12, %v6816_v7  ;;  %v6853_v60 = vor.u32 %v8259_v32, %v6850_v13  ;;  %v6809_v20 = vor.u32 %v8250_v18, %v6808_v61  ;;  %v8308_v7 = vld [vmem:[%s12149_s11 + $0x214] sm:$0xf0]  ;;  %v8291_v13 = vld [vmem:[%s12149_s11 + $0x194] sm:$0xf]  ;;  %v8306_v61 = vld [vmem:[%s12149_s11 + $0x204] sm:$0xf0] }
 0x39d   : > { %v2653_v30 = vadd.f32 %v2649_v6, %v2643_v17  ;;  %v2654_v21 = vadd.f32 %v2650_v26, %v2644_v24  ;;  %v6845_v17 = vor.u32 %v8257_v56, %v6842_v53  ;;  %v8248_v24 = vld [vmem:[%s12149_s11 + $0x34] sm:$0xf0]  ;;  %v8289_v53 = vld [vmem:[%s12149_s11 + $0x184] sm:$0xf] }
 0x39f   : > { %v2657_v37 = vmax.f32 %v2653_v30, 0.0  ;;  %v2658_v25 = vmax.f32 %v2654_v21, 0.0  ;;  %v8246_v30 = vld [vmem:[%s12149_s11 + $0x24] sm:$0xf0] }
 0x3a2   : > { %v2626_v9 = vpop.f32.mrf.mxu0  ;;  %v2640_v29 = vpop.f32.mrf.mxu1 }
 0x3a3   : > { %v2645_v31 = vadd.f32 %v2626_v9, %v2509_v28  ;;  %v2646_v34 = vadd.f32 %v2640_v29, %v2523_v5  ;;  %v6956_v28 = vld [vmem:[%s12149_s11 + $0x1f8] sm:$0xf0]  ;;  %v6792_v29 = vld [vmem:[%s12149_s11 + $0x20] sm:$0xf] }
 0x3a5   : > { %v2655_v35 = vadd.f32 %v2649_v6, %v2645_v31  ;;  %v2656_v36 = vadd.f32 %v2650_v26, %v2646_v34  ;;  %v6800_v6 = vld [vmem:[%s12149_s11 + $0x30] sm:$0xf]  ;;  %v8303_v26 = vld [vmem:[%s12149_s11 + $0x1f4] sm:$0xf]  ;;  %v8301_v31 = vld [vmem:[%s12149_s11 + $0x1e4] sm:$0xf] }
 0x3a6   : > { %v6801_v5 = vor.u32 %v8248_v24, %v6800_v6  ;;  %v6959_v9 = vor.u32 %v8303_v26, %v6956_v28  ;;  %v6948_v34 = vld [vmem:[%s12149_s11 + $0x1e8] sm:$0xf0]  ;;  %v8331_v26 = vld [vmem:[%s12151_s13 + $0x94] sm:$0xf]  ;;  %v7070_v28 = vld [vmem:[%s12151_s13 + $0x98] sm:$0xf0] }
 0x3a7   : > { %v2659_v38 = vmax.f32 %v2655_v35, 0.0  ;;  %v2660_v27 = vmax.f32 %v2656_v36, 0.0  ;;  %v6793_v35 = vor.u32 %v8246_v30, %v6792_v29  ;;  %v6951_v36 = vor.u32 %v8301_v31, %v6948_v34  ;;  %v7054_v29 = vld [vmem:[%s12151_s13 + $0x78] sm:$0xf0]  ;;  %v8329_v30 = vld [vmem:[%s12151_s13 + $0x84] sm:$0xf] }
 0x3a9   : > { %v10433_v63 = vpack.c.bf16 %v2659_v38, %v2657_v37  ;;  %v10435_v39 = vpack.c.bf16 %v2660_v27, %v2658_v25  ;;  %v6784_v37 = vld [vmem:[%s12149_s11 + $0x10] sm:$0xf]  ;;  %v8244_v25 = vld [vmem:[%s12149_s11 + $0x14] sm:$0xf0]  ;;  %v8299_v38 = vld [vmem:[%s12149_s11 + $0x1d4] sm:$0xf] }
 0x3aa   : > { %v6940_v27 = vld [vmem:[%s12149_s11 + $0x1d8] sm:$0xf0] }
 0x3ab   : > { %v2722_v23 = vshll.u32 %v10435_v39, 16  ;;  %3065 = vmatmul.bf16.vlgmr.msra.gmra.mxu1 %v10433_v63  ;;  %v2715_v40 = vshll.u32 %v10433_v63, 16  ;;  %v2720_v47 = vshrl.u32 %v10435_v39, 16  ;;  %v2713_v33 = vshrl.u32 %v10433_v63, 16 }
 0x3ac   : > { %v3113_v10 = vrot.slane %v10435_v39, 1  ;;  %v3112_v21 = vrot.slane %v10433_v63, 1 }
 0x3ad   : > { %v2724_v48 = vrot.slane %v2722_v23, 1  ;;  %v2717_v22 = vrot.slane %v2715_v40, 1  ;;  %v6785_v23 = vor.u32 %v8244_v25, %v6784_v37  ;;  %v6943_v40 = vor.u32 %v8299_v38, %v6940_v27  ;;  %v7044_v25 = vld [vmem:[%s12151_s13 + $0x60] sm:$0xf]  ;;  %v8326_v38 = vld [vmem:[%s12151_s13 + $0x64] sm:$0xf0] }
 0x3ae   : > { %v8325_v27 = vld [vmem:[%s12151_s13 + $0x64] sm:$0xf] }
 0x3af   : > { %v2718_v49 = vor.u32 %v2717_v22, %v2713_v33  ;;  %v2725_v50 = vor.u32 %v2724_v48, %v2720_v47  ;;  %v6986_v47 = vld [vmem:[%s12149_s11 + $0x230] sm:$0xf]  ;;  %v8312_v48 = vld [vmem:[%s12149_s11 + $0x234] sm:$0xf0]  ;;  %v6777_v33 = vor.u32 %v8242_v43, %v6776_v42  ;;  %v6935_v22 = vor.u32 %v8297_v44, %v6932_v46  ;;  %v7046_v43 = vld [vmem:[%s12151_s13 + $0x68] sm:$0xf0] }
 0x3b0   : > { %v7045_v42 = vor.u32 %v8326_v38, %v7044_v25  ;;  %v7049_v44 = vor.u32 %v8325_v27, %v7046_v43  ;;  %v8345_v46 = vld [vmem:[%s12151_s13 + $0x104] sm:$0xf]  ;;  %v8318_v25 = vld [vmem:[%s12151_s13 + $0x24] sm:$0xf0] }
 0x3b1   : > { %2859 = vmatmul.bf16.vlgmr.msra.gmra.mxu3 %v2718_v49  ;;  %6772 = vmatmul.msk.bf16.vlgmr.msra.gmra.mxu2 %vm2847_vm9, %v2725_v50  ;;  %v8317_v38 = vld [vmem:[%s12151_s13 + $0x24] sm:$0xf] }
 0x3b2   : > { %2887 = vmatmul.bf16.vlgmr.msra.gmra.mxu0 %v2718_v49  ;;  %3029 = vmatpush.bf16.msra.mxu2 %v6833_v57  ;;  %v6987_v57 = vor.u32 %v8312_v48, %v6986_v47  ;;  %v8295_v49 = vld [vmem:[%s12149_s11 + $0x1b4] sm:$0xf]  ;;  %v7148_v47 = vld [vmem:[%s12151_s13 + $0x108] sm:$0xf0] }
 0x3b3   : > { %3075 = vmatpush.bf16.msra.mxu3 %v6869_v55  ;;  %v6978_v55 = vld [vmem:[%s12149_s11 + $0x220] sm:$0xf]  ;;  %v7151_v48 = vor.u32 %v8345_v46, %v7148_v47  ;;  %v8346_v47 = vld [vmem:[%s12151_s13 + $0x104] sm:$0xf0] }
 0x3b4   : > { %v6979_v16 = vor.u32 %v8310_v59, %v6978_v55  ;;  %v7068_v55 = vld [vmem:[%s12151_s13 + $0x90] sm:$0xf]  ;;  %v8332_v59 = vld [vmem:[%s12151_s13 + $0x94] sm:$0xf0]  ;;  %v7146_v46 = vld [vmem:[%s12151_s13 + $0x100] sm:$0xf] }
 0x3b6   : > { %3030 = vmatpush.bf16.msra.mxu2 %v6825_v0  ;;  %v6916_v0 = vld [vmem:[%s12149_s11 + $0x1a8] sm:$0xf0] }
 0x3b7   : > { %3076 = vmatpush.bf16.msra.mxu3 %v6861_v4  ;;  %v6970_v4 = vld [vmem:[%s12149_s11 + $0x210] sm:$0xf]  ;;  %v6919_v12 = vor.u32 %v8293_v54, %v6916_v0  ;;  %v8343_v54 = vld [vmem:[%s12151_s13 + $0xf4] sm:$0xf]  ;;  %v7140_v0 = vld [vmem:[%s12151_s13 + $0xf8] sm:$0xf0] }
 0x3b8   : > { %v6971_v32 = vor.u32 %v8308_v7, %v6970_v4  ;;  %v7143_v4 = vor.u32 %v8343_v54, %v7140_v0  ;;  %v7028_v7 = vld [vmem:[%s12151_s13 + $0x40] sm:$0xf]  ;;  %v7006_v0 = vld [vmem:[%s12151_s13 + $0x18] sm:$0xf0] }
 0x3ba   : > { %3031 = vmatpush.bf16.msra.mxu2 %v6817_v14  ;;  %v6908_v14 = vld [vmem:[%s12149_s11 + $0x198] sm:$0xf0] }
 0x3bb   : > { %6993 = vmatmul.msk.bf16.vlgmr.msrb.gmra.mxu1 %vm2847_vm9, %v3113_v10  ;;  %3077 = vmatpush.bf16.msra.mxu3 %v6853_v60  ;;  %v6962_v60 = vld [vmem:[%s12149_s11 + $0x200] sm:$0xf]  ;;  %v6911_v18 = vor.u32 %v8291_v13, %v6908_v14 }
 0x3bc   : > { %v6963_v56 = vor.u32 %v8306_v61, %v6962_v60  ;;  %v7030_v61 = vld [vmem:[%s12151_s13 + $0x48] sm:$0xf0] }
 0x3be   : > { %3032 = vmatpush.bf16.msra.mxu2 %v6809_v20  ;;  %v6900_v20 = vld [vmem:[%s12149_s11 + $0x188] sm:$0xf0] }
 0x3bf   : > { %3078 = vmatpush.bf16.msra.mxu3 %v6845_v17  ;;  %v6903_v17 = vor.u32 %v8289_v53, %v6900_v20  ;;  %v8330_v53 = vld [vmem:[%s12151_s13 + $0x84] sm:$0xf0]  ;;  %v8341_v20 = vld [vmem:[%s12151_s13 + $0xe4] sm:$0xf] }
 0x3c1   : > { %6773 = vmatmul.msk.bf16.vlgmr.msrb.gmra.mxu2 %vm2847_vm9, %v2725_v50  ;;  %6870 = vmatmul.msk.bf16.vlgmr.msrb.gmra.mxu3 %vm2847_vm9, %v10435_v39  ;;  %v6924_v50 = vld [vmem:[%s12149_s11 + $0x1b8] sm:$0xf0] }
 0x3c2   : > { %3246 = vmatmul.bf16.vlgmr.msrb.gmra.mxu0 %v3112_v21  ;;  %3033 = vmatpush.bf16.msra.mxu2 %v6801_v5  ;;  %v6927_v1 = vor.u32 %v8295_v49, %v6924_v50  ;;  %v7073_v5 = vor.u32 %v8331_v26, %v7070_v28  ;;  %v7038_v50 = vld [vmem:[%s12151_s13 + $0x58] sm:$0xf0]  ;;  %v7132_v26 = vld [vmem:[%s12151_s13 + $0xe8] sm:$0xf0]  ;;  %v7020_v28 = vld [vmem:[%s12151_s13 + $0x30] sm:$0xf] }
 0x3c3   : > { %3266 = vmatpush.bf16.msrb.mxu3 %v6959_v9 }
 0x3c6   : > { %3034 = vmatpush.bf16.msra.mxu2 %v6793_v35  ;;  %v8347_v35 = vld [vmem:[%s12151_s13 + $0x114] sm:$0xf] }
 0x3c7   : > { %3267 = vmatpush.bf16.msrb.mxu3 %v6951_v36  ;;  %v7156_v36 = vld [vmem:[%s12151_s13 + $0x118] sm:$0xf0] }
 0x3c8   : > { %v7159_v37 = vor.u32 %v8347_v35, %v7156_v36 }
 0x3ca   : > { %3035 = vmatpush.bf16.msra.mxu2 %v6785_v23 }
 0x3cb   : > { %3268 = vmatpush.bf16.msrb.mxu3 %v6943_v40 }
 0x3ce   : > { %3036 = vmatpush.bf16.msra.mxu2 %v6777_v33  ;;  %v7036_v33 = vld [vmem:[%s12151_s13 + $0x50] sm:$0xf] }
 0x3cf   : > { %3269 = vmatpush.bf16.msrb.mxu3 %v6935_v22  ;;  %v8324_v22 = vld [vmem:[%s12151_s13 + $0x54] sm:$0xf0] }
 0x3d0   : > { %v7037_v49 = vor.u32 %v8324_v22, %v7036_v33  ;;  %v7147_v33 = vor.u32 %v8346_v47, %v7146_v46  ;;  %v7106_v47 = vld [vmem:[%s12151_s13 + $0xb0] sm:$0xf] }
 0x3d1   : > { %3037 = vmatmul.bf16.vlgmr.msra.gmra.mxu2 %v10433_v63  ;;  %6871 = vmatmul.msk.bf16.vlgmr.msra.gmra.mxu3 %vm2847_vm9, %v10435_v39  ;;  %v7052_v39 = vld [vmem:[%s12151_s13 + $0x70] sm:$0xf]  ;;  %v8328_v63 = vld [vmem:[%s12151_s13 + $0x74] sm:$0xf0] }
 0x3d2   : > { %3256 = vmatpush.bf16.msrb.mxu2 %v6987_v57  ;;  %v7053_v9 = vor.u32 %v8328_v63, %v7052_v39  ;;  %v8323_v57 = vld [vmem:[%s12151_s13 + $0x54] sm:$0xf]  ;;  %v8320_v39 = vld [vmem:[%s12151_s13 + $0x34] sm:$0xf0] }
 0x3d3   : > { %3270 = vmatpush.bf16.msrb.mxu3 %v6927_v1  ;;  %v7041_v1 = vor.u32 %v8323_v57, %v7038_v50  ;;  %v8319_v63 = vld [vmem:[%s12151_s13 + $0x34] sm:$0xf]  ;;  %v8337_v57 = vld [vmem:[%s12151_s13 + $0xc4] sm:$0xf] }
 0x3d6   : > { %3257 = vmatpush.bf16.msrb.mxu2 %v6979_v16  ;;  %v7069_v16 = vor.u32 %v8332_v59, %v7068_v55  ;;  %v7004_v59 = vld [vmem:[%s12151_s13 + $0x10] sm:$0xf] }
 0x3d7   : > { %3271 = vmatpush.bf16.msrb.mxu3 %v6919_v12  ;;  %v8322_v12 = vld [vmem:[%s12151_s13 + $0x44] sm:$0xf0] }
 0x3d8   : > { %3458 = vmatpush.bf16.msra.mxu0 %v7069_v16  ;;  %v7029_v60 = vor.u32 %v8322_v12, %v7028_v7  ;;  %v8315_v16 = vld [vmem:[%s12151_s13 + $0x14] sm:$0xf]  ;;  %v8344_v7 = vld [vmem:[%s12151_s13 + $0xf4] sm:$0xf0] }
 0x3d9   : > { %v7009_v12 = vor.u32 %v8315_v16, %v7006_v0  ;;  %v8334_v0 = vld [vmem:[%s12151_s13 + $0xa4] sm:$0xf0] }
 0x3da   : > { %3258 = vmatpush.bf16.msrb.mxu2 %v6971_v32  ;;  %v8321_v32 = vld [vmem:[%s12151_s13 + $0x44] sm:$0xf] }
 0x3db   : > { %3272 = vmatpush.bf16.msrb.mxu3 %v6911_v18  ;;  %v7033_v18 = vor.u32 %v8321_v32, %v7030_v61  ;;  %v7108_v61 = vld [vmem:[%s12151_s13 + $0xb8] sm:$0xf0] }
 0x3de   : > { %3259 = vmatpush.bf16.msrb.mxu2 %v6963_v56  ;;  %v7060_v56 = vld [vmem:[%s12151_s13 + $0x80] sm:$0xf] }
 0x3df   : > { %3273 = vmatpush.bf16.msrb.mxu3 %v6903_v17  ;;  %v7061_v17 = vor.u32 %v8330_v53, %v7060_v56  ;;  %v6996_v56 = vld [vmem:[%s12151_s13] sm:$0xf]  ;;  %v8314_v53 = vld [vmem:[%s12151_s13 + $0x4] sm:$0xf0] }
 0x3e1   : > { %6992 = vmatmul.msk.bf16.vlgmr.msrb.gmra.mxu2 %vm2847_vm9, %v3113_v10  ;;  %v8327_v10 = vld [vmem:[%s12151_s13 + $0x74] sm:$0xf]  ;;  %3459 = vmatpush.bf16.msra.mxu0 %v7061_v17 }
 0x3e2   : > { %3274 = vmatmul.bf16.vlgmr.msrb.gmra.mxu3 %v3112_v21  ;;  %v7062_v21 = vld [vmem:[%s12151_s13 + $0x88] sm:$0xf0]  ;;  %v7057_v31 = vor.u32 %v8327_v10, %v7054_v29  ;;  %3438 = vmatpush.bf16.msra.mxu2 %v7053_v9  ;;  %v7021_v10 = vor.u32 %v8320_v39, %v7020_v28  ;;  %v7022_v9 = vld [vmem:[%s12151_s13 + $0x38] sm:$0xf0]  ;;  %v7154_v29 = vld [vmem:[%s12151_s13 + $0x110] sm:$0xf]  ;;  %v6997_v28 = vor.u32 %v8314_v53, %v6996_v56 }
 0x3e3   : > { %3486 = vmatpush.bf16.msra.mxu3 %v7073_v5  ;;  %v7065_v34 = vor.u32 %v8329_v30, %v7062_v21  ;;  %v7135_v5 = vor.u32 %v8341_v20, %v7132_v26  ;;  %v7025_v30 = vor.u32 %v8319_v63, %v7022_v9  ;;  %v8348_v21 = vld [vmem:[%s12151_s13 + $0x114] sm:$0xf0]  ;;  %v8313_v20 = vld [vmem:[%s12151_s13 + $0x4] sm:$0xf]  ;;  %v7130_v39 = vld [vmem:[%s12151_s13 + $0xe0] sm:$0xf] }
 0x3e4   : > { %3466 = vmatpush.bf16.msra.mxu1 %v7057_v31  ;;  %v8339_v31 = vld [vmem:[%s12151_s13 + $0xd4] sm:$0xf]  ;;  %v7155_v35 = vor.u32 %v8348_v21, %v7154_v29  ;;  %v8342_v63 = vld [vmem:[%s12151_s13 + $0xe4] sm:$0xf0]  ;;  %v8333_v29 = vld [vmem:[%s12151_s13 + $0xa4] sm:$0xf] }
 0x3e5   : > { %v7131_v9 = vor.u32 %v8342_v63, %v7130_v39 }
 0x3e6   : > { %3439 = vmatpush.bf16.msra.mxu2 %v7045_v42  ;;  %3615 = vmatpush.bf16.msrb.mxu0 %v7155_v35 }
 0x3e7   : > { %3487 = vmatpush.bf16.msra.mxu3 %v7065_v34  ;;  %v7124_v34 = vld [vmem:[%s12151_s13 + $0xd8] sm:$0xf0] }
 0x3e8   : > { %3467 = vmatpush.bf16.msra.mxu1 %v7049_v44  ;;  %v7127_v36 = vor.u32 %v8339_v31, %v7124_v34  ;;  %v7014_v44 = vld [vmem:[%s12151_s13 + $0x28] sm:$0xf0]  ;;  %v7122_v31 = vld [vmem:[%s12151_s13 + $0xd0] sm:$0xf]  ;;  %v8340_v34 = vld [vmem:[%s12151_s13 + $0xd4] sm:$0xf0] }
 0x3ea   : > { %3440 = vmatpush.bf16.msra.mxu2 %v7037_v49  ;;  %v7116_v49 = vld [vmem:[%s12151_s13 + $0xc8] sm:$0xf0]  ;;  %3616 = vmatpush.bf16.msrb.mxu0 %v7147_v33  ;;  %v7170_v33 = vld [vmem:[%s12151_s13 + $0x130] sm:$0xf] }
 0x3eb   : > { %3643 = vmatpush.bf16.msrb.mxu3 %v7159_v37  ;;  %v7012_v37 = vld [vmem:[%s12151_s13 + $0x20] sm:$0xf]  ;;  %v7119_v55 = vor.u32 %v8337_v57, %v7116_v49  ;;  %v8352_v57 = vld [vmem:[%s12151_s13 + $0x134] sm:$0xf0]  ;;  %v8351_v49 = vld [vmem:[%s12151_s13 + $0x134] sm:$0xf] }
 0x3ec   : > { %3468 = vmatpush.bf16.msra.mxu1 %v7041_v1  ;;  %v7013_v43 = vor.u32 %v8318_v25, %v7012_v37  ;;  %v8316_v1 = vld [vmem:[%s12151_s13 + $0x14] sm:$0xf0]  ;;  %v7123_v37 = vor.u32 %v8340_v34, %v7122_v31  ;;  %v7114_v25 = vld [vmem:[%s12151_s13 + $0xc0] sm:$0xf] }
 0x3ed   : > { %v7005_v54 = vor.u32 %v8316_v1, %v7004_v59  ;;  %v7171_v59 = vor.u32 %v8352_v57, %v7170_v33 }
 0x3ee   : > { %3441 = vmatpush.bf16.msra.mxu2 %v7029_v60  ;;  %v8335_v60 = vld [vmem:[%s12151_s13 + $0xb4] sm:$0xf] }
 0x3ef   : > { %3644 = vmatpush.bf16.msrb.mxu3 %v7151_v48  ;;  %v7017_v48 = vor.u32 %v8317_v38, %v7014_v44  ;;  %v8338_v38 = vld [vmem:[%s12151_s13 + $0xc4] sm:$0xf0] }
 0x3f0   : > { %3469 = vmatpush.bf16.msra.mxu1 %v7033_v18  ;;  %v7111_v18 = vor.u32 %v8335_v60, %v7108_v61  ;;  %v7115_v46 = vor.u32 %v8338_v38, %v7114_v25  ;;  %v7164_v60 = vld [vmem:[%s12151_s13 + $0x128] sm:$0xf0] }
 0x3f2   : > { %3442 = vmatpush.bf16.msra.mxu2 %v7021_v10 }
 0x3f3   : > { %3645 = vmatpush.bf16.msrb.mxu3 %v7143_v4  ;;  %v7138_v4 = vld [vmem:[%s12151_s13 + $0xf0] sm:$0xf] }
 0x3f4   : > { %3470 = vmatpush.bf16.msra.mxu1 %v7025_v30  ;;  %v7139_v32 = vor.u32 %v8344_v7, %v7138_v4  ;;  %v7100_v30 = vld [vmem:[%s12151_s13 + $0xa8] sm:$0xf0]  ;;  %v7162_v4 = vld [vmem:[%s12151_s13 + $0x120] sm:$0xf] }
 0x3f5   : > { %v7103_v21 = vor.u32 %v8333_v29, %v7100_v30 }
 0x3f6   : > { %3443 = vmatpush.bf16.msra.mxu2 %v7013_v43  ;;  %3617 = vmatpush.bf16.msrb.mxu0 %v7139_v32  ;;  %v8349_v32 = vld [vmem:[%s12151_s13 + $0x124] sm:$0xf] }
 0x3f7   : > { %3646 = vmatpush.bf16.msrb.mxu3 %v7135_v5  ;;  %v6998_v5 = vld [vmem:[%s12151_s13 + $0x8] sm:$0xf0]  ;;  %v7167_v53 = vor.u32 %v8349_v32, %v7164_v60  ;;  %v8384_v32 = vld [vmem:[%s12156_s18 + $0x54] sm:$0xf0] }
 0x3f8   : > { %3471 = vmatpush.bf16.msra.mxu1 %v7017_v48  ;;  %v7001_v10 = vor.u32 %v8313_v20, %v6998_v5  ;;  %v8336_v48 = vld [vmem:[%s12151_s13 + $0xb4] sm:$0xf0] }
 0x3f9   : > { %v7107_v16 = vor.u32 %v8336_v48, %v7106_v47 }
 0x3fa   : > { %3444 = vmatpush.bf16.msra.mxu2 %v7005_v54  ;;  %3618 = vmatpush.bf16.msrb.mxu0 %v7131_v9  ;;  %v7098_v54 = vld [vmem:[%s12151_s13 + $0xa0] sm:$0xf] }
 0x3fb   : > { %3647 = vmatpush.bf16.msrb.mxu3 %v7127_v36  ;;  %v7099_v63 = vor.u32 %v8334_v0, %v7098_v54  ;;  %v7244_v0 = vld [vmem:[%s12156_s18 + $0x60] sm:$0xf] }
 0x3fc   : > { %3472 = vmatpush.bf16.msra.mxu1 %v7009_v12  ;;  %v8350_v12 = vld [vmem:[%s12151_s13 + $0x124] sm:$0xf0] }
 0x3fd   : > { %v7163_v56 = vor.u32 %v8350_v12, %v7162_v4  ;;  %v8386_v4 = vld [vmem:[%s12156_s18 + $0x64] sm:$0xf0]  ;;  %v7236_v12 = vld [vmem:[%s12156_s18 + $0x50] sm:$0xf] }
 0x3fe   : > { %3445 = vmatpush.bf16.msra.mxu2 %v6997_v28  ;;  %3619 = vmatpush.bf16.msrb.mxu0 %v7123_v37  ;;  %v7237_v60 = vor.u32 %v8384_v32, %v7236_v12  ;;  %v7222_v32 = vld [vmem:[%s12156_s18 + $0x38] sm:$0xf0] }
 0x3ff   : > { %3648 = vmatpush.bf16.msrb.mxu3 %v7119_v55  ;;  %v7172_v55 = vld [vmem:[%s12151_s13 + $0x138] sm:$0xf0] }
 0x400   : > { %3473 = vmatpush.bf16.msra.mxu1 %v7001_v10  ;;  %v7175_v1 = vor.u32 %v8351_v49, %v7172_v55  ;;  %v8388_v49 = vld [vmem:[%s12156_s18 + $0x74] sm:$0xf0] }
 0x402   : > { %3620 = vmatpush.bf16.msrb.mxu0 %v7115_v46  ;;  %3635 = vmatpush.bf16.msrb.mxu2 %v7171_v59 }
 0x403   : > { %3649 = vmatpush.bf16.msrb.mxu3 %v7111_v18 }
 0x404   : > { %3663 = vmatpush.bf16.msrb.mxu1 %v7175_v1 }
 0x406   : > { %3621 = vmatpush.bf16.msrb.mxu0 %v7107_v16  ;;  %3636 = vmatpush.bf16.msrb.mxu2 %v7163_v56 }
 0x407   : > { %3650 = vmatpush.bf16.msrb.mxu3 %v7103_v21 }
 0x408   : > { %3664 = vmatpush.bf16.msrb.mxu1 %v7167_v53  ;;  %v7220_v53 = vld [vmem:[%s12156_s18 + $0x30] sm:$0xf] }
 0x40a   : > { %3622 = vmatpush.bf16.msrb.mxu0 %v7099_v63 }
 0x428   : > { %v10767_v50 = vpop.f32.mrf.mxu1 }
 0x42f   : > { %v10759_v22 = vpop.f32.mrf.mxu0 }
 0x430   : > { %v3068_v36 = vpop.f32.mrf.mxu1 }
 0x434   : > { %v10605_v6 = vpop.f32.mrf.mxu3  ;;  %v10607_v24 = vpop.f32.mrf.mxu2 }
 0x435   : > { %v2875_v61 = vadd.f32 %v10607_v24, %v10605_v6  ;;  %v3298_v24 = vld [vmem:[%s12150_s12] sm:$0x3] }
 0x436   : > { %v3300_v31 = vperm.slane %v3298_v24, 0  ;;  %v3301_v37 = vperm.slane %v3298_v24, 1  ;;  %v8374_v24 = vld [vmem:[%s12156_s18 + $0x4] sm:$0xf0] }
 0x437   : > { %v2890_v35 = vpop.f32.mrf.mxu0 }
 0x438   : > { %v3289_v18 = vpop.f32.mrf.mxu1 }
 0x43c   : > { %v10648_v23 = vpop.f32.mrf.mxu3  ;;  %v10650_v40 = vpop.f32.mrf.mxu2 }
 0x43d   : > { %v2877_v10 = vadd.f32 %v10650_v40, %v10648_v23 }
 0x43f   : > { %v3247_v7 = vpop.f32.mrf.mxu0 }
 0x444   : > { %v10694_v13 = vpop.f32.mrf.mxu2  ;;  %v10696_v14 = vpop.f32.mrf.mxu3 }
 0x445   : > { %v2903_v20 = vadd.f32 %v10694_v13, %v10759_v22 }
 0x447   : > { %v3067_v6 = vadd.f32 %v10767_v50, %v2903_v20  ;;  %v3249_v34 = vpop.f32.mrf.mxu0  ;;  %v8380_v20 = vld [vmem:[%s12156_s18 + $0x34] sm:$0xf0] }
 0x44c   : > { %v10746_v27 = vpop.f32.mrf.mxu2  ;;  %v10748_v42 = vpop.f32.mrf.mxu3 }
 0x44d   : > { %v2905_v29 = vadd.f32 %v10746_v27, %v2890_v35  ;;  %v3291_v35 = vpop.f32.mrf.mxu1 }
 0x44f   : > { %v3069_v23 = vadd.f32 %v3068_v36, %v2905_v29  ;;  %v7252_v36 = vld [vmem:[%s12156_s18 + $0x70] sm:$0xf] }
 0x450   : > { %v7253_v16 = vor.u32 %v8388_v49, %v7252_v36 }
 0x454   : > { %v3038_v17 = vpop.f32.mrf.mxu2  ;;  %v10802_v26 = vpop.f32.mrf.mxu3 }
 0x455   : > { %v3039_v5 = vadd.f32 %v3038_v17, %v2875_v61  ;;  %v3081_v30 = vadd.f32 %v10802_v26, %v3067_v6  ;;  %v7228_v61 = vld [vmem:[%s12156_s18 + $0x40] sm:$0xf] }
 0x456   : > { %v7196_v6 = vld [vmem:[%s12156_s18] sm:$0xf] }
 0x457   : > { %v3053_v22 = vadd.f32 %v10696_v14, %v3039_v5  ;;  %v7212_v5 = vld [vmem:[%s12156_s18 + $0x20] sm:$0xf] }
 0x45c   : > { %v3040_v43 = vpop.f32.mrf.mxu2  ;;  %v3082_v44 = vpop.f32.mrf.mxu3 }
 0x45d   : > { %v3041_v17 = vadd.f32 %v3040_v43, %v2877_v10  ;;  %v3083_v46 = vadd.f32 %v3082_v44, %v3069_v23  ;;  %v7204_v10 = vld [vmem:[%s12156_s18 + $0x10] sm:$0xf] }
 0x45f   : > { %v3055_v50 = vadd.f32 %v10748_v42, %v3041_v17  ;;  %v3886_v17 = vrot.slane %v9619_v19, 2  ;;  %v8387_v19 = vld [vmem:[%s12156_s18 + $0x74] sm:$0xf] }
 0x464   : > { %v3261_v28 = vpop.f32.mrf.mxu2 }
 0x465   : > { %v3275_v39 = vpop.f32.mrf.mxu3  ;;  %v3262_v9 = vadd.f32 %v3261_v28, %v3247_v7  ;;  %v7245_v7 = vor.u32 %v8386_v4, %v7244_v0  ;;  %v7221_v28 = vor.u32 %v8380_v20, %v7220_v53  ;;  %v8379_v0 = vld [vmem:[%s12156_s18 + $0x34] sm:$0xf]  ;;  %v3674_v53 = vld [vmem:[%s12154_s16] sm:$0xff] }
 0x466   : > { %v3290_v13 = vadd.f32 %v3289_v18, %v3275_v39  ;;  %v8382_v18 = vld [vmem:[%s12156_s18 + $0x44] sm:$0xf0]  ;;  %v8399_v20 = vld [vmem:[%s12156_s18 + $0xd4] sm:$0xf] }
 0x467   : > { %v3294_v21 = vadd.f32 %v3262_v9, %v3053_v22  ;;  %v7229_v56 = vor.u32 %v8382_v18, %v7228_v61  ;;  %v8378_v39 = vld [vmem:[%s12156_s18 + $0x24] sm:$0xf0]  ;;  %v8376_v9 = vld [vmem:[%s12156_s18 + $0x14] sm:$0xf0]  ;;  %v10934_v22 = vrot.slane %v9641_v51, 2 }
 0x468   : > { %v3295_v40 = vadd.f32 %v3290_v13, %v3081_v30  ;;  %v7213_v63 = vor.u32 %v8378_v39, %v7212_v5  ;;  %v7205_v29 = vor.u32 %v8376_v9, %v7204_v10  ;;  %v7197_v13 = vor.u32 %v8374_v24, %v7196_v6  ;;  %v8400_v61 = vld [vmem:[%s12156_s18 + $0xd4] sm:$0xf0]  ;;  %v8377_v10 = vld [vmem:[%s12156_s18 + $0x24] sm:$0xf]  ;;  %v7292_v6 = vld [vmem:[%s12156_s18 + $0xc0] sm:$0xf] }
 0x469   : > { %v3304_v48 = vadd.f32 %v3300_v31, %v3294_v21  ;;  %v10939_v30 = vsel %vm3885_vm4, %v3886_v17, %v10934_v22  ;;  %v7225_v39 = vor.u32 %v8379_v0, %v7222_v32  ;;  %v8398_v24 = vld [vmem:[%s12156_s18 + $0xc4] sm:$0xf0]  ;;  %v3676_v0 = vld [vmem:[%s12154_s16 + $0x10] sm:$0xf] }
 0x46a   : > { %v3305_v43 = vadd.f32 %v3301_v37, %v3295_v40  ;;  %v8390_v32 = vld [vmem:[%s12156_s18 + $0x84] sm:$0xf0] }
 0x46b   : > { %v3308_v55 = vmax.f32 %v3304_v48, 0.0  ;;  %v10963_v48 = vld [vmem:[%s12153_s15] sm:$0xff] }
 0x46c   : > { %v3263_v27 = vpop.f32.mrf.mxu2  ;;  %v3309_v59 = vmax.f32 %v3305_v43, 0.0 }
 0x46d   : > { %v3264_v25 = vadd.f32 %v3263_v27, %v3249_v34  ;;  %v3277_v38 = vpop.f32.mrf.mxu3 }
 0x46e   : > { %v3292_v47 = vadd.f32 %v3291_v35, %v3277_v38 }
 0x46f   : > { %v3296_v14 = vadd.f32 %v3264_v25, %v3055_v50 }
 0x470   : > { %v3297_v33 = vadd.f32 %v3292_v47, %v3083_v46  ;;  %v8385_v46 = vld [vmem:[%s12156_s18 + $0x64] sm:$0xf]  ;;  %v7246_v47 = vld [vmem:[%s12156_s18 + $0x68] sm:$0xf0] }
 0x471   : > { %v3306_v57 = vadd.f32 %v3300_v31, %v3296_v14  ;;  %v7249_v43 = vor.u32 %v8385_v46, %v7246_v47  ;;  %v8373_v47 = vld [vmem:[%s12156_s18 + $0x4] sm:$0xf] }
 0x472   : > { %v3307_v26 = vadd.f32 %v3301_v37, %v3297_v33  ;;  %v7254_v37 = vld [vmem:[%s12156_s18 + $0x78] sm:$0xf0] }
 0x473   : > { %v3310_v42 = vmax.f32 %v3306_v57, 0.0  ;;  %v7257_v25 = vor.u32 %v8387_v19, %v7254_v37  ;;  %v8383_v57 = vld [vmem:[%s12156_s18 + $0x54] sm:$0xf]  ;;  %v8397_v19 = vld [vmem:[%s12156_s18 + $0xc4] sm:$0xf] }
 0x474   : > { %v3311_v1 = vmax.f32 %v3307_v26, 0.0  ;;  %v7238_v26 = vld [vmem:[%s12156_s18 + $0x58] sm:$0xf0] }
 0x475   : > { %v3312_v44 = vpack.c.bf16 %v3310_v42, %v3308_v55  ;;  %v7241_v55 = vor.u32 %v8383_v57, %v7238_v26  ;;  %v8381_v42 = vld [vmem:[%s12156_s18 + $0x44] sm:$0xf]  ;;  %v7206_v37 = vld [vmem:[%s12156_s18 + $0x18] sm:$0xf0]  ;;  %v7276_v57 = vld [vmem:[%s12156_s18 + $0xa0] sm:$0xf] }
 0x476   : > { %v3313_v54 = vpack.c.bf16 %v3311_v1, %v3309_v59  ;;  %v7230_v59 = vld [vmem:[%s12156_s18 + $0x48] sm:$0xf0]  ;;  %v8394_v26 = vld [vmem:[%s12156_s18 + $0xa4] sm:$0xf0] }
 0x477   : > { %3446 = vmatmul.bf16.vlgmr.msra.gmra.mxu2 %v3312_v44  ;;  %3474 = vmatmul.bf16.vlgmr.msra.gmra.mxu1 %v3312_v44  ;;  %v10982_v1 = vld [vmem:[%s12153_s15 + $0x8] sm:$0xff] }
 0x478   : > { %7074 = vmatmul.msk.bf16.vlgmr.msra.gmra.mxu0 %vm3434_vm10, %v3313_v54  ;;  %7075 = vmatmul.msk.bf16.vlgmr.msra.gmra.mxu3 %vm3434_vm10, %v3313_v54 }
 0x479   : > { %4040 = vmatpush.bf16.msra.mxu3 %v7253_v16 }
 0x47d   : > { %4041 = vmatpush.bf16.msra.mxu3 %v7245_v7 }
 0x481   : > { %4042 = vmatpush.bf16.msra.mxu3 %v7237_v60  ;;  %v7300_v60 = vld [vmem:[%s12156_s18 + $0xd0] sm:$0xf] }
 0x485   : > { %4043 = vmatpush.bf16.msra.mxu3 %v7229_v56 }
 0x487   : > { %7176 = vmatmul.msk.bf16.vlgmr.msrb.gmra.mxu2 %vm3434_vm10, %v3313_v54  ;;  %7177 = vmatmul.msk.bf16.vlgmr.msrb.gmra.mxu1 %vm3434_vm10, %v3313_v54 }
 0x488   : > { %3623 = vmatmul.bf16.vlgmr.msrb.gmra.mxu0 %v3312_v44  ;;  %3651 = vmatmul.bf16.vlgmr.msrb.gmra.mxu3 %v3312_v44  ;;  %v7233_v44 = vor.u32 %v8381_v42, %v7230_v59  ;;  %v7268_v42 = vld [vmem:[%s12156_s18 + $0x90] sm:$0xf] }
 0x489   : > { %4044 = vmatpush.bf16.msra.mxu3 %v7221_v28  ;;  %v7302_v28 = vld [vmem:[%s12156_s18 + $0xd8] sm:$0xf0] }
 0x48a   : > { %v7305_v17 = vor.u32 %v8399_v20, %v7302_v28  ;;  %v8389_v20 = vld [vmem:[%s12156_s18 + $0x84] sm:$0xf]  ;;  %v7262_v28 = vld [vmem:[%s12156_s18 + $0x88] sm:$0xf0] }
 0x48d   : > { %4045 = vmatpush.bf16.msra.mxu3 %v7213_v63  ;;  %v7301_v63 = vor.u32 %v8400_v61, %v7300_v60  ;;  %v8391_v60 = vld [vmem:[%s12156_s18 + $0x94] sm:$0xf]  ;;  %v7270_v61 = vld [vmem:[%s12156_s18 + $0x98] sm:$0xf0] }
 0x491   : > { %4046 = vmatpush.bf16.msra.mxu3 %v7205_v29  ;;  %v7214_v29 = vld [vmem:[%s12156_s18 + $0x28] sm:$0xf0] }
 0x495   : > { %4047 = vmatpush.bf16.msra.mxu3 %v7197_v13  ;;  %v11025_v13 = vld [vmem:[%s12153_s15 + $0x10] sm:$0xf] }
 0x498   : > { %4048 = vmatmul.bf16.vlgmr.msra.gmra.mxu3 %v10939_v30 }
 0x4a8   : > { %4053 = vmatmul.bf16.gmra.mxu3 %v10934_v22 }
 0x4f4   : > { %v10943_v31 = vpop.f32.mrf.mxu1 }
 0x4f5   : > { %v3461_v21 = vpop.f32.mrf.mxu0 }
 0x4fa   : > { %v3447_v34 = vpop.f32.mrf.mxu2 }
 0x4fb   : > { %v10945_v23 = vpop.f32.mrf.mxu3  ;;  %v3462_v38 = vadd.f32 %v3461_v21, %v3447_v34  ;;  %v7217_v34 = vor.u32 %v8377_v10, %v7214_v29  ;;  %v8366_v29 = vld [vmem:[%s12155_s17 + $0x64] sm:$0xf0] }
 0x4fc   : > { %v3477_v51 = vpop.f32.mrf.mxu1  ;;  %v3490_v21 = vadd.f32 %v10945_v23, %v10943_v31  ;;  %v7294_v31 = vld [vmem:[%s12156_s18 + $0xc8] sm:$0xf0] }
 0x4fd   : > { %v3463_v40 = vpop.f32.mrf.mxu0 }
 0x502   : > { %v3449_v27 = vpop.f32.mrf.mxu2 }
 0x503   : > { %v3464_v35 = vadd.f32 %v3463_v40, %v3449_v27  ;;  %v3491_v50 = vpop.f32.mrf.mxu3  ;;  %v7293_v40 = vor.u32 %v8398_v24, %v7292_v6  ;;  %v7284_v27 = vld [vmem:[%s12156_s18 + $0xb0] sm:$0xf]  ;;  %v8365_v6 = vld [vmem:[%s12155_s17 + $0x64] sm:$0xf] }
 0x504   : > { %v3666_v33 = vpop.f32.mrf.mxu1  ;;  %v3492_v9 = vadd.f32 %v3491_v50, %v3477_v51  ;;  %v8375_v51 = vld [vmem:[%s12156_s18 + $0x14] sm:$0xf]  ;;  %v3675_v50 = vld [vmem:[%s12154_s16 + $0x8] sm:$0xff] }
 0x505   : > { %7186 = vmatpush.msk.msra.mxu1 %vm3687_vm11, %v3464_v35  ;;  %v3624_v14 = vpop.f32.mrf.mxu0  ;;  %v8396_v35 = vld [vmem:[%s12156_s18 + $0xb4] sm:$0xf0] }
 0x506   : > { %v7285_v46 = vor.u32 %v8396_v35, %v7284_v27  ;;  %v7346_v35 = vld [vmem:[%s12155_s17 + $0x48] sm:$0xf0] }
 0x507   : > { %3776 = vmatpush.msra.mxu1 %v3462_v38  ;;  %v7209_v38 = vor.u32 %v8375_v51, %v7206_v37  ;;  %v8361_v37 = vld [vmem:[%s12155_s17 + $0x44] sm:$0xf] }
 0x508   : > { %7187 = vmatmul.msk.f32.vlgmr.msra.gmra.mxu1 %vm3677_vm12, %v10963_v48 }
 0x509   : > { %4076 = vmatpush.bf16.msrb.mxu1 %v7257_v25  ;;  %v7297_v25 = vor.u32 %v8397_v19, %v7294_v31  ;;  %v7344_v19 = vld [vmem:[%s12155_s17 + $0x40] sm:$0xf]  ;;  %v8362_v31 = vld [vmem:[%s12155_s17 + $0x44] sm:$0xf0] }
 0x50a   : > { %v3638_v36 = vpop.f32.mrf.mxu2  ;;  %v7345_v27 = vor.u32 %v8362_v31, %v7344_v19  ;;  %v8409_v19 = vld [vmem:[%s12155_s17 + $0xe4] sm:$0xf] }
 0x50b   : > { %v3652_v49 = vpop.f32.mrf.mxu3  ;;  %v3639_v56 = vadd.f32 %v3638_v36, %v3624_v14  ;;  %v8395_v14 = vld [vmem:[%s12156_s18 + $0xb4] sm:$0xf] }
 0x50c   : > { %v3668_v4 = vpop.f32.mrf.mxu1  ;;  %v3667_v5 = vadd.f32 %v3666_v33, %v3652_v49  ;;  %v7198_v33 = vld [vmem:[%s12156_s18 + $0x8] sm:$0xf0] }
 0x50d   : > { %4077 = vmatpush.bf16.msrb.mxu1 %v7249_v43  ;;  %v3626_v16 = vpop.f32.mrf.mxu0  ;;  %v7286_v43 = vld [vmem:[%s12156_s18 + $0xb8] sm:$0xf0]  ;;  %v7201_v49 = vor.u32 %v8373_v47, %v7198_v33  ;;  %v7328_v33 = vld [vmem:[%s12155_s17 + $0x20] sm:$0xf] }
 0x50e   : > { %v7289_v36 = vor.u32 %v8395_v14, %v7286_v43  ;;  %v7338_v14 = vld [vmem:[%s12155_s17 + $0x38] sm:$0xf0] }
 0x510   : > { %7188 = vmatmul.msk.f32.gmra.mxu1 %vm3677_vm12, %v10982_v1 }
 0x511   : > { %4078 = vmatpush.bf16.msrb.mxu1 %v7241_v55  ;;  %v7277_v55 = vor.u32 %v8394_v26, %v7276_v57  ;;  %v8358_v57 = vld [vmem:[%s12155_s17 + $0x24] sm:$0xf0]  ;;  %v8357_v26 = vld [vmem:[%s12155_s17 + $0x24] sm:$0xf] }
 0x512   : > { %v3640_v54 = vpop.f32.mrf.mxu2 }
 0x513   : > { %v3641_v7 = vadd.f32 %v3640_v54, %v3626_v16  ;;  %v3654_v12 = vpop.f32.mrf.mxu3  ;;  %v8393_v16 = vld [vmem:[%s12156_s18 + $0xa4] sm:$0xf]  ;;  %v7278_v54 = vld [vmem:[%s12156_s18 + $0xa8] sm:$0xf0] }
 0x514   : > { %v3669_v18 = vadd.f32 %v3668_v4, %v3654_v12  ;;  %v7281_v12 = vor.u32 %v8393_v16, %v7278_v54  ;;  %v8355_v16 = vld [vmem:[%s12155_s17 + $0x14] sm:$0xf] }
 0x515   : > { %4079 = vmatpush.bf16.msrb.mxu1 %v7233_v44  ;;  %7178 = vmatpush.msk.msra.mxu2 %vm3687_vm11, %v3641_v7  ;;  %v8392_v44 = vld [vmem:[%s12156_s18 + $0x94] sm:$0xf0]  ;;  %v7260_v7 = vld [vmem:[%s12156_s18 + $0x80] sm:$0xf] }
 0x516   : > { %7182 = vmatpush.msk.msra.mxu0 %vm3687_vm11, %v3669_v18  ;;  %v7269_v4 = vor.u32 %v8392_v44, %v7268_v42  ;;  %v7261_v18 = vor.u32 %v8390_v32, %v7260_v7  ;;  %v7320_v42 = vld [vmem:[%s12155_s17 + $0x10] sm:$0xf]  ;;  %v8356_v44 = vld [vmem:[%s12155_s17 + $0x14] sm:$0xf0]  ;;  %v7312_v7 = vld [vmem:[%s12155_s17] sm:$0xf] }
 0x517   : > { %3709 = vmatpush.msra.mxu2 %v3639_v56  ;;  %v7273_v56 = vor.u32 %v8391_v60, %v7270_v61  ;;  %v7321_v54 = vor.u32 %v8356_v44, %v7320_v42  ;;  %v8353_v32 = vld [vmem:[%s12155_s17 + $0x4] sm:$0xf]  ;;  %v7314_v61 = vld [vmem:[%s12155_s17 + $0x8] sm:$0xf0] }
 0x518   : > { %3735 = vmatpush.msra.mxu0 %v3667_v5  ;;  %7179 = vmatmul.msk.f32.vlgmr.msra.gmra.mxu2 %vm3677_vm12, %v3674_v53  ;;  %v7265_v5 = vor.u32 %v8389_v20, %v7262_v28  ;;  %v7472_v20 = vld [vmem:[%s12155_s17 + $0x110] sm:$0xf]  ;;  %v8416_v28 = vld [vmem:[%s12155_s17 + $0x114] sm:$0xf0] }
 0x519   : > { %7183 = vmatmul.msk.f32.vlgmr.msra.gmra.mxu0 %vm3677_vm12, %v3674_v53  ;;  %7190 = vmatpush.msk.msrb.mxu2 %vm3687_vm11, %v3492_v9  ;;  %v7370_v9 = vld [vmem:[%s12155_s17 + $0x78] sm:$0xf0] }
 0x51a   : > { %4080 = vmatpush.bf16.msrb.mxu1 %v7225_v39  ;;  %4060 = vmatpush.bf16.msrb.mxu0 %v7301_v63  ;;  %v7368_v39 = vld [vmem:[%s12155_s17 + $0x70] sm:$0xf]  ;;  %v8368_v63 = vld [vmem:[%s12155_s17 + $0x74] sm:$0xf0] }
 0x51b   : > { %3802 = vmatpush.msrb.mxu2 %v3490_v21  ;;  %v11040_v23 = vpop.f32.mrf.mxu3  ;;  %7189 = vmatmul.msk.f32.gmra.mxu1 %vm3677_vm12, %v11025_v13  ;;  %v7369_v10 = vor.u32 %v8368_v63, %v7368_v39  ;;  %v8363_v21 = vld [vmem:[%s12155_s17 + $0x54] sm:$0xf]  ;;  %v7474_v39 = vld [vmem:[%s12155_s17 + $0x118] sm:$0xf0] }
 0x51d   : > { %4096 = vmatpush.bf16.msra.mxu2 %v7305_v17 }
 0x51e   : > { %4081 = vmatpush.bf16.msrb.mxu1 %v7217_v34  ;;  %4061 = vmatpush.bf16.msrb.mxu0 %v7293_v40  ;;  %v7354_v34 = vld [vmem:[%s12155_s17 + $0x58] sm:$0xf0] }
 0x51f   : > { %v7357_v51 = vor.u32 %v8363_v21, %v7354_v34 }
 0x520   : > { %7180 = vmatmul.msk.f32.gmra.mxu2 %vm3677_vm12, %v3675_v50 }
 0x521   : > { %7184 = vmatmul.msk.f32.gmra.mxu0 %vm3677_vm12, %v3675_v50  ;;  %4097 = vmatpush.bf16.msra.mxu2 %v7297_v25  ;;  %v7349_v50 = vor.u32 %v8361_v37, %v7346_v35  ;;  %v7336_v25 = vld [vmem:[%s12155_s17 + $0x30] sm:$0xf]  ;;  %v7450_v37 = vld [vmem:[%s12155_s17 + $0xe8] sm:$0xf0] }
 0x522   : > { %4082 = vmatpush.bf16.msrb.mxu1 %v7209_v38  ;;  %4062 = vmatpush.bf16.msrb.mxu0 %v7285_v46  ;;  %v8360_v38 = vld [vmem:[%s12155_s17 + $0x34] sm:$0xf0]  ;;  %v8359_v46 = vld [vmem:[%s12155_s17 + $0x34] sm:$0xf]  ;;  %v7384_v35 = vld [vmem:[%s12155_s17 + $0x90] sm:$0xf] }
 0x523   : > { %v11079_v59 = vpop.f32.mrf.mxu3  ;;  %v7337_v47 = vor.u32 %v8360_v38, %v7336_v25  ;;  %v7341_v43 = vor.u32 %v8359_v46, %v7338_v14  ;;  %v8371_v25 = vld [vmem:[%s12155_s17 + $0x94] sm:$0xf]  ;;  %v7440_v14 = vld [vmem:[%s12155_s17 + $0xd0] sm:$0xf] }
 0x525   : > { %4098 = vmatpush.bf16.msra.mxu2 %v7289_v36  ;;  %v7329_v36 = vor.u32 %v8358_v57, %v7328_v33 }
 0x526   : > { %4083 = vmatpush.bf16.msrb.mxu1 %v7201_v49  ;;  %4063 = vmatpush.bf16.msrb.mxu0 %v7277_v55  ;;  %v7330_v49 = vld [vmem:[%s12155_s17 + $0x28] sm:$0xf0] }
 0x527   : > { %v7333_v55 = vor.u32 %v8357_v26, %v7330_v49  ;;  %v7442_v49 = vld [vmem:[%s12155_s17 + $0xd8] sm:$0xf0] }
 0x528   : > { %7181 = vmatmul.msk.f32.gmra.mxu2 %vm3677_vm12, %v3676_v0 }
 0x529   : > { %4084 = vmatmul.bf16.vlgmr.msrb.gmra.mxu1 %v10939_v30  ;;  %7185 = vmatmul.msk.f32.gmra.mxu0 %vm3677_vm12, %v3676_v0  ;;  %v7322_v0 = vld [vmem:[%s12155_s17 + $0x18] sm:$0xf0] }
 0x52a   : > { %4064 = vmatpush.bf16.msrb.mxu0 %v7269_v4  ;;  %4099 = vmatpush.bf16.msra.mxu2 %v7281_v12  ;;  %v7325_v4 = vor.u32 %v8355_v16, %v7322_v0  ;;  %v8354_v12 = vld [vmem:[%s12155_s17 + $0x4] sm:$0xf0]  ;;  %v7376_v16 = vld [vmem:[%s12155_s17 + $0x80] sm:$0xf]  ;;  %v8369_v0 = vld [vmem:[%s12155_s17 + $0x84] sm:$0xf] }
 0x52b   : > { %v11108_v53 = vpop.f32.mrf.mxu3  ;;  %v7313_v60 = vor.u32 %v8354_v12, %v7312_v7  ;;  %v7378_v7 = vld [vmem:[%s12155_s17 + $0x88] sm:$0xf0]  ;;  %v7432_v12 = vld [vmem:[%s12155_s17 + $0xc0] sm:$0xf] }
 0x52e   : > { %4065 = vmatpush.bf16.msrb.mxu0 %v7261_v18  ;;  %4100 = vmatpush.bf16.msra.mxu2 %v7273_v56  ;;  %v7317_v56 = vor.u32 %v8353_v32, %v7314_v61  ;;  %v8406_v32 = vld [vmem:[%s12155_s17 + $0xc4] sm:$0xf0] }
 0x52f   : > { %v7433_v61 = vor.u32 %v8406_v32, %v7432_v12  ;;  %v8431_v12 = vld [vmem:[%s12156_s18 + $0x134] sm:$0xf]  ;;  %v7570_v32 = vld [vmem:[%s12156_s18 + $0x138] sm:$0xf0] }
 0x530   : > { %7191 = vmatmul.msk.f32.vlgmr.msrb.gmra.mxu2 %vm3677_vm12, %v10963_v48  ;;  %v8367_v48 = vld [vmem:[%s12155_s17 + $0x74] sm:$0xf] }
 0x531   : > { %7306 = vmatmul.msk.bf16.vlgmr.msrb.gmra.mxu0 %vm846_vm0, %v9637_v45 }
 0x532   : > { %4101 = vmatpush.bf16.msra.mxu2 %v7265_v5  ;;  %4218 = vmatpush.bf16.msra.mxu0 %v7369_v10  ;;  %v8415_v5 = vld [vmem:[%s12155_s17 + $0x114] sm:$0xf]  ;;  %v8414_v10 = vld [vmem:[%s12155_s17 + $0x104] sm:$0xf0] }
 0x533   : > { %v4056_v30 = vpop.f32.mrf.mxu3  ;;  %v7477_v63 = vor.u32 %v8415_v5, %v7474_v39  ;;  %v7424_v39 = vld [vmem:[%s12155_s17 + $0xb0] sm:$0xf] }
 0x534   : > { %v7473_v30 = vor.u32 %v8416_v28, %v7472_v20  ;;  %v7434_v20 = vld [vmem:[%s12155_s17 + $0xc8] sm:$0xf0] }
 0x538   : > { %7192 = vmatmul.msk.f32.gmra.mxu2 %vm3677_vm12, %v10982_v1  ;;  %v7373_v1 = vor.u32 %v8367_v48, %v7370_v9  ;;  %v7464_v48 = vld [vmem:[%s12155_s17 + $0x100] sm:$0xf]  ;;  %v8413_v9 = vld [vmem:[%s12155_s17 + $0x104] sm:$0xf] }
 0x539   : > { %4089 = vmatmul.bf16.gmra.mxu1 %v10934_v22  ;;  %v7360_v22 = vld [vmem:[%s12155_s17 + $0x60] sm:$0xf] }
 0x53a   : > { %4254 = vmatpush.bf16.msra.mxu1 %v7373_v1  ;;  %v7361_v24 = vor.u32 %v8366_v29, %v7360_v22  ;;  %v7465_v1 = vor.u32 %v8414_v10, %v7464_v48  ;;  %v7466_v22 = vld [vmem:[%s12155_s17 + $0x108] sm:$0xf0]  ;;  %v8403_v48 = vld [vmem:[%s12155_s17 + $0xb4] sm:$0xf] }
 0x53b   : > { %v7469_v29 = vor.u32 %v8413_v9, %v7466_v22 }
 0x53c   : > { %4219 = vmatpush.bf16.msra.mxu0 %v7361_v24  ;;  %v7456_v24 = vld [vmem:[%s12155_s17 + $0xf0] sm:$0xf] }
 0x540   : > { %7193 = vmatmul.msk.f32.gmra.mxu2 %vm3677_vm12, %v11025_v13  ;;  %v8364_v13 = vld [vmem:[%s12155_s17 + $0x54] sm:$0xf0] }
 0x541   : > { %7307 = vmatmul.msk.bf16.gmra.mxu0 %vm846_vm0, %v9627_v62 }
 0x548   : > { %7308 = vmatmul.msk.bf16.vlgmr.msra.gmra.mxu2 %vm846_vm0, %v9637_v45  ;;  %v7362_v45 = vld [vmem:[%s12155_s17 + $0x68] sm:$0xf0] }
 0x549   : > { %v7365_v17 = vor.u32 %v8365_v6, %v7362_v45  ;;  %v8412_v45 = vld [vmem:[%s12155_s17 + $0xf4] sm:$0xf0] }
 0x54b   : > { %4255 = vmatpush.bf16.msra.mxu1 %v7365_v17  ;;  %v7458_v17 = vld [vmem:[%s12155_s17 + $0xf8] sm:$0xf0] }
 0x54f   : > { %4256 = vmatpush.bf16.msra.mxu1 %v7357_v51  ;;  %v8410_v51 = vld [vmem:[%s12155_s17 + $0xe4] sm:$0xf0] }
 0x553   : > { %4257 = vmatpush.bf16.msra.mxu1 %v7349_v50  ;;  %v8372_v50 = vld [vmem:[%s12155_s17 + $0x94] sm:$0xf0] }
 0x554   : > { %v7385_v46 = vor.u32 %v8372_v50, %v7384_v35  ;;  %v8435_v50 = vld [vmem:[%s12156_s18 + $0x154] sm:$0xf] }
 0x556   : > { %4242 = vmatpush.bf16.msrb.mxu3 %v7385_v46 }
 0x557   : > { %4258 = vmatpush.bf16.msra.mxu1 %v7341_v43  ;;  %v8408_v43 = vld [vmem:[%s12155_s17 + $0xd4] sm:$0xf0] }
 0x558   : > { %7309 = vmatmul.msk.bf16.gmra.mxu2 %vm846_vm0, %v9627_v62  ;;  %v7352_v62 = vld [vmem:[%s12155_s17 + $0x50] sm:$0xf]  ;;  %v7441_v26 = vor.u32 %v8408_v43, %v7440_v14  ;;  %v8434_v14 = vld [vmem:[%s12156_s18 + $0x144] sm:$0xf0] }
 0x559   : > { %v7353_v40 = vor.u32 %v8364_v13, %v7352_v62  ;;  %v8411_v62 = vld [vmem:[%s12155_s17 + $0xf4] sm:$0xf]  ;;  %v7457_v13 = vor.u32 %v8412_v45, %v7456_v24 }
 0x55a   : > { %v7461_v21 = vor.u32 %v8411_v62, %v7458_v17  ;;  %v8402_v17 = vld [vmem:[%s12155_s17 + $0xa4] sm:$0xf0] }
 0x55b   : > { %4220 = vmatpush.bf16.msra.mxu0 %v7353_v40  ;;  %4259 = vmatpush.bf16.msra.mxu1 %v7333_v55  ;;  %v7448_v40 = vld [vmem:[%s12155_s17 + $0xe0] sm:$0xf] }
 0x55c   : > { %v7449_v31 = vor.u32 %v8410_v51, %v7448_v40  ;;  %v11308_v55 = vld [vmem:[%s12152_s14] sm:$0x3]  ;;  %v7418_v40 = vld [vmem:[%s12155_s17 + $0xa8] sm:$0xf0] }
 0x55d   : > { %v3815_v28 = vperm.slane %v11308_v55, 0 }
 0x55f   : > { %4221 = vmatpush.bf16.msra.mxu0 %v7345_v27  ;;  %4260 = vmatpush.bf16.msra.mxu1 %v7325_v4  ;;  %v7453_v27 = vor.u32 %v8409_v19, %v7450_v37  ;;  %v8436_v37 = vld [vmem:[%s12156_s18 + $0x154] sm:$0xf0] }
 0x563   : > { %4222 = vmatpush.bf16.msra.mxu0 %v7337_v47  ;;  %4261 = vmatpush.bf16.msra.mxu1 %v7317_v56  ;;  %v7386_v47 = vld [vmem:[%s12155_s17 + $0x98] sm:$0xf0]  ;;  %v8405_v56 = vld [vmem:[%s12155_s17 + $0xc4] sm:$0xf] }
 0x564   : > { %v7389_v57 = vor.u32 %v8371_v25, %v7386_v47  ;;  %v7437_v5 = vor.u32 %v8405_v56, %v7434_v20  ;;  %v7586_v25 = vld [vmem:[%s12156_s18 + $0x158] sm:$0xf0]  ;;  %v7576_v47 = vld [vmem:[%s12156_s18 + $0x140] sm:$0xf]  ;;  %v7573_v56 = vor.u32 %v8431_v12, %v7570_v32 }
 0x565   : > { %v7589_v46 = vor.u32 %v8435_v50, %v7586_v25  ;;  %v7577_v43 = vor.u32 %v8434_v14, %v7576_v47  ;;  %v7560_v20 = vld [vmem:[%s12156_s18 + $0x120] sm:$0xf]  ;;  %v8417_v50 = vld [vmem:[%s12155_s17 + $0x124] sm:$0xf]  ;;  %v7482_v25 = vld [vmem:[%s12155_s17 + $0x128] sm:$0xf0] }
 0x566   : > { %4278 = vmatpush.bf16.msrb.mxu2 %v7389_v57  ;;  %v8433_v57 = vld [vmem:[%s12156_s18 + $0x144] sm:$0xf] }
 0x567   : > { %4223 = vmatpush.bf16.msra.mxu0 %v7329_v36  ;;  %4483 = vmatpush.bf16.msrb.mxu1 %v7477_v63  ;;  %v8407_v36 = vld [vmem:[%s12155_s17 + $0xd4] sm:$0xf]  ;;  %v8404_v63 = vld [vmem:[%s12155_s17 + $0xb4] sm:$0xf0] }
 0x568   : > { %v7445_v42 = vor.u32 %v8407_v36, %v7442_v49  ;;  %v7425_v9 = vor.u32 %v8404_v63, %v7424_v39  ;;  %v7562_v39 = vld [vmem:[%s12156_s18 + $0x128] sm:$0xf0] }
 0x56b   : > { %4224 = vmatpush.bf16.msra.mxu0 %v7321_v54  ;;  %4484 = vmatpush.bf16.msrb.mxu1 %v7469_v29  ;;  %v8370_v54 = vld [vmem:[%s12155_s17 + $0x84] sm:$0xf0] }
 0x56c   : > { %v7377_v4 = vor.u32 %v8370_v54, %v7376_v16  ;;  %v7568_v54 = vld [vmem:[%s12156_s18 + $0x130] sm:$0xf] }
 0x56e   : > { %4243 = vmatpush.bf16.msrb.mxu3 %v7377_v4 }
 0x56f   : > { %4225 = vmatpush.bf16.msra.mxu0 %v7313_v60  ;;  %4485 = vmatpush.bf16.msrb.mxu1 %v7461_v21  ;;  %v7381_v60 = vor.u32 %v8369_v0, %v7378_v7  ;;  %v8432_v0 = vld [vmem:[%s12156_s18 + $0x134] sm:$0xf0] }
 0x570   : > { %v7569_v7 = vor.u32 %v8432_v0, %v7568_v54  ;;  %v7485_v54 = vor.u32 %v8417_v50, %v7482_v25  ;;  %v7720_v50 = vld [vmem:[%s12155_s17 + $0x1b0] sm:$0xf] }
 0x571   : > { %4279 = vmatpush.bf16.msrb.mxu2 %v7381_v60 }
 0x573   : > { %4447 = vmatpush.bf16.msrb.mxu0 %v7473_v30  ;;  %4486 = vmatpush.bf16.msrb.mxu1 %v7453_v27 }
 0x577   : > { %4448 = vmatpush.bf16.msrb.mxu0 %v7465_v1  ;;  %4487 = vmatpush.bf16.msrb.mxu1 %v7445_v42 }
 0x57b   : > { %4449 = vmatpush.bf16.msrb.mxu0 %v7457_v13  ;;  %4488 = vmatpush.bf16.msrb.mxu1 %v7437_v5  ;;  %v7416_v13 = vld [vmem:[%s12155_s17 + $0xa0] sm:$0xf] }
 0x57c   : > { %v7417_v21 = vor.u32 %v8402_v17, %v7416_v13  ;;  %v7552_v17 = vld [vmem:[%s12156_s18 + $0x110] sm:$0xf] }
 0x57f   : > { %4450 = vmatpush.bf16.msrb.mxu0 %v7449_v31  ;;  %v7584_v31 = vld [vmem:[%s12156_s18 + $0x150] sm:$0xf] }
 0x580   : > { %v7585_v35 = vor.u32 %v8436_v37, %v7584_v31  ;;  %v8427_v31 = vld [vmem:[%s12156_s18 + $0x114] sm:$0xf]  ;;  %v7554_v37 = vld [vmem:[%s12156_s18 + $0x118] sm:$0xf0] }
 0x583   : > { %4451 = vmatpush.bf16.msrb.mxu0 %v7441_v26  ;;  %v7578_v26 = vld [vmem:[%s12156_s18 + $0x148] sm:$0xf0] }
 0x584   : > { %v7581_v42 = vor.u32 %v8433_v57, %v7578_v26  ;;  %v7544_v57 = vld [vmem:[%s12156_s18 + $0x100] sm:$0xf]  ;;  %v8426_v26 = vld [vmem:[%s12156_s18 + $0x104] sm:$0xf0] }
 0x585   : > { %v11227_v18 = vpop.f32.mrf.mxu1  ;;  %v7545_v0 = vor.u32 %v8426_v26, %v7544_v57 }
 0x587   : > { %4452 = vmatpush.bf16.msrb.mxu0 %v7433_v61 }
 0x58b   : > { %4453 = vmatpush.bf16.msrb.mxu0 %v7425_v9 }
 0x58d   : > { %v11253_v6 = vpop.f32.mrf.mxu1 }
 0x58f   : > { %4454 = vmatpush.bf16.msrb.mxu0 %v7417_v21 }
 0x596   : > { %v11267_v34 = vpop.f32.mrf.mxu0 }
 0x598   : > { %v3784_v33 = vpop.f32.mrf.mxu1 }
 0x59b   : > { %v3711_v38 = vpop.f32.mrf.mxu2 }
 0x59c   : > { %v3779_v30 = vadd.f32 %v11227_v18, %v3711_v38  ;;  %v7426_v18 = vld [vmem:[%s12155_s17 + $0xb8] sm:$0xf0] }
 0x59d   : > { %v7429_v22 = vor.u32 %v8403_v48, %v7426_v18  ;;  %v11438_v18 = vperm.slane %v11308_v55, 1  ;;  %v8419_v55 = vld [vmem:[%s12155_s17 + $0x134] sm:$0xf] }
 0x59e   : > { %v11310_v44 = vpop.f32.mrf.mxu0  ;;  %v3819_v29 = vadd.f32 %v3815_v28, %v3779_v30  ;;  %v8429_v30 = vld [vmem:[%s12156_s18 + $0x124] sm:$0xf] }
 0x59f   : > { %4489 = vmatpush.bf16.msrb.mxu1 %v7429_v22  ;;  %v7565_v9 = vor.u32 %v8429_v30, %v7562_v39  ;;  %v7488_v22 = vld [vmem:[%s12155_s17 + $0x130] sm:$0xf]  ;;  %v8423_v30 = vld [vmem:[%s12156_s18 + $0xf4] sm:$0xf]  ;;  %v7538_v39 = vld [vmem:[%s12156_s18 + $0xf8] sm:$0xf0] }
 0x5a3   : > { %v3714_v10 = vpop.f32.mrf.mxu2 }
 0x5a4   : > { %v3782_v1 = vadd.f32 %v11253_v6, %v3714_v10  ;;  %v8401_v6 = vld [vmem:[%s12155_s17 + $0xa4] sm:$0xf] }
 0x5a5   : > { %v7421_v19 = vor.u32 %v8401_v6, %v7418_v40  ;;  %v8428_v6 = vld [vmem:[%s12156_s18 + $0x114] sm:$0xf0] }
 0x5a6   : > { %v3821_v24 = vadd.f32 %v3815_v28, %v3782_v1  ;;  %v11351_v45 = vpop.f32.mrf.mxu1  ;;  %v11353_v62 = vpop.f32.mrf.mxu0 }
 0x5a7   : > { %4490 = vmatpush.bf16.msrb.mxu1 %v7421_v19  ;;  %v7553_v19 = vor.u32 %v8428_v6, %v7552_v17 }
 0x5a8   : > { %v11367_v51 = vpack.c.bf16 %v3821_v24, %v3819_v29  ;;  %v8420_v29 = vld [vmem:[%s12155_s17 + $0x134] sm:$0xf0] }
 0x5a9   : > { %v7489_v13 = vor.u32 %v8420_v29, %v7488_v22  ;;  %v7528_v22 = vld [vmem:[%s12156_s18 + $0xe0] sm:$0xf]  ;;  %v8422_v29 = vld [vmem:[%s12156_s18 + $0xe4] sm:$0xf0] }
 0x5aa   : > { %4226 = vmatmul.bf16.vlgmr.msra.gmra.mxu0 %v11367_v51  ;;  %4262 = vmatmul.bf16.vlgmr.msra.gmra.mxu1 %v11367_v51  ;;  %v4840_v60 = vrot.slane %v11367_v51, 1 }
 0x5ab   : > { %v3717_v27 = vpop.f32.mrf.mxu2  ;;  %4737 = vmatpush.bf16.msra.mxu0 %v7585_v35  ;;  %4773 = vmatpush.bf16.msra.mxu1 %v7589_v46  ;;  %v7557_v35 = vor.u32 %v8427_v31, %v7554_v37  ;;  %v7632_v31 = vld [vmem:[%s12156_s18 + $0x1b0] sm:$0xf] }
 0x5ac   : > { %v3785_v38 = vadd.f32 %v3784_v33, %v3717_v27  ;;  %v7480_v27 = vld [vmem:[%s12155_s17 + $0x120] sm:$0xf]  ;;  %4471 = vmatpush.bf16.msra.mxu3 %v7489_v13  ;;  %v8421_v13 = vld [vmem:[%s12156_s18 + $0xe4] sm:$0xf] }
 0x5ae   : > { %v3823_v33 = vadd.f32 %v3815_v28, %v3785_v38  ;;  %v11395_v36 = vpop.f32.mrf.mxu1  ;;  %v11397_v49 = vpop.f32.mrf.mxu0  ;;  %v8430_v28 = vld [vmem:[%s12156_s18 + $0x124] sm:$0xf0] }
 0x5af   : > { %4738 = vmatpush.bf16.msra.mxu0 %v7577_v43  ;;  %4774 = vmatpush.bf16.msra.mxu1 %v7581_v42  ;;  %v7561_v5 = vor.u32 %v8430_v28, %v7560_v20  ;;  %v4314_v42 = vshll.u32 %v11367_v51, 16 }
 0x5b0   : > { %v11399_v16 = vpack.c.bf16 %v3823_v33, %v3823_v33  ;;  %v8425_v33 = vld [vmem:[%s12156_s18 + $0x104] sm:$0xf] }
 0x5b1   : > { %v4316_v28 = vrot.slane %v4314_v42, 1  ;;  %v8446_v42 = vld [vmem:[%s12156_s18 + $0x1a4] sm:$0xf0] }
 0x5b2   : > { %v11415_v61 = vrot.slane %v11399_v16, 1  ;;  %v4319_v32 = vshll.u32 %v11399_v16, 16 }
 0x5b3   : > { %v3804_v4 = vpop.f32.mrf.mxu2  ;;  %4739 = vmatpush.bf16.msra.mxu0 %v7569_v7  ;;  %4775 = vmatpush.bf16.msra.mxu1 %v7573_v56  ;;  %v8424_v56 = vld [vmem:[%s12156_s18 + $0xf4] sm:$0xf0] }
 0x5b4   : > { %v11431_v63 = vsel %vm1008_vm2, %v4840_v60, %v11415_v61  ;;  %v3805_v1 = vadd.f32 %v3804_v4, %v11267_v34  ;;  %v7490_v34 = vld [vmem:[%s12155_s17 + $0x138] sm:$0xf0]  ;;  %v7546_v4 = vld [vmem:[%s12156_s18 + $0x108] sm:$0xf0]  ;;  %v7536_v60 = vld [vmem:[%s12156_s18 + $0xf0] sm:$0xf] }
 0x5b5   : > { %v7493_v40 = vor.u32 %v8419_v55, %v7490_v34  ;;  %v7549_v12 = vor.u32 %v8425_v33, %v7546_v4  ;;  %v4312_v55 = vshrl.u32 %v11367_v51, 16  ;;  %v7624_v33 = vld [vmem:[%s12156_s18 + $0x1a0] sm:$0xf]  ;;  %v8445_v4 = vld [vmem:[%s12156_s18 + $0x1a4] sm:$0xf] }
 0x5b6   : > { %v11433_v48 = vpop.f32.mrf.mxu1  ;;  %v11435_v10 = vpop.f32.mrf.mxu0  ;;  %v3820_v38 = vadd.f32 %v11438_v18, %v3805_v1  ;;  %v7541_v1 = vor.u32 %v8423_v30, %v7538_v39 }
 0x5b7   : > { %4740 = vmatpush.bf16.msra.mxu0 %v7561_v5  ;;  %4776 = vmatpush.bf16.msra.mxu1 %v7565_v9  ;;  %v7537_v5 = vor.u32 %v8424_v56, %v7536_v60  ;;  %v4317_v6 = vor.u32 %v4316_v28, %v4312_v55  ;;  %v8462_v56 = vld [vmem:[%s12155_s17 + $0x1a4] sm:$0xf0]  ;;  %v7714_v28 = vld [vmem:[%s12155_s17 + $0x1a8] sm:$0xf0]  ;;  %v8444_v55 = vld [vmem:[%s12156_s18 + $0x194] sm:$0xf0] }
 0x5b8   : > { %4507 = vmatpush.bf16.msra.mxu2 %v7493_v40 }
 0x5ba   : > { %4231 = vmatmul.bf16.gmra.mxu0 %v11399_v16  ;;  %4267 = vmatmul.bf16.gmra.mxu1 %v11399_v16 }
 0x5bb   : > { %v3807_v24 = vpop.f32.mrf.mxu2  ;;  %4741 = vmatpush.bf16.msra.mxu0 %v7553_v19  ;;  %4777 = vmatpush.bf16.msra.mxu1 %v7557_v35  ;;  %v8447_v35 = vld [vmem:[%s12156_s18 + $0x1b4] sm:$0xf] }
 0x5bc   : > { %v3808_v21 = vadd.f32 %v3807_v24, %v11310_v44  ;;  %v8418_v44 = vld [vmem:[%s12155_s17 + $0x124] sm:$0xf0]  ;;  %4508 = vmatpush.bf16.msra.mxu2 %v7485_v54  ;;  %v11524_v24 = vrot.slane %v4319_v32, 1  ;;  %v7712_v32 = vld [vmem:[%s12155_s17 + $0x1a0] sm:$0xf] }
 0x5bd   : > { %v7481_v43 = vor.u32 %v8418_v44, %v7480_v27  ;;  %v7634_v44 = vld [vmem:[%s12156_s18 + $0x1b8] sm:$0xf0]  ;;  %v7713_v30 = vor.u32 %v8462_v56, %v7712_v32  ;;  %v8440_v32 = vld [vmem:[%s12156_s18 + $0x174] sm:$0xf0] }
 0x5be   : > { %v3822_v46 = vadd.f32 %v11438_v18, %v3808_v21  ;;  %v4092_v47 = vpop.f32.mrf.mxu1  ;;  %v11482_v14 = vpop.f32.mrf.mxu0  ;;  %v7529_v21 = vor.u32 %v8422_v29, %v7528_v22  ;;  %v4322_v19 = vsel %vm770_vm1, %v4317_v6, %v11524_v24  ;;  %v7616_v29 = vld [vmem:[%s12156_s18 + $0x190] sm:$0xf]  ;;  %v8460_v6 = vld [vmem:[%s12155_s17 + $0x194] sm:$0xf0]  ;;  %v7602_v56 = vld [vmem:[%s12156_s18 + $0x178] sm:$0xf0] }
 0x5bf   : > { %4472 = vmatpush.bf16.msra.mxu3 %v7481_v43  ;;  %4742 = vmatpush.bf16.msra.mxu0 %v7545_v0  ;;  %v8463_v47 = vld [vmem:[%s12155_s17 + $0x1b4] sm:$0xf]  ;;  %v7625_v0 = vor.u32 %v8446_v42, %v7624_v33 }
 0x5c0   : > { %v11497_v7 = vpack.c.bf16 %v3822_v46, %v3820_v38  ;;  %4778 = vmatpush.bf16.msra.mxu1 %v7549_v12  ;;  %v7637_v38 = vor.u32 %v8447_v35, %v7634_v44  ;;  %v8464_v46 = vld [vmem:[%s12155_s17 + $0x1b4] sm:$0xf0]  ;;  %v7626_v12 = vld [vmem:[%s12156_s18 + $0x1a8] sm:$0xf0]  ;;  %v8441_v35 = vld [vmem:[%s12156_s18 + $0x184] sm:$0xf] }
 0x5c1   : > { %v7721_v26 = vor.u32 %v8464_v46, %v7720_v50  ;;  %v7629_v60 = vor.u32 %v8445_v4, %v7626_v12  ;;  %v7610_v44 = vld [vmem:[%s12156_s18 + $0x188] sm:$0xf0]  ;;  %v8458_v46 = vld [vmem:[%s12155_s17 + $0x184] sm:$0xf0]  ;;  %v7600_v12 = vld [vmem:[%s12156_s18 + $0x170] sm:$0xf] }
 0x5c2   : > { %7390 = vmatmul.msk.bf16.vlgmr.msrb.gmra.mxu3 %vm3434_vm10, %v11497_v7  ;;  %7392 = vmatmul.msk.bf16.vlgmr.msrb.gmra.mxu2 %vm3434_vm10, %v11497_v7  ;;  %v4843_v43 = vrot.slane %v11497_v7, 1 }
 0x5c3   : > { %v3810_v20 = vpop.f32.mrf.mxu2  ;;  %4743 = vmatpush.bf16.msra.mxu0 %v7537_v5  ;;  %4793 = vmatpush.bf16.msrb.mxu2 %v7637_v38  ;;  %v7696_v38 = vld [vmem:[%s12155_s17 + $0x180] sm:$0xf] }
 0x5c4   : > { %v3811_v9 = vadd.f32 %v3810_v20, %v11353_v62  ;;  %v7530_v62 = vld [vmem:[%s12156_s18 + $0xe8] sm:$0xf0]  ;;  %4779 = vmatpush.bf16.msra.mxu1 %v7541_v1  ;;  %v8461_v20 = vld [vmem:[%s12155_s17 + $0x1a4] sm:$0xf]  ;;  %v4325_v1 = vshll.u32 %v11497_v7, 16 }
 0x5c5   : > { %v7533_v51 = vor.u32 %v8421_v13, %v7530_v62  ;;  %v7717_v39 = vor.u32 %v8461_v20, %v7714_v28  ;;  %v7617_v62 = vor.u32 %v8444_v55, %v7616_v29  ;;  %v7688_v20 = vld [vmem:[%s12155_s17 + $0x170] sm:$0xf]  ;;  %v8456_v28 = vld [vmem:[%s12155_s17 + $0x174] sm:$0xf0]  ;;  %v7592_v29 = vld [vmem:[%s12156_s18 + $0x160] sm:$0xf] }
 0x5c6   : > { %v3824_v34 = vadd.f32 %v11438_v18, %v3811_v9  ;;  %v4074_v17 = vpop.f32.mrf.mxu0  ;;  %v8448_v18 = vld [vmem:[%s12156_s18 + $0x1b4] sm:$0xf0]  ;;  %v4333_v9 = vshrl.u32 %v11399_v16, 16  ;;  %v8443_v16 = vld [vmem:[%s12156_s18 + $0x194] sm:$0xf] }
 0x5c7   : > { %4744 = vmatpush.bf16.msra.mxu0 %v7529_v21  ;;  %v7633_v27 = vor.u32 %v8448_v18, %v7632_v31  ;;  %4794 = vmatpush.bf16.msrb.mxu2 %v7629_v60  ;;  %v7704_v17 = vld [vmem:[%s12155_s17 + $0x190] sm:$0xf]  ;;  %v7706_v31 = vld [vmem:[%s12155_s17 + $0x198] sm:$0xf0]  ;;  %v7608_v18 = vld [vmem:[%s12156_s18 + $0x180] sm:$0xf] }
 0x5c8   : > { %v11533_v40 = vpack.c.bf16 %v3824_v34, %v3824_v34  ;;  %4780 = vmatpush.bf16.msra.mxu1 %v7533_v51  ;;  %v7618_v34 = vld [vmem:[%s12156_s18 + $0x198] sm:$0xf0]  ;;  %v7705_v51 = vor.u32 %v8460_v6, %v7704_v17  ;;  %v4335_v33 = vor.u32 %v4333_v9, %v11524_v24  ;;  %v8439_v24 = vld [vmem:[%s12156_s18 + $0x174] sm:$0xf]  ;;  %v7689_v9 = vor.u32 %v8456_v28, %v7688_v20  ;;  %v7680_v17 = vld [vmem:[%s12155_s17 + $0x160] sm:$0xf] }
 0x5c9   : > { %4757 = vmatpush.bf16.msrb.mxu3 %v7633_v27  ;;  %v7621_v21 = vor.u32 %v8443_v16, %v7618_v34  ;;  %v8442_v27 = vld [vmem:[%s12156_s18 + $0x184] sm:$0xf0]  ;;  %v8437_v16 = vld [vmem:[%s12156_s18 + $0x164] sm:$0xf] }
 0x5ca   : > { %4455 = vmatmul.bf16.vlgmr.msrb.gmra.mxu0 %v4322_v19  ;;  %4491 = vmatmul.bf16.vlgmr.msrb.gmra.mxu1 %v4322_v19  ;;  %v11563_v57 = vrot.slane %v11533_v40, 1  ;;  %v4329_v22 = vshll.u32 %v11533_v40, 16  ;;  %v8459_v19 = vld [vmem:[%s12155_s17 + $0x194] sm:$0xf]  ;;  %v7609_v50 = vor.u32 %v8442_v27, %v7608_v18  ;;  %v8454_v6 = vld [vmem:[%s12155_s17 + $0x164] sm:$0xf0] }
 0x5cb   : > { %v4103_v37 = vpop.f32.mrf.mxu2  ;;  %4954 = vmatpush.bf16.msrb.mxu0 %v7721_v26  ;;  %4795 = vmatpush.bf16.msrb.mxu2 %v7621_v21  ;;  %v7697_v26 = vor.u32 %v8458_v46, %v7696_v38  ;;  %v8453_v21 = vld [vmem:[%s12155_s17 + $0x164] sm:$0xf]  ;;  %v7682_v18 = vld [vmem:[%s12155_s17 + $0x168] sm:$0xf0]  ;;  %v4336_v20 = vshrl.u32 %v11533_v40, 16 }
 0x5cc   : > { %v11553_v25 = vadd.f32 %v4103_v37, %v11351_v45  ;;  %v7722_v45 = vld [vmem:[%s12155_s17 + $0x1b8] sm:$0xf0]  ;;  %v11594_v5 = vsel %vm1008_vm2, %v4843_v43, %v11563_v57  ;;  %v7709_v37 = vor.u32 %v8459_v19, %v7706_v31  ;;  %v7613_v43 = vor.u32 %v8441_v35, %v7610_v44  ;;  %v7672_v35 = vld [vmem:[%s12155_s17 + $0x150] sm:$0xf]  ;;  %v8452_v44 = vld [vmem:[%s12155_s17 + $0x154] sm:$0xf0] }
 0x5cd   : > { %v7725_v54 = vor.u32 %v8463_v47, %v7722_v45  ;;  %4758 = vmatpush.bf16.msrb.mxu3 %v7625_v0  ;;  %v8457_v47 = vld [vmem:[%s12155_s17 + $0x184] sm:$0xf]  ;;  %v7698_v45 = vld [vmem:[%s12155_s17 + $0x188] sm:$0xf0]  ;;  %v4327_v0 = vrot.slane %v4325_v1, 1  ;;  %v11655_v4 = vrot.slane %v4329_v22, 1  ;;  %v7681_v31 = vor.u32 %v8454_v6, %v7680_v17 }
 0x5ce   : > { %v7701_v42 = vor.u32 %v8457_v47, %v7698_v45  ;;  %v8455_v1 = vld [vmem:[%s12155_s17 + $0x174] sm:$0xf]  ;;  %v7690_v22 = vld [vmem:[%s12155_s17 + $0x178] sm:$0xf0]  ;;  %v7673_v46 = vor.u32 %v8452_v44, %v7672_v35  ;;  %v8450_v45 = vld [vmem:[%s12155_s17 + $0x144] sm:$0xf0] }
 0x5cf   : > { %4990 = vmatpush.bf16.msrb.mxu1 %v7725_v54  ;;  %4955 = vmatpush.bf16.msrb.mxu0 %v7713_v30  ;;  %v4323_v54 = vshrl.u32 %v11497_v7, 16  ;;  %v7601_v7 = vor.u32 %v8440_v32, %v7600_v12  ;;  %v7693_v55 = vor.u32 %v8455_v1, %v7690_v22  ;;  %v7674_v47 = vld [vmem:[%s12155_s17 + $0x158] sm:$0xf0]  ;;  %v7832_v12 = vld [vmem:[%s12156_s18 + $0x230] sm:$0xf] }
 0x5d0   : > { %4796 = vmatpush.bf16.msrb.mxu2 %v7613_v43  ;;  %v8484_v32 = vld [vmem:[%s12156_s18 + $0x234] sm:$0xf0]  ;;  %v8477_v6 = vld [vmem:[%s12156_s18 + $0x204] sm:$0xf]  ;;  %v7738_v35 = vld [vmem:[%s12155_s17 + $0x1d8] sm:$0xf0] }
 0x5d1   : > { %4759 = vmatpush.bf16.msrb.mxu3 %v7617_v62  ;;  %v7594_v62 = vld [vmem:[%s12156_s18 + $0x168] sm:$0xf0]  ;;  %v8476_v44 = vld [vmem:[%s12156_s18 + $0x1f4] sm:$0xf0] }
 0x5d2   : > { %7391 = vmatmul.msk.bf16.gmra.mxu3 %vm3434_vm10, %v11533_v40  ;;  %7393 = vmatmul.msk.bf16.gmra.mxu2 %vm3434_vm10, %v11533_v40  ;;  %v7597_v19 = vor.u32 %v8437_v16, %v7594_v62  ;;  %v7816_v40 = vld [vmem:[%s12156_s18 + $0x210] sm:$0xf]  ;;  %v7808_v62 = vld [vmem:[%s12156_s18 + $0x200] sm:$0xf] }
 0x5d3   : > { %v11612_v13 = vpop.f32.mrf.mxu2  ;;  %4991 = vmatpush.bf16.msrb.mxu1 %v7717_v39  ;;  %4956 = vmatpush.bf16.msrb.mxu0 %v7705_v51  ;;  %v7605_v39 = vor.u32 %v8439_v24, %v7602_v56  ;;  %v4328_v51 = vor.u32 %v4327_v0, %v4323_v54  ;;  %v8483_v24 = vld [vmem:[%s12156_s18 + $0x234] sm:$0xf]  ;;  %v8482_v56 = vld [vmem:[%s12156_s18 + $0x224] sm:$0xf0] }
 0x5d5   : > { %4760 = vmatpush.bf16.msrb.mxu3 %v7609_v50  ;;  %4797 = vmatpush.bf16.msrb.mxu2 %v7605_v39  ;;  %v4332_v27 = vsel %vm770_vm1, %v4328_v51, %v11655_v4  ;;  %v8451_v50 = vld [vmem:[%s12155_s17 + $0x154] sm:$0xf]  ;;  %v8481_v39 = vld [vmem:[%s12156_s18 + $0x224] sm:$0xf] }
 0x5d6   : > { %v7677_v43 = vor.u32 %v8451_v50, %v7674_v47  ;;  %v7802_v47 = vld [vmem:[%s12156_s18 + $0x1f8] sm:$0xf0] }
 0x5d7   : > { %4992 = vmatpush.bf16.msrb.mxu1 %v7709_v37  ;;  %4957 = vmatpush.bf16.msrb.mxu0 %v7697_v26  ;;  %v7685_v37 = vor.u32 %v8453_v21, %v7682_v18  ;;  %v7664_v26 = vld [vmem:[%s12155_s17 + $0x140] sm:$0xf]  ;;  %v7810_v21 = vld [vmem:[%s12156_s18 + $0x208] sm:$0xf0]  ;;  %v8468_v18 = vld [vmem:[%s12155_s17 + $0x1d4] sm:$0xf0] }
 0x5d8   : > { %v7665_v54 = vor.u32 %v8450_v45, %v7664_v26  ;;  %v8466_v45 = vld [vmem:[%s12155_s17 + $0x1c4] sm:$0xf0] }
 0x5d9   : > { %4761 = vmatpush.bf16.msrb.mxu3 %v7601_v7  ;;  %4798 = vmatpush.bf16.msrb.mxu2 %v7597_v19  ;;  %v7834_v7 = vld [vmem:[%s12156_s18 + $0x238] sm:$0xf0]  ;;  %v7813_v19 = vor.u32 %v8477_v6, %v7810_v21  ;;  %v7872_v6 = vld [vmem:[%s12156_s18 + $0x280] sm:$0xf]  ;;  %v8494_v21 = vld [vmem:[%s12156_s18 + $0x284] sm:$0xf0] }
 0x5da   : > { %4460 = vmatmul.bf16.gmra.mxu0 %v4335_v33  ;;  %4496 = vmatmul.bf16.gmra.mxu1 %v4335_v33  ;;  %v8449_v33 = vld [vmem:[%s12155_s17 + $0x144] sm:$0xf]  ;;  %v7837_v28 = vor.u32 %v8483_v24, %v7834_v7  ;;  %v7794_v7 = vld [vmem:[%s12156_s18 + $0x1e8] sm:$0xf0] }
 0x5db   : > { %v4108_v60 = vpop.f32.mrf.mxu2  ;;  %4993 = vmatpush.bf16.msrb.mxu1 %v7701_v42  ;;  %4958 = vmatpush.bf16.msrb.mxu0 %v7689_v9  ;;  %v7666_v42 = vld [vmem:[%s12155_s17 + $0x148] sm:$0xf0] }
 0x5dc   : > { %v11676_v30 = vadd.f32 %v4108_v60, %v11433_v48  ;;  %v8438_v48 = vld [vmem:[%s12156_s18 + $0x164] sm:$0xf0]  ;;  %v7669_v0 = vor.u32 %v8449_v33, %v7666_v42  ;;  %v7833_v60 = vor.u32 %v8484_v32, %v7832_v12  ;;  %v7826_v9 = vld [vmem:[%s12156_s18 + $0x228] sm:$0xf0]  ;;  %v8465_v33 = vld [vmem:[%s12155_s17 + $0x1c4] sm:$0xf] }
 0x5dd   : > { %v7593_v34 = vor.u32 %v8438_v48, %v7592_v29  ;;  %v7829_v22 = vor.u32 %v8481_v39, %v7826_v9  ;;  %v4338_v29 = vor.u32 %v4336_v20, %v11655_v4  ;;  %v8479_v48 = vld [vmem:[%s12156_s18 + $0x214] sm:$0xf]  ;;  %v7818_v4 = vld [vmem:[%s12156_s18 + $0x218] sm:$0xf0]  ;;  %v7730_v42 = vld [vmem:[%s12155_s17 + $0x1c8] sm:$0xf0] }
 0x5de   : > { %v7821_v17 = vor.u32 %v8479_v48, %v7818_v4  ;;  %v8474_v12 = vld [vmem:[%s12156_s18 + $0x1e4] sm:$0xf0]  ;;  %v8473_v32 = vld [vmem:[%s12156_s18 + $0x1e4] sm:$0xf]  ;;  %v7733_v24 = vor.u32 %v8465_v33, %v7730_v42  ;;  %v8472_v20 = vld [vmem:[%s12156_s18 + $0x1d4] sm:$0xf0] }
 0x5df   : > { %4994 = vmatpush.bf16.msrb.mxu1 %v7693_v55  ;;  %4762 = vmatpush.bf16.msrb.mxu3 %v7593_v34  ;;  %v8480_v55 = vld [vmem:[%s12156_s18 + $0x214] sm:$0xf0]  ;;  %v8478_v34 = vld [vmem:[%s12156_s18 + $0x204] sm:$0xf0]  ;;  %v7786_v9 = vld [vmem:[%s12156_s18 + $0x1d8] sm:$0xf0] }
 0x5e0   : > { %4959 = vmatpush.bf16.msrb.mxu0 %v7681_v31  ;;  %v7817_v16 = vor.u32 %v8480_v55, %v7816_v40  ;;  %v7809_v51 = vor.u32 %v8478_v34, %v7808_v62  ;;  %v7736_v31 = vld [vmem:[%s12155_s17 + $0x1d0] sm:$0xf]  ;;  %v7778_v55 = vld [vmem:[%s12156_s18 + $0x1c8] sm:$0xf0]  ;;  %v8496_v4 = vld [vmem:[%s12156_s18 + $0x294] sm:$0xf0] }
 0x5e1   : > { %v8495_v62 = vld [vmem:[%s12156_s18 + $0x294] sm:$0xf]  ;;  %v8488_v33 = vld [vmem:[%s12156_s18 + $0x254] sm:$0xf0] }
 0x5e2   : > { %7494 = vmatmul.msk.bf16.vlgmr.msra.gmra.mxu3 %vm3434_vm10, %v4332_v27  ;;  %7496 = vmatmul.msk.bf16.vlgmr.msra.gmra.mxu2 %vm3434_vm10, %v4332_v27  ;;  %v7737_v27 = vor.u32 %v8468_v18, %v7736_v31  ;;  %v7874_v31 = vld [vmem:[%s12156_s18 + $0x288] sm:$0xf0]  ;;  %v8487_v42 = vld [vmem:[%s12156_s18 + $0x254] sm:$0xf] }
 0x5e3   : > { %v4110_v38 = vpop.f32.mrf.mxu2  ;;  %4995 = vmatpush.bf16.msrb.mxu1 %v7685_v37  ;;  %v8467_v37 = vld [vmem:[%s12155_s17 + $0x1d4] sm:$0xf] }
 0x5e4   : > { %4960 = vmatpush.bf16.msrb.mxu0 %v7673_v46  ;;  %v7741_v50 = vor.u32 %v8467_v37, %v7738_v35  ;;  %v8475_v46 = vld [vmem:[%s12156_s18 + $0x1f4] sm:$0xf]  ;;  %4978 = vmatpush.bf16.msra.mxu3 %v7737_v27  ;;  %v7864_v37 = vld [vmem:[%s12156_s18 + $0x270] sm:$0xf]  ;;  %v8492_v27 = vld [vmem:[%s12156_s18 + $0x274] sm:$0xf0] }
 0x5e5   : > { %v7805_v26 = vor.u32 %v8475_v46, %v7802_v47  ;;  %v8491_v35 = vld [vmem:[%s12156_s18 + $0x274] sm:$0xf]  ;;  %v8489_v46 = vld [vmem:[%s12156_s18 + $0x264] sm:$0xf] }
 0x5e6   : > { %5014 = vmatpush.bf16.msra.mxu2 %v7741_v50  ;;  %v7856_v50 = vld [vmem:[%s12156_s18 + $0x260] sm:$0xf] }
 0x5e7   : > { %4996 = vmatpush.bf16.msrb.mxu1 %v7677_v43  ;;  %v7728_v43 = vld [vmem:[%s12155_s17 + $0x1c0] sm:$0xf] }
 0x5e8   : > { %4961 = vmatpush.bf16.msrb.mxu0 %v7665_v54  ;;  %v7729_v54 = vor.u32 %v8466_v45, %v7728_v43  ;;  %v7858_v43 = vld [vmem:[%s12156_s18 + $0x268] sm:$0xf0]  ;;  %v7848_v45 = vld [vmem:[%s12156_s18 + $0x250] sm:$0xf] }
 0x5ea   : > { %4745 = vmatmul.bf16.vlgmr.msra.gmra.mxu0 %v9684_v8  ;;  %4781 = vmatmul.bf16.vlgmr.msra.gmra.mxu1 %v9684_v8  ;;  %v7824_v8 = vld [vmem:[%s12156_s18 + $0x220] sm:$0xf] }
 0x5eb   : > { %4997 = vmatpush.bf16.msrb.mxu1 %v7669_v0  ;;  %v7825_v1 = vor.u32 %v8482_v56, %v7824_v8  ;;  %v7792_v0 = vld [vmem:[%s12156_s18 + $0x1e0] sm:$0xf]  ;;  %v7797_v8 = vor.u32 %v8473_v32, %v7794_v7  ;;  %4979 = vmatpush.bf16.msra.mxu3 %v7729_v54  ;;  %v7784_v56 = vld [vmem:[%s12156_s18 + $0x1d0] sm:$0xf]  ;;  %v7849_v54 = vor.u32 %v8488_v33, %v7848_v45  ;;  %v8486_v32 = vld [vmem:[%s12156_s18 + $0x244] sm:$0xf0] }
 0x5ec   : > { %5216 = vmatpush.bf16.msra.mxu0 %v7833_v60  ;;  %v7793_v60 = vor.u32 %v8474_v12, %v7792_v0  ;;  %5015 = vmatpush.bf16.msra.mxu2 %v7733_v24  ;;  %v7785_v39 = vor.u32 %v8472_v20, %v7784_v56  ;;  %v7850_v0 = vld [vmem:[%s12156_s18 + $0x258] sm:$0xf0]  ;;  %v7840_v12 = vld [vmem:[%s12156_s18 + $0x240] sm:$0xf]  ;;  %v8485_v24 = vld [vmem:[%s12156_s18 + $0x244] sm:$0xf]  ;;  %v4068_v56 = vadd.f32 %v11397_v49, %v11040_v23 }
 0x5ed   : > { %v7842_v7 = vld [vmem:[%s12156_s18 + $0x248] sm:$0xf0]  ;;  %v4073_v23 = vadd.f32 %v11482_v14, %v11108_v53 }
 0x5ef   : > { %5252 = vmatpush.bf16.msra.mxu1 %v7837_v28  ;;  %v8471_v28 = vld [vmem:[%s12156_s18 + $0x1d4] sm:$0xf] }
 0x5f0   : > { %5217 = vmatpush.bf16.msra.mxu0 %v7825_v1  ;;  %v7776_v1 = vld [vmem:[%s12156_s18 + $0x1c0] sm:$0xf] }
 0x5f2   : > { %7495 = vmatmul.msk.bf16.gmra.mxu3 %vm3434_vm10, %v4338_v29  ;;  %7497 = vmatmul.msk.bf16.gmra.mxu2 %vm3434_vm10, %v4338_v29  ;;  %v8469_v29 = vld [vmem:[%s12156_s18 + $0x1c4] sm:$0xf] }
 0x5f3   : > { %5253 = vmatpush.bf16.msra.mxu1 %v7829_v22  ;;  %v8470_v22 = vld [vmem:[%s12156_s18 + $0x1c4] sm:$0xf0]  ;;  %v7781_v48 = vor.u32 %v8469_v29, %v7778_v55 }
 0x5f4   : > { %5218 = vmatpush.bf16.msra.mxu0 %v7817_v16  ;;  %v7777_v40 = vor.u32 %v8470_v22, %v7776_v1  ;;  %v7880_v16 = vld [vmem:[%s12156_s18 + $0x290] sm:$0xf] }
 0x5f5   : > { %v7881_v34 = vor.u32 %v8496_v4, %v7880_v16 }
 0x5f7   : > { %5254 = vmatpush.bf16.msra.mxu1 %v7821_v17  ;;  %v7882_v17 = vld [vmem:[%s12156_s18 + $0x298] sm:$0xf0] }
 0x5f8   : > { %5219 = vmatpush.bf16.msra.mxu0 %v7809_v51  ;;  %v8493_v51 = vld [vmem:[%s12156_s18 + $0x284] sm:$0xf] }
 0x5f9   : > { %v7877_v18 = vor.u32 %v8493_v51, %v7874_v31 }
 0x5fa   : > { %4750 = vmatmul.bf16.gmra.mxu0 %v9666_v11  ;;  %4786 = vmatmul.bf16.gmra.mxu1 %v9666_v11  ;;  %v7800_v11 = vld [vmem:[%s12156_s18 + $0x1f0] sm:$0xf] }
 0x5fb   : > { %5255 = vmatpush.bf16.msra.mxu1 %v7813_v19  ;;  %v7801_v38 = vor.u32 %v8476_v44, %v7800_v11  ;;  %v7873_v19 = vor.u32 %v8494_v21, %v7872_v6  ;;  %v7865_v11 = vor.u32 %v8492_v27, %v7864_v37  ;;  %v7866_v44 = vld [vmem:[%s12156_s18 + $0x278] sm:$0xf0] }
 0x5fd   : > { %5220 = vmatpush.bf16.msra.mxu0 %v7801_v38  ;;  %v8490_v38 = vld [vmem:[%s12156_s18 + $0x264] sm:$0xf0] }
 0x5fe   : > { %v7857_v47 = vor.u32 %v8490_v38, %v7856_v50 }
 0x5ff   : > { %5256 = vmatpush.bf16.msra.mxu1 %v7805_v26  ;;  %v7861_v26 = vor.u32 %v8489_v46, %v7858_v43 }
 0x601   : > { %5221 = vmatpush.bf16.msra.mxu0 %v7793_v60  ;;  %v7841_v60 = vor.u32 %v8486_v32, %v7840_v12 }
 0x602   : > { %7638 = vmatmul.msk.bf16.vlgmr.msrb.gmra.mxu3 %vm846_vm0, %v9654_v15  ;;  %7640 = vmatmul.msk.bf16.vlgmr.msrb.gmra.mxu2 %vm846_vm0, %v9654_v15  ;;  %v7789_v15 = vor.u32 %v8471_v28, %v7786_v9 }
 0x603   : > { %5257 = vmatpush.bf16.msra.mxu1 %v7797_v8  ;;  %5236 = vmatpush.bf16.msrb.mxu3 %v7881_v34  ;;  %v7845_v8 = vor.u32 %v8485_v24, %v7842_v7 }
 0x605   : > { %5222 = vmatpush.bf16.msra.mxu0 %v7785_v39 }
 0x607   : > { %5258 = vmatpush.bf16.msra.mxu1 %v7789_v15  ;;  %5237 = vmatpush.bf16.msrb.mxu3 %v7873_v19 }
 0x609   : > { %5223 = vmatpush.bf16.msra.mxu0 %v7777_v40 }
 0x60a   : > { %4962 = vmatmul.bf16.vlgmr.msrb.gmra.mxu0 %v11431_v63  ;;  %4998 = vmatmul.bf16.vlgmr.msrb.gmra.mxu1 %v11431_v63  ;;  %v7885_v63 = vor.u32 %v8495_v62, %v7882_v17 }
 0x60b   : > { %5259 = vmatpush.bf16.msra.mxu1 %v7781_v48  ;;  %5238 = vmatpush.bf16.msrb.mxu3 %v7865_v11 }
 0x60c   : > { %5272 = vmatpush.bf16.msrb.mxu2 %v7885_v63 }
 0x60f   : > { %5239 = vmatpush.bf16.msrb.mxu3 %v7857_v47 }
 0x610   : > { %5273 = vmatpush.bf16.msrb.mxu2 %v7877_v18 }
 0x612   : > { %7639 = vmatmul.msk.bf16.gmra.mxu3 %vm846_vm0, %v9647_v58  ;;  %7641 = vmatmul.msk.bf16.gmra.mxu2 %vm846_vm0, %v9647_v58  ;;  %v7869_v58 = vor.u32 %v8491_v35, %v7866_v44 }
 0x613   : > { %5240 = vmatpush.bf16.msrb.mxu3 %v7849_v54 }
 0x614   : > { %5274 = vmatpush.bf16.msrb.mxu2 %v7869_v58 }
 0x617   : > { %5241 = vmatpush.bf16.msrb.mxu3 %v7841_v60 }
 0x618   : > { %5275 = vmatpush.bf16.msrb.mxu2 %v7861_v26 }
 0x61a   : > { %4967 = vmatmul.bf16.gmra.mxu0 %v11415_v61  ;;  %5003 = vmatmul.bf16.gmra.mxu1 %v11415_v61  ;;  %v7853_v61 = vor.u32 %v8487_v42, %v7850_v0 }
 0x61c   : > { %5276 = vmatpush.bf16.msrb.mxu2 %v7853_v61 }
 0x620   : > { %5277 = vmatpush.bf16.msrb.mxu2 %v7845_v8 }
 0x622   : > { %7742 = vmatmul.msk.bf16.vlgmr.msra.gmra.mxu3 %vm3434_vm10, %v11594_v5  ;;  %7744 = vmatmul.msk.bf16.vlgmr.msra.gmra.mxu2 %vm3434_vm10, %v11594_v5 }
 0x627   : > { %v4227_v20 = vpop.f32.mrf.mxu0  ;;  %v4263_v28 = vpop.f32.mrf.mxu1 }
 0x628   : > { %v4228_v39 = vadd.f32 %v4227_v20, %v4068_v56  ;;  %v4264_v9 = vadd.f32 %v4263_v28, %v11553_v25 }
 0x62a   : > { %5224 = vmatmul.bf16.vlgmr.msra.gmra.mxu0 %v9664_v3  ;;  %5260 = vmatmul.bf16.vlgmr.msra.gmra.mxu1 %v9664_v3 }
 0x62f   : > { %v4229_v15 = vpop.f32.mrf.mxu0  ;;  %v4265_v1 = vpop.f32.mrf.mxu1 }
 0x632   : > { %7743 = vmatmul.msk.bf16.gmra.mxu3 %vm3434_vm10, %v11563_v57  ;;  %7745 = vmatmul.msk.bf16.gmra.mxu2 %vm3434_vm10, %v11563_v57 }
 0x637   : > { %v4232_v49 = vpop.f32.mrf.mxu0  ;;  %v4268_v5 = vpop.f32.mrf.mxu1 }
 0x638   : > { %v4233_v22 = vadd.f32 %v4232_v49, %v4073_v23  ;;  %v4269_v25 = vadd.f32 %v4268_v5, %v11676_v30  ;;  %v4070_v30 = vadd.f32 %v11435_v10, %v11079_v59 }
 0x63a   : > { %5229 = vmatmul.bf16.gmra.mxu0 %v9658_v2  ;;  %5265 = vmatmul.bf16.gmra.mxu1 %v9658_v2  ;;  %v4106_v2 = vadd.f32 %v11612_v13, %v11395_v36  ;;  %v4230_v16 = vadd.f32 %v4229_v15, %v4070_v30 }
 0x63c   : > { %v4266_v4 = vadd.f32 %v4265_v1, %v4106_v2 }
 0x63f   : > { %v4234_v3 = vpop.f32.mrf.mxu0  ;;  %v4270_v29 = vpop.f32.mrf.mxu1 }
 0x642   : > { %7886 = vmatmul.msk.bf16.vlgmr.msrb.gmra.mxu3 %vm846_vm0, %v9645_v52  ;;  %7888 = vmatmul.msk.bf16.vlgmr.msrb.gmra.mxu2 %vm846_vm0, %v9645_v52 }
 0x645   : > { %v4245_v57 = vpop.f32.mrf.mxu3  ;;  %v4281_v40 = vpop.f32.mrf.mxu2 }
 0x646   : > { %v4246_v53 = vadd.f32 %v4245_v57, %v4228_v39  ;;  %v4282_v14 = vadd.f32 %v4281_v40, %v4264_v9 }
 0x647   : > { %v4456_v55 = vpop.f32.mrf.mxu0  ;;  %v4492_v48 = vpop.f32.mrf.mxu1 }
 0x64d   : > { %v4247_v62 = vpop.f32.mrf.mxu3  ;;  %v4283_v34 = vpop.f32.mrf.mxu2 }
 0x64e   : > { %v4248_v17 = vadd.f32 %v4247_v62, %v4230_v16  ;;  %v4284_v63 = vadd.f32 %v4283_v34, %v4266_v4 }
 0x64f   : > { %v4458_v6 = vpop.f32.mrf.mxu0  ;;  %v4494_v52 = vpop.f32.mrf.mxu1 }
 0x652   : > { %7887 = vmatmul.msk.bf16.gmra.mxu3 %vm846_vm0, %v9632_v41  ;;  %7889 = vmatmul.msk.bf16.gmra.mxu2 %vm846_vm0, %v9632_v41 }
 0x655   : > { %v4250_v21 = vpop.f32.mrf.mxu3  ;;  %v4286_v51 = vpop.f32.mrf.mxu2 }
 0x656   : > { %v4251_v59 = vadd.f32 %v4250_v21, %v4233_v22  ;;  %v4287_v10 = vadd.f32 %v4286_v51, %v4269_v25 }
 0x657   : > { %v4461_v19 = vpop.f32.mrf.mxu0  ;;  %v4497_v36 = vpop.f32.mrf.mxu1 }
 0x65d   : > { %v4252_v13 = vpop.f32.mrf.mxu3  ;;  %v4288_v31 = vpop.f32.mrf.mxu2 }
 0x65e   : > { %v8511_v13 = vld [vmem:[%s12158_s20 + $0x70] sm:$0xff]  ;;  %v8502_v31 = vld [vmem:[%s12158_s20 + $0x28] sm:$0xff] }
 0x65f   : > { %v4463_v18 = vpop.f32.mrf.mxu0  ;;  %v4499_v37 = vpop.f32.mrf.mxu1 }
 0x665   : > { %v4474_v27 = vpop.f32.mrf.mxu3  ;;  %v4510_v35 = vpop.f32.mrf.mxu2 }
 0x666   : > { %v4475_v11 = vadd.f32 %v4474_v27, %v4456_v55  ;;  %v4511_v44 = vadd.f32 %v4510_v35, %v4492_v48 }
 0x667   : > { %v4746_v58 = vpop.f32.mrf.mxu0  ;;  %v4782_v50 = vpop.f32.mrf.mxu1 }
 0x668   : > { %v4519_v38 = vadd.f32 %v4475_v11, %v4246_v53  ;;  %v4520_v46 = vadd.f32 %v4511_v44, %v4282_v14  ;;  %v8510_v11 = vld [vmem:[%s12158_s20 + $0x68] sm:$0xff]  ;;  %v8501_v44 = vld [vmem:[%s12158_s20 + $0x20] sm:$0xff] }
 0x66d   : > { %v4476_v47 = vpop.f32.mrf.mxu3  ;;  %v4512_v41 = vpop.f32.mrf.mxu2 }
 0x66e   : > { %v4477_v43 = vadd.f32 %v4476_v47, %v4458_v6  ;;  %v4513_v26 = vadd.f32 %v4512_v41, %v4494_v52  ;;  %v8513_v6 = vld [vmem:[%s12158_s20 + $0x80] sm:$0xff]  ;;  %v8504_v52 = vld [vmem:[%s12158_s20 + $0x38] sm:$0xff] }
 0x66f   : > { %v4748_v45 = vpop.f32.mrf.mxu0  ;;  %v4784_v33 = vpop.f32.mrf.mxu1  ;;  %5436 = vmatpush.bf16.msrb.mxu0 %v8513_v6  ;;  %5520 = vmatpush.bf16.msrb.mxu1 %v8504_v52  ;;  %v8509_v47 = vld [vmem:[%s12158_s20 + $0x60] sm:$0xff]  ;;  %v8500_v41 = vld [vmem:[%s12158_s20 + $0x18] sm:$0xff] }
 0x670   : > { %v4521_v42 = vadd.f32 %v4477_v43, %v4248_v17  ;;  %v4522_v54 = vadd.f32 %v4513_v26, %v4284_v63 }
 0x675   : > { %v4479_v0 = vpop.f32.mrf.mxu3  ;;  %v4515_v61 = vpop.f32.mrf.mxu2 }
 0x676   : > { %v4480_v12 = vadd.f32 %v4479_v0, %v4461_v19  ;;  %v4516_v32 = vadd.f32 %v4515_v61, %v4497_v36  ;;  %v8507_v0 = vld [vmem:[%s12158_s20 + $0x50] sm:$0xff]  ;;  %v8498_v61 = vld [vmem:[%s12158_s20 + $0x8] sm:$0xff] }
 0x677   : > { %v4751_v24 = vpop.f32.mrf.mxu0  ;;  %v4787_v60 = vpop.f32.mrf.mxu1 }
 0x678   : > { %v4523_v7 = vadd.f32 %v4480_v12, %v4251_v59  ;;  %v4524_v8 = vadd.f32 %v4516_v32, %v4287_v10  ;;  %v8512_v59 = vld [vmem:[%s12158_s20 + $0x78] sm:$0xff]  ;;  %v8503_v10 = vld [vmem:[%s12158_s20 + $0x30] sm:$0xff] }
 0x679   : > { %5437 = vmatpush.bf16.msrb.mxu0 %v8512_v59  ;;  %5521 = vmatpush.bf16.msrb.mxu1 %v8503_v10 }
 0x67d   : > { %v4481_v56 = vpop.f32.mrf.mxu3  ;;  %v4517_v20 = vpop.f32.mrf.mxu2  ;;  %5438 = vmatpush.bf16.msrb.mxu0 %v8511_v13  ;;  %5522 = vmatpush.bf16.msrb.mxu1 %v8502_v31 }
 0x67e   : > { %v8522_v20 = vld [vmem:[%s12158_s20 + $0xc8] sm:$0xff] }
 0x67f   : > { %v4753_v28 = vpop.f32.mrf.mxu0  ;;  %v4789_v39 = vpop.f32.mrf.mxu1 }
 0x680   : > { %v8521_v28 = vld [vmem:[%s12158_s20 + $0xc0] sm:$0xff] }
 0x681   : > { %5439 = vmatpush.bf16.msrb.mxu0 %v8510_v11  ;;  %5523 = vmatpush.bf16.msrb.mxu1 %v8501_v44  ;;  %v8515_v44 = vld [vmem:[%s12158_s20 + $0x90] sm:$0xff] }
 0x685   : > { %v4764_v9 = vpop.f32.mrf.mxu3  ;;  %v4800_v15 = vpop.f32.mrf.mxu2  ;;  %5440 = vmatpush.bf16.msrb.mxu0 %v8509_v47  ;;  %5524 = vmatpush.bf16.msrb.mxu1 %v8500_v41 }
 0x686   : > { %v4765_v1 = vadd.f32 %v4764_v9, %v4746_v58  ;;  %v4801_v23 = vadd.f32 %v4800_v15, %v4782_v50 }
 0x687   : > { %v4963_v49 = vpop.f32.mrf.mxu0  ;;  %v4999_v5 = vpop.f32.mrf.mxu1 }
 0x688   : > { %v4809_v22 = vadd.f32 %v4765_v1, %v4519_v38  ;;  %v4810_v25 = vadd.f32 %v4801_v23, %v4520_v46  ;;  %v8520_v23 = vld [vmem:[%s12158_s20 + $0xb8] sm:$0xff] }
 0x68d   : > { %v4766_v3 = vpop.f32.mrf.mxu3  ;;  %v4802_v29 = vpop.f32.mrf.mxu2 }
 0x68e   : > { %v4767_v57 = vadd.f32 %v4766_v3, %v4748_v45  ;;  %v4803_v40 = vadd.f32 %v4802_v29, %v4784_v33  ;;  %v8508_v45 = vld [vmem:[%s12158_s20 + $0x58] sm:$0xff]  ;;  %v8499_v33 = vld [vmem:[%s12158_s20 + $0x10] sm:$0xff]  ;;  %v8518_v3 = vld [vmem:[%s12158_s20 + $0xa8] sm:$0xff] }
 0x68f   : > { %v11978_v53 = vpop.f32.mrf.mxu0  ;;  %v11980_v14 = vpop.f32.mrf.mxu1  ;;  %5441 = vmatpush.bf16.msrb.mxu0 %v8508_v45  ;;  %5525 = vmatpush.bf16.msrb.mxu1 %v8499_v33  ;;  %v8523_v29 = vld [vmem:[%s12158_s20 + $0xd0] sm:$0xff] }
 0x690   : > { %v11982_v55 = vadd.f32 %v4767_v57, %v4521_v42  ;;  %v11984_v48 = vadd.f32 %v4803_v40, %v4522_v54 }
 0x693   : > { %5442 = vmatpush.bf16.msrb.mxu0 %v8507_v0  ;;  %5526 = vmatpush.bf16.msrb.mxu1 %v8498_v61 }
 0x695   : > { %v4769_v30 = vpop.f32.mrf.mxu3  ;;  %v4805_v2 = vpop.f32.mrf.mxu2 }
 0x696   : > { %v4770_v16 = vadd.f32 %v4769_v30, %v4751_v24  ;;  %v4806_v4 = vadd.f32 %v4805_v2, %v4787_v60  ;;  %v8506_v24 = vld [vmem:[%s12158_s20 + $0x48] sm:$0xff]  ;;  %v8497_v60 = vld [vmem:[%s12158_s20] sm:$0xff] }
 0x697   : > { %v11986_v62 = vpop.f32.mrf.mxu0  ;;  %v11988_v34 = vpop.f32.mrf.mxu1  ;;  %5443 = vmatpush.bf16.msrb.mxu0 %v8506_v24  ;;  %5527 = vmatpush.bf16.msrb.mxu1 %v8497_v60  ;;  %v5294_v30 = vld [vmem:[%s12157_s19] sm:$0x3] }
 0x698   : > { %v11990_v17 = vadd.f32 %v4770_v16, %v4523_v7  ;;  %v11992_v63 = vadd.f32 %v4806_v4, %v4524_v8  ;;  %v8505_v7 = vld [vmem:[%s12158_s20 + $0x40] sm:$0xff]  ;;  %v5296_v52 = vperm.slane %v5294_v30, 0 }
 0x699   : > { %5541 = vmatpush.bf16.msra.mxu2 %v8505_v7  ;;  %v8517_v2 = vld [vmem:[%s12158_s20 + $0xa0] sm:$0xff] }
 0x69b   : > { %5635 = vmatpush.bf16.msra.mxu0 %v8522_v20 }
 0x69d   : > { %v4771_v21 = vpop.f32.mrf.mxu3  ;;  %v4807_v51 = vpop.f32.mrf.mxu2 }
 0x69e   : > { %v5297_v51 = vperm.slane %v5294_v30, 1 }
 0x69f   : > { %v4970_v19 = vpop.f32.mrf.mxu0  ;;  %v5006_v36 = vpop.f32.mrf.mxu1  ;;  %5636 = vmatpush.bf16.msra.mxu0 %v8521_v28 }
 0x6a0   : > { %v8516_v19 = vld [vmem:[%s12158_s20 + $0x98] sm:$0xff] }
 0x6a3   : > { %5637 = vmatpush.bf16.msra.mxu0 %v8520_v23 }
 0x6a5   : > { %v4981_v18 = vpop.f32.mrf.mxu3  ;;  %v5017_v37 = vpop.f32.mrf.mxu2 }
 0x6a6   : > { %v4982_v27 = vadd.f32 %v4981_v18, %v4963_v49  ;;  %v5018_v35 = vadd.f32 %v5017_v37, %v4999_v5  ;;  %v8514_v49 = vld [vmem:[%s12158_s20 + $0x88] sm:$0xff]  ;;  %v8519_v5 = vld [vmem:[%s12158_s20 + $0xb0] sm:$0xff] }
 0x6a7   : > { %v5225_v58 = vpop.f32.mrf.mxu0  ;;  %v5261_v50 = vpop.f32.mrf.mxu1  ;;  %5457 = vmatpush.bf16.msra.mxu3 %v8514_v49  ;;  %5638 = vmatpush.bf16.msra.mxu0 %v8519_v5 }
 0x6a8   : > { %v5026_v38 = vadd.f32 %v4982_v27, %v4809_v22  ;;  %v5027_v46 = vadd.f32 %v5018_v35, %v4810_v25 }
 0x6ab   : > { %5656 = vmatpush.bf16.msrb.mxu3 %v8523_v29  ;;  %5639 = vmatpush.bf16.msra.mxu0 %v8518_v3 }
 0x6ad   : > { %v4983_v43 = vpop.f32.mrf.mxu3  ;;  %v5019_v26 = vpop.f32.mrf.mxu2 }
 0x6ae   : > { %v4984_v16 = vadd.f32 %v4983_v43, %v11978_v53  ;;  %v5020_v4 = vadd.f32 %v5019_v26, %v11980_v14 }
 0x6af   : > { %v5227_v42 = vpop.f32.mrf.mxu0  ;;  %v5263_v54 = vpop.f32.mrf.mxu1  ;;  %5640 = vmatpush.bf16.msra.mxu0 %v8517_v2 }
 0x6b0   : > { %v5028_v36 = vadd.f32 %v4984_v16, %v11982_v55  ;;  %v5029_v13 = vadd.f32 %v5020_v4, %v11984_v48  ;;  %v8531_v16 = vld [vmem:[%s12160_s22 + $0x38] sm:$0xff]  ;;  %v8530_v4 = vld [vmem:[%s12160_s22 + $0x30] sm:$0xff] }
 0x6b1   : > { %5742 = vmatpush.bf16.msra.mxu1 %v8531_v16 }
 0x6b3   : > { %5641 = vmatpush.bf16.msra.mxu0 %v8516_v19 }
 0x6b5   : > { %v4986_v12 = vpop.f32.mrf.mxu3  ;;  %v5022_v32 = vpop.f32.mrf.mxu2  ;;  %5743 = vmatpush.bf16.msra.mxu1 %v8530_v4 }
 0x6b6   : > { %v4987_v35 = vadd.f32 %v4986_v12, %v11986_v62  ;;  %v5023_v11 = vadd.f32 %v5022_v32, %v11988_v34 }
 0x6b7   : > { %v12045_v8 = vpop.f32.mrf.mxu0  ;;  %v12047_v56 = vpop.f32.mrf.mxu1  ;;  %5642 = vmatpush.bf16.msra.mxu0 %v8515_v44 }
 0x6b8   : > { %v5030_v47 = vadd.f32 %v4987_v35, %v11990_v17  ;;  %v5031_v41 = vadd.f32 %v5023_v11, %v11992_v63 }
 0x6bd   : > { %v4988_v39 = vpop.f32.mrf.mxu3  ;;  %v5024_v9 = vpop.f32.mrf.mxu2 }
 0x6bf   : > { %v5232_v15 = vpop.f32.mrf.mxu0  ;;  %v5268_v1 = vpop.f32.mrf.mxu1 }
 0x6c5   : > { %v5243_v22 = vpop.f32.mrf.mxu3  ;;  %v5279_v25 = vpop.f32.mrf.mxu2 }
 0x6c6   : > { %v5244_v57 = vadd.f32 %v5243_v22, %v5225_v58  ;;  %v5280_v40 = vadd.f32 %v5279_v25, %v5261_v50 }
 0x6c8   : > { %v5288_v6 = vadd.f32 %v5244_v57, %v5026_v38  ;;  %v5289_v21 = vadd.f32 %v5280_v40, %v5027_v46 }
 0x6ca   : > { %v5300_v53 = vadd.f32 %v5296_v52, %v5288_v6  ;;  %v5301_v37 = vadd.f32 %v5297_v51, %v5289_v21  ;;  %v8529_v6 = vld [vmem:[%s12160_s22 + $0x28] sm:$0xff]  ;;  %v8527_v21 = vld [vmem:[%s12160_s22 + $0x18] sm:$0xff] }
 0x6cb   : > { %5744 = vmatpush.bf16.msra.mxu1 %v8529_v6 }
 0x6cc   : > { %v5306_v55 = vmax.f32 %v5300_v53, 0.0  ;;  %v5307_v38 = vmax.f32 %v5301_v37, 0.0 }
 0x6cd   : > { %v5245_v59 = vpop.f32.mrf.mxu3  ;;  %v5281_v10 = vpop.f32.mrf.mxu2 }
 0x6ce   : > { %v5246_v31 = vadd.f32 %v5245_v59, %v5227_v42  ;;  %v5282_v18 = vadd.f32 %v5281_v10, %v5263_v54  ;;  %v8525_v10 = vld [vmem:[%s12160_s22 + $0x8] sm:$0xff] }
 0x6d0   : > { %v5290_v14 = vadd.f32 %v5246_v31, %v5028_v36  ;;  %v5291_v27 = vadd.f32 %v5282_v18, %v5029_v13  ;;  %v8524_v36 = vld [vmem:[%s12160_s22] sm:$0xff] }
 0x6d2   : > { %v5302_v58 = vadd.f32 %v5296_v52, %v5290_v14  ;;  %v5303_v50 = vadd.f32 %v5297_v51, %v5291_v27 }
 0x6d4   : > { %v5308_v48 = vmax.f32 %v5302_v58, 0.0  ;;  %v5309_v46 = vmax.f32 %v5303_v50, 0.0 }
 0x6d5   : > { %v5248_v43 = vpop.f32.mrf.mxu3  ;;  %v5284_v26 = vpop.f32.mrf.mxu2 }
 0x6d6   : > { %v5312_v62 = vpack.c.bf16 %v5308_v48, %v5306_v55  ;;  %v5313_v34 = vpack.c.bf16 %v5309_v46, %v5307_v38  ;;  %v5249_v45 = vadd.f32 %v5248_v43, %v12045_v8  ;;  %v5285_v33 = vadd.f32 %v5284_v26, %v12047_v56  ;;  %v8540_v46 = vld [vmem:[%s12159_s21] ss:$0 sm:$0xff] }
 0x6d8   : > { %v5292_v42 = vadd.f32 %v5249_v45, %v5030_v47  ;;  %v5293_v54 = vadd.f32 %v5285_v33, %v5031_v41  ;;  %5528 = vmatmul.bf16.vlgmr.msrb.gmra.mxu1 %v5312_v62  ;;  %7981 = vmatmul.msk.bf16.vlgmr.msra.gmra.mxu2 %vm5432_vm13, %v5313_v34  ;;  %v5368_v0 = vshll.u32 %v5313_v34, 16  ;;  %v5356_v61 = vshll.u32 %v5312_v62, 16 }
 0x6d9   : > { %v5354_v8 = vshrl.u32 %v5312_v62, 16  ;;  %v5366_v9 = vshrl.u32 %v5313_v34, 16  ;;  %v5571_v56 = vrot.slane %v5312_v62, 1  ;;  %v5574_v15 = vrot.slane %v5313_v34, 1 }
 0x6da   : > { %v5304_v17 = vadd.f32 %v5296_v52, %v5292_v42  ;;  %v5305_v12 = vadd.f32 %v5297_v51, %v5293_v54  ;;  %v5358_v7 = vrot.slane %v5356_v61, 1  ;;  %v5370_v20 = vrot.slane %v5368_v0, 1  ;;  %v8528_v52 = vld [vmem:[%s12160_s22 + $0x20] sm:$0xff]  ;;  %v8526_v51 = vld [vmem:[%s12160_s22 + $0x10] sm:$0xff] }
 0x6db   : > { %5745 = vmatpush.bf16.msra.mxu1 %v8528_v52  ;;  %v8541_v0 = vld [vmem:[%s12161_s23] ss:$0 sm:$0xff] }
 0x6dc   : > { %v5310_v63 = vmax.f32 %v5304_v17, 0.0  ;;  %v5311_v32 = vmax.f32 %v5305_v12, 0.0  ;;  %v5359_v22 = vor.u32 %v5358_v7, %v5354_v8  ;;  %v5371_v25 = vor.u32 %v5370_v20, %v5366_v9 }
 0x6dd   : > { %v5250_v24 = vpop.f32.mrf.mxu3  ;;  %v5286_v60 = vpop.f32.mrf.mxu2 }
 0x6de   : > { %v5332_v28 = vpack.c.bf16 %v5310_v63, %v5310_v63  ;;  %v5333_v39 = vpack.c.bf16 %v5311_v32, %v5311_v32 }
 0x6df   : > { %5746 = vmatpush.bf16.msra.mxu1 %v8527_v21 }
 0x6e0   : > { %v5361_v1 = vshll.u32 %v5332_v28, 16  ;;  %v5572_v23 = vrot.slane %v5332_v28, 1  ;;  %v5373_v49 = vshll.u32 %v5333_v39, 16  ;;  %v5575_v5 = vrot.slane %v5333_v39, 1 }
 0x6e2   : > { %v5363_v3 = vrot.slane %v5361_v1, 1  ;;  %v5375_v29 = vrot.slane %v5373_v49, 1  ;;  %v5573_v57 = vsel %vm1008_vm2, %v5571_v56, %v5572_v23  ;;  %v5576_v40 = vsel %vm1008_vm2, %v5574_v15, %v5575_v5 }
 0x6e3   : > { %5747 = vmatpush.bf16.msra.mxu1 %v8526_v51 }
 0x6e4   : > { %v5364_v30 = vsel %vm770_vm1, %v5359_v22, %v5363_v3  ;;  %v5376_v2 = vsel %vm770_vm1, %v5371_v25, %v5375_v29 }
 0x6e5   : > { %5444 = vmatmul.bf16.vlgmr.msrb.gmra.mxu0 %v5364_v30  ;;  %7944 = vmatmul.msk.bf16.vlgmr.msra.gmra.mxu3 %vm5432_vm13, %v5376_v2 }
 0x6e7   : > { %5748 = vmatpush.bf16.msra.mxu1 %v8525_v10 }
 0x6eb   : > { %5749 = vmatpush.bf16.msra.mxu1 %v8524_v36 }
 0x6f5   : > { %5643 = vmatmul.bf16.vlgmr.msra.gmra.mxu0 %v5573_v57  ;;  %8036 = vmatmul.msk.bf16.vlgmr.msrb.gmra.mxu3 %vm5432_vm13, %v5576_v40 }
 0x755   : > { %v5529_v18 = vpop.f32.mrf.mxu1 }
 0x75b   : > { %v5543_v53 = vpop.f32.mrf.mxu2 }
 0x75d   : > { %v5531_v58 = vpop.f32.mrf.mxu1 }
 0x762   : > { %v5445_v59 = vpop.f32.mrf.mxu0 }
 0x763   : > { %v5545_v38 = vpop.f32.mrf.mxu2 }
 0x768   : > { %v5459_v19 = vpop.f32.mrf.mxu3 }
 0x769   : > { %v5460_v37 = vadd.f32 %v5459_v19, %v5445_v59 }
 0x76a   : > { %v5447_v13 = vpop.f32.mrf.mxu0 }
 0x76b   : > { %v5530_v35 = vadd.f32 %v5529_v18, %v5460_v37 }
 0x76d   : > { %v5544_v55 = vadd.f32 %v5543_v53, %v5530_v35 }
 0x770   : > { %v5461_v31 = vpop.f32.mrf.mxu3 }
 0x771   : > { %v5462_v11 = vadd.f32 %v5461_v31, %v5447_v13 }
 0x772   : > { %v5644_v14 = vpop.f32.mrf.mxu0 }
 0x773   : > { %v5532_v50 = vadd.f32 %v5531_v58, %v5462_v11 }
 0x775   : > { %v5546_v43 = vadd.f32 %v5545_v38, %v5532_v50 }
 0x778   : > { %v5658_v27 = vpop.f32.mrf.mxu3 }
 0x779   : > { %v5659_v44 = vadd.f32 %v5658_v27, %v5644_v14 }
 0x77a   : > { %v5646_v47 = vpop.f32.mrf.mxu0 }
 0x77b   : > { %v5663_v48 = vadd.f32 %v5659_v44, %v5544_v55 }
 0x77d   : > { %v5669_v62 = vadd.f32 %v8540_v46, %v5663_v48 }
 0x77f   : > { %v5671_v33 = vmax.f32 %v5669_v62, 0.0 }
 0x780   : > { %v5660_v41 = vpop.f32.mrf.mxu3 }
 0x781   : > { %v5661_v26 = vadd.f32 %v5660_v41, %v5646_v47 }
 0x783   : > { %v5664_v34 = vadd.f32 %v5661_v26, %v5546_v43 }
 0x785   : > { %v5670_v45 = vadd.f32 %v8540_v46, %v5664_v34 }
 0x787   : > { %v5672_v42 = vmax.f32 %v5670_v45, 0.0 }
 0x789   : > { %v5673_v54 = vpack.c.bf16 %v5672_v42, %v5671_v33 }
 0x78b   : > { %5750 = vmatmul.bf16.vlgmr.msra.gmra.mxu1 %v5673_v54 }
 0x808   : > { %v5751_v61 = vpop.f32.mrf.mxu1 }
 0x809   : > { %v5752_v17 = vadd.f32 %v8541_v0, %v5751_v61 }
 0x80b   : > { %5756 = vst.msk [vmem:[%s737_s8] sm:$0xff] %vm3434_vm10, %v5752_v17 }
 0x810   : > { %v5753_v12 = vpop.f32.mrf.mxu1 }
 0x811   : > { %v5754_v63 = vadd.f32 %v8541_v0, %v5753_v12 }
 0x813   : > { %5757 = vst.msk [vmem:[%s737_s8 + $0x8] sm:$0xff] %vm3434_vm10, %v5754_v63 }
 0x814 PF: > { %s34_s5 = sadd.s32 1, %s8548_s5  }
 0x815   : > { %p31_p4 = scmp.ge.s32.totalorder %s34_s5, 4  }
 0x817   :  { %33 = sbr.rel (!%p31_p4) target bundleno = 10 (0xa), region = 161 }

</bundles_post_ra>
